<compile_context>
chip_gen: v5e
topology: v5e:2x2
jax: 0.10.0
libtpu: 0.0.40
codegen_flags: <defaults>
</compile_context>

<pallas_src>
import functools
import math

import jax
import jax.numpy as jnp
from jax.experimental import pallas as pl
from jax.experimental.pallas import tpu as pltpu


def _round_up(x, m):
    return ((x + m - 1) // m) * m


def _int_pow(x, n):
    """x**n for a static non-negative integer n via binary exponentiation (VPU only)."""
    if n == 0:
        return jnp.ones_like(x)
    acc = None
    base = x
    while n > 0:
        if n & 1:
            acc = base if acc is None else acc * base
        n >>= 1
        if n:
            base = base * base
    return acc


def _density_kernel(params_ref, zt_ref, z0t_ref, logq_ref, *, c, dim, flow_length):
    """One batch tile: push z through all (class, layer) radial flows, emit log q_c.

    params_ref : SMEM (c, 2*flow_length) f32 -- [alpha | beta] per class (alpha = exp(log_alpha))
    zt_ref     : VMEM (dim, bt) f32          -- z transposed, batch on the lane axis
    z0t_ref    : VMEM (c, dim, flow_length)  -- radial centers, one column per layer
    logq_ref   : VMEM (c, bt) f32            -- lane-dense per-class log densities
    """
    zt = zt_ref[...]                                              # (dim, bt)
    log_norm = jnp.float32(-0.5 * dim * math.log(2.0 * math.pi))

    for ci in range(c):                                           # small & static: unroll
        z0_c = z0t_ref[ci]                                        # (dim, flow_length), tiny load
        z = zt
        sum_ld = jnp.zeros((1, zt.shape[1]), jnp.float32)
        for l in range(flow_length):                              # small & static: unroll
            alpha = params_ref[ci, l]                             # SMEM scalar read
            beta = params_ref[ci, flow_length + l]                # SMEM scalar read
            z0_col = z0_c[:, l:l + 1]                             # (dim, 1)

            diff = z - z0_col                                     # (dim, bt) lane-broadcast sub
            # TODO(synk): if a VJP is ever added, use sqrt(sum + eps) to avoid NaN grads at r=0.
            r = jnp.sqrt(jnp.sum(diff * diff, axis=0, keepdims=True))    # (1, bt) sublane reduce
            denom = alpha + r
            h = pl.reciprocal(denom, approx=True)                 # EUP vrcp (cheap slot)
            h = h * (2.0 - denom * h)                             # Newton refinements on the VPU
            h = h * (2.0 - denom * h)                             #   -> full f32 accuracy
            beta_h = beta * h                                     # (1, bt)
            z = z + beta_h * diff                                 # broadcast over sublanes

            one_p_bh = 1.0 + beta_h
            det_tail = one_p_bh - (beta * r) * (h * h)            # = 1 + beta*h + beta*(-h^2)*r
            if dim <= 32:
                # single EUP log per layer: log((1+bh)^(dim-1) * tail), power on the VPU.
                sum_ld = sum_ld + jnp.log(_int_pow(one_p_bh, dim - 1) * det_tail)
            else:
                # two-log form avoids overflow of the integer power at large dim.
                sum_ld = sum_ld + (dim - 1) * jnp.log(one_p_bh) + jnp.log(det_tail)

        # MultivariateNormal(mean=0, cov=I) log-prob of the transformed sample.
        log_pz = log_norm - 0.5 * jnp.sum(z * z, axis=0, keepdims=True)   # (1, bt)
        logq_ref[ci:ci + 1, :] = log_pz + sum_ld


def density_forward(z, z0_all, log_alpha_all, beta_all, *, training=False, batch_tile=1024):
    """Pallas implementation of Density.forward: returns log_q_c of shape (batch, c)."""
    c, flow_length, dim = z0_all.shape
    batch = z.shape[0]

    # batch -> lane axis; pad lanes to a multiple of the tile (padding sliced off at the end).
    bt = min(batch_tile, _round_up(batch, 128))
    b_pad = _round_up(batch, bt)
    zt = jnp.pad(jnp.transpose(z.astype(jnp.float32)), ((0, 0), (0, b_pad - batch)))

    # radial centers with the layer index last -> (dim, 1) columns slice out directly.
    z0t = jnp.transpose(z0_all.astype(jnp.float32), (0, 2, 1))            # (c, dim, flow_length)

    # tiny (c x 2*flow_length) parameter table for SMEM scalar prefetch: [alpha | beta].
    # (exp(log_alpha) here is c*flow_length elements of parameter prep, not per-sample work.)
    params = jnp.concatenate(
        [jnp.exp(log_alpha_all[..., 0]), beta_all[..., 0]], axis=-1).astype(jnp.float32)

    kernel = functools.partial(_density_kernel, c=c, dim=dim, flow_length=flow_length)

    logq = pl.pallas_call(
        kernel,
        out_shape=jax.ShapeDtypeStruct((c, b_pad), jnp.float32),
        grid_spec=pltpu.PrefetchScalarGridSpec(
            num_scalar_prefetch=1,
            grid=(b_pad // bt,),
            in_specs=[
                pl.BlockSpec((dim, bt), lambda b, p: (0, b)),                  # z^T batch tile
                pl.BlockSpec((c, dim, flow_length), lambda b, p: (0, 0, 0)),   # resident centers
            ],
            out_specs=pl.BlockSpec((c, bt), lambda b, p: (0, b)),
        ),
        compiler_params=pltpu.CompilerParams(
            dimension_semantics=("parallel",)),
    )(params, zt, z0t)

    log_q_c = jnp.transpose(logq[:, :batch])                               # (batch, c)
    if not training:
        log_q_c = jnp.where(jnp.isnan(log_q_c), -jnp.inf, log_q_c)         # eval-mode NaN -> -inf
    return log_q_c


def _reference_density(z, z0_all, log_alpha_all, beta_all):
    """Pure-JAX replica of Density.forward (eval mode) for verification."""
    c, flow_length, dim = z0_all.shape
    zc = jnp.broadcast_to(z.astype(jnp.float32)[None], (c,) + z.shape)     # z.repeat(c, 1, 1)
    sum_ld = jnp.zeros((c, z.shape[0]), jnp.float32)
    for l in range(flow_length):
        z0 = z0_all[:, l, :][:, None, :]
        alpha = jnp.exp(log_alpha_all[:, l, :])[:, None, :]
        beta = beta_all[:, l, :][:, None, :]
        diff = zc - z0
        r = jnp.sqrt(jnp.sum(diff * diff, axis=-1, keepdims=True))
        h = 1.0 / (alpha + r)
        beta_h = beta * h
        z_next = zc + beta_h * diff
        log_det = ((dim - 1) * jnp.log(1.0 + beta_h)
                   + jnp.log(1.0 + beta_h - beta * (h * h) * r))
        sum_ld = sum_ld + log_det[..., 0]
        zc = z_next
    log_pz = (-0.5 * dim * jnp.log(2.0 * jnp.pi)
              - 0.5 * jnp.sum(zc * zc, axis=-1))                           # (c, batch)
    log_q = jnp.transpose(log_pz + sum_ld)                                 # (batch, c)
    return jnp.where(jnp.isnan(log_q), -jnp.inf, log_q)


if __name__ == "__main__":
    # Small shapes consistent with Density(dim_latent=8, num_mixture_elements=4, radial_layers=6).
    c, dim, flow_length, batch = 4, 8, 6, 16

    key = jax.random.PRNGKey(0)
    k_z, k_z0, k_la, k_b = jax.random.split(key, 4)

    z = jax.random.normal(k_z, (batch, dim), jnp.float32)
    z0_all = 0.5 * jax.random.normal(k_z0, (c, flow_length, dim), jnp.float32)
    log_alpha_all = 0.1 * jax.random.normal(k_la, (c, flow_length, 1), jnp.float32)
    # beta > 0 keeps the flow invertible (PostNet reparametrizes beta accordingly).
    beta_all = 0.1 + 0.2 * jax.random.uniform(k_b, (c, flow_length, 1), jnp.float32)

    log_q_c = density_forward(z, z0_all, log_alpha_all, beta_all)
    jax.block_until_ready(log_q_c)

    ref = _reference_density(z, z0_all, log_alpha_all, beta_all)
    assert log_q_c.shape == (batch, c)
    assert bool(jnp.all(jnp.isfinite(log_q_c)))
    assert jnp.allclose(log_q_c, ref, atol=1e-4, rtol=1e-4)

    print("KERNEL_OK")
</pallas_src>

<mosaic_0001>
module attributes {stable_mosaic.version = 11 : i64} {
  func.func @_density_kernel(%arg0: i32, %arg1: memref<4x12xf32, #tpu.memory_space<smem>>, %arg2: memref<8x128xf32, #tpu.memory_space<vmem>>, %arg3: memref<4x8x6xf32, #tpu.memory_space<vmem>>, %arg4: memref<4x128xf32, #tpu.memory_space<vmem>>) attributes {dimension_semantics = [#tpu.dimension_semantics<parallel>], iteration_bounds = array<i64: 1>, scalar_prefetch = 1 : i64, scratch_operands = 0 : i64, tpu.core_type = #tpu.core_type<tc>, window_params = [{transform_indices = @transform_0, window_bounds = array<i64: 8, 128>}, {pipeline_mode = #tpu.pipeline_mode<synchronous>, transform_indices = @transform_1, window_bounds = array<i64: 4, 8, 6>}, {transform_indices = @transform_2, window_bounds = array<i64: 4, 128>}]} {
    %c0 = arith.constant 0 : index
    %c0_0 = arith.constant 0 : index
    %0 = vector.load %arg2[%c0, %c0_0] : memref<8x128xf32, #tpu.memory_space<vmem>>, vector<8x128xf32>
    %c0_1 = arith.constant 0 : index
    %c0_2 = arith.constant 0 : index
    %c0_3 = arith.constant 0 : index
    %1 = vector.load %arg3[%c0_1, %c0_2, %c0_3] : memref<4x8x6xf32, #tpu.memory_space<vmem>>, vector<1x8x6xf32>
    %2 = vector.shape_cast %1 : vector<1x8x6xf32> to vector<8x6xf32>
    %cst = arith.constant 0.000000e+00 : f32
    %3 = vector.broadcast %cst : f32 to vector<1x128xf32>
    %c0_4 = arith.constant 0 : index
    %c0_5 = arith.constant 0 : index
    %4 = memref.load %arg1[%c0_4, %c0_5] : memref<4x12xf32, #tpu.memory_space<smem>>
    %c0_6 = arith.constant 0 : index
    %c6 = arith.constant 6 : index
    %5 = memref.load %arg1[%c0_6, %c6] : memref<4x12xf32, #tpu.memory_space<smem>>
    %6 = vector.extract_strided_slice %2 {offsets = [0, 0], sizes = [8, 1], strides = [1, 1]} : vector<8x6xf32> to vector<8x1xf32>
    %7 = vector.broadcast %6 : vector<8x1xf32> to vector<8x128xf32>
    %8 = arith.subf %0, %7 : vector<8x128xf32>
    %9 = arith.mulf %8, %8 : vector<8x128xf32>
    %cst_7 = arith.constant dense<0.000000e+00> : vector<128xf32>
    %10 = vector.multi_reduction <add>, %9, %cst_7 [0] : vector<8x128xf32> to vector<128xf32>
    %11 = vector.shape_cast %10 : vector<128xf32> to vector<1x128xf32>
    %12 = math.sqrt %11 : vector<1x128xf32>
    %13 = vector.broadcast %4 : f32 to vector<1x128xf32>
    %14 = arith.addf %13, %12 : vector<1x128xf32>
    %15 = tpu.reciprocal %14 {approx = true} : vector<1x128xf32> -> vector<1x128xf32>
    %16 = arith.mulf %14, %15 : vector<1x128xf32>
    %cst_8 = arith.constant 2.000000e+00 : f32
    %17 = vector.broadcast %cst_8 : f32 to vector<1x128xf32>
    %18 = arith.subf %17, %16 : vector<1x128xf32>
    %19 = arith.mulf %15, %18 : vector<1x128xf32>
    %20 = arith.mulf %14, %19 : vector<1x128xf32>
    %cst_9 = arith.constant 2.000000e+00 : f32
    %21 = vector.broadcast %cst_9 : f32 to vector<1x128xf32>
    %22 = arith.subf %21, %20 : vector<1x128xf32>
    %23 = arith.mulf %19, %22 : vector<1x128xf32>
    %24 = vector.broadcast %5 : f32 to vector<1x128xf32>
    %25 = arith.mulf %24, %23 : vector<1x128xf32>
    %26 = vector.broadcast %25 : vector<1x128xf32> to vector<8x128xf32>
    %27 = arith.mulf %26, %8 : vector<8x128xf32>
    %28 = arith.addf %0, %27 : vector<8x128xf32>
    %cst_10 = arith.constant 1.000000e+00 : f32
    %29 = vector.broadcast %cst_10 : f32 to vector<1x128xf32>
    %30 = arith.addf %29, %25 : vector<1x128xf32>
    %31 = vector.broadcast %5 : f32 to vector<1x128xf32>
    %32 = arith.mulf %31, %12 : vector<1x128xf32>
    %33 = arith.mulf %23, %23 : vector<1x128xf32>
    %34 = arith.mulf %32, %33 : vector<1x128xf32>
    %35 = arith.subf %30, %34 : vector<1x128xf32>
    %36 = arith.mulf %30, %30 : vector<1x128xf32>
    %37 = arith.mulf %30, %36 : vector<1x128xf32>
    %38 = arith.mulf %36, %36 : vector<1x128xf32>
    %39 = arith.mulf %37, %38 : vector<1x128xf32>
    %40 = arith.mulf %39, %35 : vector<1x128xf32>
    %41 = math.log %40 : vector<1x128xf32>
    %42 = arith.addf %3, %41 : vector<1x128xf32>
    %c0_11 = arith.constant 0 : index
    %c1 = arith.constant 1 : index
    %43 = memref.load %arg1[%c0_11, %c1] : memref<4x12xf32, #tpu.memory_space<smem>>
    %c0_12 = arith.constant 0 : index
    %c7 = arith.constant 7 : index
    %44 = memref.load %arg1[%c0_12, %c7] : memref<4x12xf32, #tpu.memory_space<smem>>
    %45 = vector.extract_strided_slice %2 {offsets = [0, 1], sizes = [8, 1], strides = [1, 1]} : vector<8x6xf32> to vector<8x1xf32>
    %46 = vector.broadcast %45 : vector<8x1xf32> to vector<8x128xf32>
    %47 = arith.subf %28, %46 : vector<8x128xf32>
    %48 = arith.mulf %47, %47 : vector<8x128xf32>
    %cst_13 = arith.constant dense<0.000000e+00> : vector<128xf32>
    %49 = vector.multi_reduction <add>, %48, %cst_13 [0] : vector<8x128xf32> to vector<128xf32>
    %50 = vector.shape_cast %49 : vector<128xf32> to vector<1x128xf32>
    %51 = math.sqrt %50 : vector<1x128xf32>
    %52 = vector.broadcast %43 : f32 to vector<1x128xf32>
    %53 = arith.addf %52, %51 : vector<1x128xf32>
    %54 = tpu.reciprocal %53 {approx = true} : vector<1x128xf32> -> vector<1x128xf32>
    %55 = arith.mulf %53, %54 : vector<1x128xf32>
    %cst_14 = arith.constant 2.000000e+00 : f32
    %56 = vector.broadcast %cst_14 : f32 to vector<1x128xf32>
    %57 = arith.subf %56, %55 : vector<1x128xf32>
    %58 = arith.mulf %54, %57 : vector<1x128xf32>
    %59 = arith.mulf %53, %58 : vector<1x128xf32>
    %cst_15 = arith.constant 2.000000e+00 : f32
    %60 = vector.broadcast %cst_15 : f32 to vector<1x128xf32>
    %61 = arith.subf %60, %59 : vector<1x128xf32>
    %62 = arith.mulf %58, %61 : vector<1x128xf32>
    %63 = vector.broadcast %44 : f32 to vector<1x128xf32>
    %64 = arith.mulf %63, %62 : vector<1x128xf32>
    %65 = vector.broadcast %64 : vector<1x128xf32> to vector<8x128xf32>
    %66 = arith.mulf %65, %47 : vector<8x128xf32>
    %67 = arith.addf %28, %66 : vector<8x128xf32>
    %cst_16 = arith.constant 1.000000e+00 : f32
    %68 = vector.broadcast %cst_16 : f32 to vector<1x128xf32>
    %69 = arith.addf %68, %64 : vector<1x128xf32>
    %70 = vector.broadcast %44 : f32 to vector<1x128xf32>
    %71 = arith.mulf %70, %51 : vector<1x128xf32>
    %72 = arith.mulf %62, %62 : vector<1x128xf32>
    %73 = arith.mulf %71, %72 : vector<1x128xf32>
    %74 = arith.subf %69, %73 : vector<1x128xf32>
    %75 = arith.mulf %69, %69 : vector<1x128xf32>
    %76 = arith.mulf %69, %75 : vector<1x128xf32>
    %77 = arith.mulf %75, %75 : vector<1x128xf32>
    %78 = arith.mulf %76, %77 : vector<1x128xf32>
    %79 = arith.mulf %78, %74 : vector<1x128xf32>
    %80 = math.log %79 : vector<1x128xf32>
    %81 = arith.addf %42, %80 : vector<1x128xf32>
    %c0_17 = arith.constant 0 : index
    %c2 = arith.constant 2 : index
    %82 = memref.load %arg1[%c0_17, %c2] : memref<4x12xf32, #tpu.memory_space<smem>>
    %c0_18 = arith.constant 0 : index
    %c8 = arith.constant 8 : index
    %83 = memref.load %arg1[%c0_18, %c8] : memref<4x12xf32, #tpu.memory_space<smem>>
    %84 = vector.extract_strided_slice %2 {offsets = [0, 2], sizes = [8, 1], strides = [1, 1]} : vector<8x6xf32> to vector<8x1xf32>
    %85 = vector.broadcast %84 : vector<8x1xf32> to vector<8x128xf32>
    %86 = arith.subf %67, %85 : vector<8x128xf32>
    %87 = arith.mulf %86, %86 : vector<8x128xf32>
    %cst_19 = arith.constant dense<0.000000e+00> : vector<128xf32>
    %88 = vector.multi_reduction <add>, %87, %cst_19 [0] : vector<8x128xf32> to vector<128xf32>
    %89 = vector.shape_cast %88 : vector<128xf32> to vector<1x128xf32>
    %90 = math.sqrt %89 : vector<1x128xf32>
    %91 = vector.broadcast %82 : f32 to vector<1x128xf32>
    %92 = arith.addf %91, %90 : vector<1x128xf32>
    %93 = tpu.reciprocal %92 {approx = true} : vector<1x128xf32> -> vector<1x128xf32>
    %94 = arith.mulf %92, %93 : vector<1x128xf32>
    %cst_20 = arith.constant 2.000000e+00 : f32
    %95 = vector.broadcast %cst_20 : f32 to vector<1x128xf32>
    %96 = arith.subf %95, %94 : vector<1x128xf32>
    %97 = arith.mulf %93, %96 : vector<1x128xf32>
    %98 = arith.mulf %92, %97 : vector<1x128xf32>
    %cst_21 = arith.constant 2.000000e+00 : f32
    %99 = vector.broadcast %cst_21 : f32 to vector<1x128xf32>
    %100 = arith.subf %99, %98 : vector<1x128xf32>
    %101 = arith.mulf %97, %100 : vector<1x128xf32>
    %102 = vector.broadcast %83 : f32 to vector<1x128xf32>
    %103 = arith.mulf %102, %101 : vector<1x128xf32>
    %104 = vector.broadcast %103 : vector<1x128xf32> to vector<8x128xf32>
    %105 = arith.mulf %104, %86 : vector<8x128xf32>
    %106 = arith.addf %67, %105 : vector<8x128xf32>
    %cst_22 = arith.constant 1.000000e+00 : f32
    %107 = vector.broadcast %cst_22 : f32 to vector<1x128xf32>
    %108 = arith.addf %107, %103 : vector<1x128xf32>
    %109 = vector.broadcast %83 : f32 to vector<1x128xf32>
    %110 = arith.mulf %109, %90 : vector<1x128xf32>
    %111 = arith.mulf %101, %101 : vector<1x128xf32>
    %112 = arith.mulf %110, %111 : vector<1x128xf32>
    %113 = arith.subf %108, %112 : vector<1x128xf32>
    %114 = arith.mulf %108, %108 : vector<1x128xf32>
    %115 = arith.mulf %108, %114 : vector<1x128xf32>
    %116 = arith.mulf %114, %114 : vector<1x128xf32>
    %117 = arith.mulf %115, %116 : vector<1x128xf32>
    %118 = arith.mulf %117, %113 : vector<1x128xf32>
    %119 = math.log %118 : vector<1x128xf32>
    %120 = arith.addf %81, %119 : vector<1x128xf32>
    %c0_23 = arith.constant 0 : index
    %c3 = arith.constant 3 : index
    %121 = memref.load %arg1[%c0_23, %c3] : memref<4x12xf32, #tpu.memory_space<smem>>
    %c0_24 = arith.constant 0 : index
    %c9 = arith.constant 9 : index
    %122 = memref.load %arg1[%c0_24, %c9] : memref<4x12xf32, #tpu.memory_space<smem>>
    %123 = vector.extract_strided_slice %2 {offsets = [0, 3], sizes = [8, 1], strides = [1, 1]} : vector<8x6xf32> to vector<8x1xf32>
    %124 = vector.broadcast %123 : vector<8x1xf32> to vector<8x128xf32>
    %125 = arith.subf %106, %124 : vector<8x128xf32>
    %126 = arith.mulf %125, %125 : vector<8x128xf32>
    %cst_25 = arith.constant dense<0.000000e+00> : vector<128xf32>
    %127 = vector.multi_reduction <add>, %126, %cst_25 [0] : vector<8x128xf32> to vector<128xf32>
    %128 = vector.shape_cast %127 : vector<128xf32> to vector<1x128xf32>
    %129 = math.sqrt %128 : vector<1x128xf32>
    %130 = vector.broadcast %121 : f32 to vector<1x128xf32>
    %131 = arith.addf %130, %129 : vector<1x128xf32>
    %132 = tpu.reciprocal %131 {approx = true} : vector<1x128xf32> -> vector<1x128xf32>
    %133 = arith.mulf %131, %132 : vector<1x128xf32>
    %cst_26 = arith.constant 2.000000e+00 : f32
    %134 = vector.broadcast %cst_26 : f32 to vector<1x128xf32>
    %135 = arith.subf %134, %133 : vector<1x128xf32>
    %136 = arith.mulf %132, %135 : vector<1x128xf32>
    %137 = arith.mulf %131, %136 : vector<1x128xf32>
    %cst_27 = arith.constant 2.000000e+00 : f32
    %138 = vector.broadcast %cst_27 : f32 to vector<1x128xf32>
    %139 = arith.subf %138, %137 : vector<1x128xf32>
    %140 = arith.mulf %136, %139 : vector<1x128xf32>
    %141 = vector.broadcast %122 : f32 to vector<1x128xf32>
    %142 = arith.mulf %141, %140 : vector<1x128xf32>
    %143 = vector.broadcast %142 : vector<1x128xf32> to vector<8x128xf32>
    %144 = arith.mulf %143, %125 : vector<8x128xf32>
    %145 = arith.addf %106, %144 : vector<8x128xf32>
    %cst_28 = arith.constant 1.000000e+00 : f32
    %146 = vector.broadcast %cst_28 : f32 to vector<1x128xf32>
    %147 = arith.addf %146, %142 : vector<1x128xf32>
    %148 = vector.broadcast %122 : f32 to vector<1x128xf32>
    %149 = arith.mulf %148, %129 : vector<1x128xf32>
    %150 = arith.mulf %140, %140 : vector<1x128xf32>
    %151 = arith.mulf %149, %150 : vector<1x128xf32>
    %152 = arith.subf %147, %151 : vector<1x128xf32>
    %153 = arith.mulf %147, %147 : vector<1x128xf32>
    %154 = arith.mulf %147, %153 : vector<1x128xf32>
    %155 = arith.mulf %153, %153 : vector<1x128xf32>
    %156 = arith.mulf %154, %155 : vector<1x128xf32>
    %157 = arith.mulf %156, %152 : vector<1x128xf32>
    %158 = math.log %157 : vector<1x128xf32>
    %159 = arith.addf %120, %158 : vector<1x128xf32>
    %c0_29 = arith.constant 0 : index
    %c4 = arith.constant 4 : index
    %160 = memref.load %arg1[%c0_29, %c4] : memref<4x12xf32, #tpu.memory_space<smem>>
    %c0_30 = arith.constant 0 : index
    %c10 = arith.constant 10 : index
    %161 = memref.load %arg1[%c0_30, %c10] : memref<4x12xf32, #tpu.memory_space<smem>>
    %162 = vector.extract_strided_slice %2 {offsets = [0, 4], sizes = [8, 1], strides = [1, 1]} : vector<8x6xf32> to vector<8x1xf32>
    %163 = vector.broadcast %162 : vector<8x1xf32> to vector<8x128xf32>
    %164 = arith.subf %145, %163 : vector<8x128xf32>
    %165 = arith.mulf %164, %164 : vector<8x128xf32>
    %cst_31 = arith.constant dense<0.000000e+00> : vector<128xf32>
    %166 = vector.multi_reduction <add>, %165, %cst_31 [0] : vector<8x128xf32> to vector<128xf32>
    %167 = vector.shape_cast %166 : vector<128xf32> to vector<1x128xf32>
    %168 = math.sqrt %167 : vector<1x128xf32>
    %169 = vector.broadcast %160 : f32 to vector<1x128xf32>
    %170 = arith.addf %169, %168 : vector<1x128xf32>
    %171 = tpu.reciprocal %170 {approx = true} : vector<1x128xf32> -> vector<1x128xf32>
    %172 = arith.mulf %170, %171 : vector<1x128xf32>
    %cst_32 = arith.constant 2.000000e+00 : f32
    %173 = vector.broadcast %cst_32 : f32 to vector<1x128xf32>
    %174 = arith.subf %173, %172 : vector<1x128xf32>
    %175 = arith.mulf %171, %174 : vector<1x128xf32>
    %176 = arith.mulf %170, %175 : vector<1x128xf32>
    %cst_33 = arith.constant 2.000000e+00 : f32
    %177 = vector.broadcast %cst_33 : f32 to vector<1x128xf32>
    %178 = arith.subf %177, %176 : vector<1x128xf32>
    %179 = arith.mulf %175, %178 : vector<1x128xf32>
    %180 = vector.broadcast %161 : f32 to vector<1x128xf32>
    %181 = arith.mulf %180, %179 : vector<1x128xf32>
    %182 = vector.broadcast %181 : vector<1x128xf32> to vector<8x128xf32>
    %183 = arith.mulf %182, %164 : vector<8x128xf32>
    %184 = arith.addf %145, %183 : vector<8x128xf32>
    %cst_34 = arith.constant 1.000000e+00 : f32
    %185 = vector.broadcast %cst_34 : f32 to vector<1x128xf32>
    %186 = arith.addf %185, %181 : vector<1x128xf32>
    %187 = vector.broadcast %161 : f32 to vector<1x128xf32>
    %188 = arith.mulf %187, %168 : vector<1x128xf32>
    %189 = arith.mulf %179, %179 : vector<1x128xf32>
    %190 = arith.mulf %188, %189 : vector<1x128xf32>
    %191 = arith.subf %186, %190 : vector<1x128xf32>
    %192 = arith.mulf %186, %186 : vector<1x128xf32>
    %193 = arith.mulf %186, %192 : vector<1x128xf32>
    %194 = arith.mulf %192, %192 : vector<1x128xf32>
    %195 = arith.mulf %193, %194 : vector<1x128xf32>
    %196 = arith.mulf %195, %191 : vector<1x128xf32>
    %197 = math.log %196 : vector<1x128xf32>
    %198 = arith.addf %159, %197 : vector<1x128xf32>
    %c0_35 = arith.constant 0 : index
    %c5 = arith.constant 5 : index
    %199 = memref.load %arg1[%c0_35, %c5] : memref<4x12xf32, #tpu.memory_space<smem>>
    %c0_36 = arith.constant 0 : index
    %c11 = arith.constant 11 : index
    %200 = memref.load %arg1[%c0_36, %c11] : memref<4x12xf32, #tpu.memory_space<smem>>
    %201 = vector.extract_strided_slice %2 {offsets = [0, 5], sizes = [8, 1], strides = [1, 1]} : vector<8x6xf32> to vector<8x1xf32>
    %202 = vector.broadcast %201 : vector<8x1xf32> to vector<8x128xf32>
    %203 = arith.subf %184, %202 : vector<8x128xf32>
    %204 = arith.mulf %203, %203 : vector<8x128xf32>
    %cst_37 = arith.constant dense<0.000000e+00> : vector<128xf32>
    %205 = vector.multi_reduction <add>, %204, %cst_37 [0] : vector<8x128xf32> to vector<128xf32>
    %206 = vector.shape_cast %205 : vector<128xf32> to vector<1x128xf32>
    %207 = math.sqrt %206 : vector<1x128xf32>
    %208 = vector.broadcast %199 : f32 to vector<1x128xf32>
    %209 = arith.addf %208, %207 : vector<1x128xf32>
    %210 = tpu.reciprocal %209 {approx = true} : vector<1x128xf32> -> vector<1x128xf32>
    %211 = arith.mulf %209, %210 : vector<1x128xf32>
    %cst_38 = arith.constant 2.000000e+00 : f32
    %212 = vector.broadcast %cst_38 : f32 to vector<1x128xf32>
    %213 = arith.subf %212, %211 : vector<1x128xf32>
    %214 = arith.mulf %210, %213 : vector<1x128xf32>
    %215 = arith.mulf %209, %214 : vector<1x128xf32>
    %cst_39 = arith.constant 2.000000e+00 : f32
    %216 = vector.broadcast %cst_39 : f32 to vector<1x128xf32>
    %217 = arith.subf %216, %215 : vector<1x128xf32>
    %218 = arith.mulf %214, %217 : vector<1x128xf32>
    %219 = vector.broadcast %200 : f32 to vector<1x128xf32>
    %220 = arith.mulf %219, %218 : vector<1x128xf32>
    %221 = vector.broadcast %220 : vector<1x128xf32> to vector<8x128xf32>
    %222 = arith.mulf %221, %203 : vector<8x128xf32>
    %223 = arith.addf %184, %222 : vector<8x128xf32>
    %cst_40 = arith.constant 1.000000e+00 : f32
    %224 = vector.broadcast %cst_40 : f32 to vector<1x128xf32>
    %225 = arith.addf %224, %220 : vector<1x128xf32>
    %226 = vector.broadcast %200 : f32 to vector<1x128xf32>
    %227 = arith.mulf %226, %207 : vector<1x128xf32>
    %228 = arith.mulf %218, %218 : vector<1x128xf32>
    %229 = arith.mulf %227, %228 : vector<1x128xf32>
    %230 = arith.subf %225, %229 : vector<1x128xf32>
    %231 = arith.mulf %225, %225 : vector<1x128xf32>
    %232 = arith.mulf %225, %231 : vector<1x128xf32>
    %233 = arith.mulf %231, %231 : vector<1x128xf32>
    %234 = arith.mulf %232, %233 : vector<1x128xf32>
    %235 = arith.mulf %234, %230 : vector<1x128xf32>
    %236 = math.log %235 : vector<1x128xf32>
    %237 = arith.addf %198, %236 : vector<1x128xf32>
    %238 = arith.mulf %223, %223 : vector<8x128xf32>
    %cst_41 = arith.constant dense<0.000000e+00> : vector<128xf32>
    %239 = vector.multi_reduction <add>, %238, %cst_41 [0] : vector<8x128xf32> to vector<128xf32>
    %240 = vector.shape_cast %239 : vector<128xf32> to vector<1x128xf32>
    %cst_42 = arith.constant 5.000000e-01 : f32
    %241 = vector.broadcast %cst_42 : f32 to vector<1x128xf32>
    %242 = arith.mulf %241, %240 : vector<1x128xf32>
    %cst_43 = arith.constant -7.35150814 : f32
    %243 = vector.broadcast %cst_43 : f32 to vector<1x128xf32>
    %244 = arith.subf %243, %242 : vector<1x128xf32>
    %245 = arith.addf %244, %237 : vector<1x128xf32>
    %c0_44 = arith.constant 0 : index
    %c0_45 = arith.constant 0 : index
    %246 = vector.load %arg4[%c0_44, %c0_45] : memref<4x128xf32, #tpu.memory_space<vmem>>, vector<1x128xf32>
    tpu.vector_store %arg4[%c0_44, %c0_45], %245 {strides = array<i32>} : memref<4x128xf32, #tpu.memory_space<vmem>>, vector<1x128xf32>,
    %c1_46 = arith.constant 1 : index
    %c0_47 = arith.constant 0 : index
    %c0_48 = arith.constant 0 : index
    %247 = vector.load %arg3[%c1_46, %c0_47, %c0_48] : memref<4x8x6xf32, #tpu.memory_space<vmem>>, vector<1x8x6xf32>
    %248 = vector.shape_cast %247 : vector<1x8x6xf32> to vector<8x6xf32>
    %cst_49 = arith.constant 0.000000e+00 : f32
    %249 = vector.broadcast %cst_49 : f32 to vector<1x128xf32>
    %c1_50 = arith.constant 1 : index
    %c0_51 = arith.constant 0 : index
    %250 = memref.load %arg1[%c1_50, %c0_51] : memref<4x12xf32, #tpu.memory_space<smem>>
    %c1_52 = arith.constant 1 : index
    %c6_53 = arith.constant 6 : index
    %251 = memref.load %arg1[%c1_52, %c6_53] : memref<4x12xf32, #tpu.memory_space<smem>>
    %252 = vector.extract_strided_slice %248 {offsets = [0, 0], sizes = [8, 1], strides = [1, 1]} : vector<8x6xf32> to vector<8x1xf32>
    %253 = vector.broadcast %252 : vector<8x1xf32> to vector<8x128xf32>
    %254 = arith.subf %0, %253 : vector<8x128xf32>
    %255 = arith.mulf %254, %254 : vector<8x128xf32>
    %cst_54 = arith.constant dense<0.000000e+00> : vector<128xf32>
    %256 = vector.multi_reduction <add>, %255, %cst_54 [0] : vector<8x128xf32> to vector<128xf32>
    %257 = vector.shape_cast %256 : vector<128xf32> to vector<1x128xf32>
    %258 = math.sqrt %257 : vector<1x128xf32>
    %259 = vector.broadcast %250 : f32 to vector<1x128xf32>
    %260 = arith.addf %259, %258 : vector<1x128xf32>
    %261 = tpu.reciprocal %260 {approx = true} : vector<1x128xf32> -> vector<1x128xf32>
    %262 = arith.mulf %260, %261 : vector<1x128xf32>
    %cst_55 = arith.constant 2.000000e+00 : f32
    %263 = vector.broadcast %cst_55 : f32 to vector<1x128xf32>
    %264 = arith.subf %263, %262 : vector<1x128xf32>
    %265 = arith.mulf %261, %264 : vector<1x128xf32>
    %266 = arith.mulf %260, %265 : vector<1x128xf32>
    %cst_56 = arith.constant 2.000000e+00 : f32
    %267 = vector.broadcast %cst_56 : f32 to vector<1x128xf32>
    %268 = arith.subf %267, %266 : vector<1x128xf32>
    %269 = arith.mulf %265, %268 : vector<1x128xf32>
    %270 = vector.broadcast %251 : f32 to vector<1x128xf32>
    %271 = arith.mulf %270, %269 : vector<1x128xf32>
    %272 = vector.broadcast %271 : vector<1x128xf32> to vector<8x128xf32>
    %273 = arith.mulf %272, %254 : vector<8x128xf32>
    %274 = arith.addf %0, %273 : vector<8x128xf32>
    %cst_57 = arith.constant 1.000000e+00 : f32
    %275 = vector.broadcast %cst_57 : f32 to vector<1x128xf32>
    %276 = arith.addf %275, %271 : vector<1x128xf32>
    %277 = vector.broadcast %251 : f32 to vector<1x128xf32>
    %278 = arith.mulf %277, %258 : vector<1x128xf32>
    %279 = arith.mulf %269, %269 : vector<1x128xf32>
    %280 = arith.mulf %278, %279 : vector<1x128xf32>
    %281 = arith.subf %276, %280 : vector<1x128xf32>
    %282 = arith.mulf %276, %276 : vector<1x128xf32>
    %283 = arith.mulf %276, %282 : vector<1x128xf32>
    %284 = arith.mulf %282, %282 : vector<1x128xf32>
    %285 = arith.mulf %283, %284 : vector<1x128xf32>
    %286 = arith.mulf %285, %281 : vector<1x128xf32>
    %287 = math.log %286 : vector<1x128xf32>
    %288 = arith.addf %249, %287 : vector<1x128xf32>
    %c1_58 = arith.constant 1 : index
    %c1_59 = arith.constant 1 : index
    %289 = memref.load %arg1[%c1_58, %c1_59] : memref<4x12xf32, #tpu.memory_space<smem>>
    %c1_60 = arith.constant 1 : index
    %c7_61 = arith.constant 7 : index
    %290 = memref.load %arg1[%c1_60, %c7_61] : memref<4x12xf32, #tpu.memory_space<smem>>
    %291 = vector.extract_strided_slice %248 {offsets = [0, 1], sizes = [8, 1], strides = [1, 1]} : vector<8x6xf32> to vector<8x1xf32>
    %292 = vector.broadcast %291 : vector<8x1xf32> to vector<8x128xf32>
    %293 = arith.subf %274, %292 : vector<8x128xf32>
    %294 = arith.mulf %293, %293 : vector<8x128xf32>
    %cst_62 = arith.constant dense<0.000000e+00> : vector<128xf32>
    %295 = vector.multi_reduction <add>, %294, %cst_62 [0] : vector<8x128xf32> to vector<128xf32>
    %296 = vector.shape_cast %295 : vector<128xf32> to vector<1x128xf32>
    %297 = math.sqrt %296 : vector<1x128xf32>
    %298 = vector.broadcast %289 : f32 to vector<1x128xf32>
    %299 = arith.addf %298, %297 : vector<1x128xf32>
    %300 = tpu.reciprocal %299 {approx = true} : vector<1x128xf32> -> vector<1x128xf32>
    %301 = arith.mulf %299, %300 : vector<1x128xf32>
    %cst_63 = arith.constant 2.000000e+00 : f32
    %302 = vector.broadcast %cst_63 : f32 to vector<1x128xf32>
    %303 = arith.subf %302, %301 : vector<1x128xf32>
    %304 = arith.mulf %300, %303 : vector<1x128xf32>
    %305 = arith.mulf %299, %304 : vector<1x128xf32>
    %cst_64 = arith.constant 2.000000e+00 : f32
    %306 = vector.broadcast %cst_64 : f32 to vector<1x128xf32>
    %307 = arith.subf %306, %305 : vector<1x128xf32>
    %308 = arith.mulf %304, %307 : vector<1x128xf32>
    %309 = vector.broadcast %290 : f32 to vector<1x128xf32>
    %310 = arith.mulf %309, %308 : vector<1x128xf32>
    %311 = vector.broadcast %310 : vector<1x128xf32> to vector<8x128xf32>
    %312 = arith.mulf %311, %293 : vector<8x128xf32>
    %313 = arith.addf %274, %312 : vector<8x128xf32>
    %cst_65 = arith.constant 1.000000e+00 : f32
    %314 = vector.broadcast %cst_65 : f32 to vector<1x128xf32>
    %315 = arith.addf %314, %310 : vector<1x128xf32>
    %316 = vector.broadcast %290 : f32 to vector<1x128xf32>
    %317 = arith.mulf %316, %297 : vector<1x128xf32>
    %318 = arith.mulf %308, %308 : vector<1x128xf32>
    %319 = arith.mulf %317, %318 : vector<1x128xf32>
    %320 = arith.subf %315, %319 : vector<1x128xf32>
    %321 = arith.mulf %315, %315 : vector<1x128xf32>
    %322 = arith.mulf %315, %321 : vector<1x128xf32>
    %323 = arith.mulf %321, %321 : vector<1x128xf32>
    %324 = arith.mulf %322, %323 : vector<1x128xf32>
    %325 = arith.mulf %324, %320 : vector<1x128xf32>
    %326 = math.log %325 : vector<1x128xf32>
    %327 = arith.addf %288, %326 : vector<1x128xf32>
    %c1_66 = arith.constant 1 : index
    %c2_67 = arith.constant 2 : index
    %328 = memref.load %arg1[%c1_66, %c2_67] : memref<4x12xf32, #tpu.memory_space<smem>>
    %c1_68 = arith.constant 1 : index
    %c8_69 = arith.constant 8 : index
    %329 = memref.load %arg1[%c1_68, %c8_69] : memref<4x12xf32, #tpu.memory_space<smem>>
    %330 = vector.extract_strided_slice %248 {offsets = [0, 2], sizes = [8, 1], strides = [1, 1]} : vector<8x6xf32> to vector<8x1xf32>
    %331 = vector.broadcast %330 : vector<8x1xf32> to vector<8x128xf32>
    %332 = arith.subf %313, %331 : vector<8x128xf32>
    %333 = arith.mulf %332, %332 : vector<8x128xf32>
    %cst_70 = arith.constant dense<0.000000e+00> : vector<128xf32>
    %334 = vector.multi_reduction <add>, %333, %cst_70 [0] : vector<8x128xf32> to vector<128xf32>
    %335 = vector.shape_cast %334 : vector<128xf32> to vector<1x128xf32>
    %336 = math.sqrt %335 : vector<1x128xf32>
    %337 = vector.broadcast %328 : f32 to vector<1x128xf32>
    %338 = arith.addf %337, %336 : vector<1x128xf32>
    %339 = tpu.reciprocal %338 {approx = true} : vector<1x128xf32> -> vector<1x128xf32>
    %340 = arith.mulf %338, %339 : vector<1x128xf32>
    %cst_71 = arith.constant 2.000000e+00 : f32
    %341 = vector.broadcast %cst_71 : f32 to vector<1x128xf32>
    %342 = arith.subf %341, %340 : vector<1x128xf32>
    %343 = arith.mulf %339, %342 : vector<1x128xf32>
    %344 = arith.mulf %338, %343 : vector<1x128xf32>
    %cst_72 = arith.constant 2.000000e+00 : f32
    %345 = vector.broadcast %cst_72 : f32 to vector<1x128xf32>
    %346 = arith.subf %345, %344 : vector<1x128xf32>
    %347 = arith.mulf %343, %346 : vector<1x128xf32>
    %348 = vector.broadcast %329 : f32 to vector<1x128xf32>
    %349 = arith.mulf %348, %347 : vector<1x128xf32>
    %350 = vector.broadcast %349 : vector<1x128xf32> to vector<8x128xf32>
    %351 = arith.mulf %350, %332 : vector<8x128xf32>
    %352 = arith.addf %313, %351 : vector<8x128xf32>
    %cst_73 = arith.constant 1.000000e+00 : f32
    %353 = vector.broadcast %cst_73 : f32 to vector<1x128xf32>
    %354 = arith.addf %353, %349 : vector<1x128xf32>
    %355 = vector.broadcast %329 : f32 to vector<1x128xf32>
    %356 = arith.mulf %355, %336 : vector<1x128xf32>
    %357 = arith.mulf %347, %347 : vector<1x128xf32>
    %358 = arith.mulf %356, %357 : vector<1x128xf32>
    %359 = arith.subf %354, %358 : vector<1x128xf32>
    %360 = arith.mulf %354, %354 : vector<1x128xf32>
    %361 = arith.mulf %354, %360 : vector<1x128xf32>
    %362 = arith.mulf %360, %360 : vector<1x128xf32>
    %363 = arith.mulf %361, %362 : vector<1x128xf32>
    %364 = arith.mulf %363, %359 : vector<1x128xf32>
    %365 = math.log %364 : vector<1x128xf32>
    %366 = arith.addf %327, %365 : vector<1x128xf32>
    %c1_74 = arith.constant 1 : index
    %c3_75 = arith.constant 3 : index
    %367 = memref.load %arg1[%c1_74, %c3_75] : memref<4x12xf32, #tpu.memory_space<smem>>
    %c1_76 = arith.constant 1 : index
    %c9_77 = arith.constant 9 : index
    %368 = memref.load %arg1[%c1_76, %c9_77] : memref<4x12xf32, #tpu.memory_space<smem>>
    %369 = vector.extract_strided_slice %248 {offsets = [0, 3], sizes = [8, 1], strides = [1, 1]} : vector<8x6xf32> to vector<8x1xf32>
    %370 = vector.broadcast %369 : vector<8x1xf32> to vector<8x128xf32>
    %371 = arith.subf %352, %370 : vector<8x128xf32>
    %372 = arith.mulf %371, %371 : vector<8x128xf32>
    %cst_78 = arith.constant dense<0.000000e+00> : vector<128xf32>
    %373 = vector.multi_reduction <add>, %372, %cst_78 [0] : vector<8x128xf32> to vector<128xf32>
    %374 = vector.shape_cast %373 : vector<128xf32> to vector<1x128xf32>
    %375 = math.sqrt %374 : vector<1x128xf32>
    %376 = vector.broadcast %367 : f32 to vector<1x128xf32>
    %377 = arith.addf %376, %375 : vector<1x128xf32>
    %378 = tpu.reciprocal %377 {approx = true} : vector<1x128xf32> -> vector<1x128xf32>
    %379 = arith.mulf %377, %378 : vector<1x128xf32>
    %cst_79 = arith.constant 2.000000e+00 : f32
    %380 = vector.broadcast %cst_79 : f32 to vector<1x128xf32>
    %381 = arith.subf %380, %379 : vector<1x128xf32>
    %382 = arith.mulf %378, %381 : vector<1x128xf32>
    %383 = arith.mulf %377, %382 : vector<1x128xf32>
    %cst_80 = arith.constant 2.000000e+00 : f32
    %384 = vector.broadcast %cst_80 : f32 to vector<1x128xf32>
    %385 = arith.subf %384, %383 : vector<1x128xf32>
    %386 = arith.mulf %382, %385 : vector<1x128xf32>
    %387 = vector.broadcast %368 : f32 to vector<1x128xf32>
    %388 = arith.mulf %387, %386 : vector<1x128xf32>
    %389 = vector.broadcast %388 : vector<1x128xf32> to vector<8x128xf32>
    %390 = arith.mulf %389, %371 : vector<8x128xf32>
    %391 = arith.addf %352, %390 : vector<8x128xf32>
    %cst_81 = arith.constant 1.000000e+00 : f32
    %392 = vector.broadcast %cst_81 : f32 to vector<1x128xf32>
    %393 = arith.addf %392, %388 : vector<1x128xf32>
    %394 = vector.broadcast %368 : f32 to vector<1x128xf32>
    %395 = arith.mulf %394, %375 : vector<1x128xf32>
    %396 = arith.mulf %386, %386 : vector<1x128xf32>
    %397 = arith.mulf %395, %396 : vector<1x128xf32>
    %398 = arith.subf %393, %397 : vector<1x128xf32>
    %399 = arith.mulf %393, %393 : vector<1x128xf32>
    %400 = arith.mulf %393, %399 : vector<1x128xf32>
    %401 = arith.mulf %399, %399 : vector<1x128xf32>
    %402 = arith.mulf %400, %401 : vector<1x128xf32>
    %403 = arith.mulf %402, %398 : vector<1x128xf32>
    %404 = math.log %403 : vector<1x128xf32>
    %405 = arith.addf %366, %404 : vector<1x128xf32>
    %c1_82 = arith.constant 1 : index
    %c4_83 = arith.constant 4 : index
    %406 = memref.load %arg1[%c1_82, %c4_83] : memref<4x12xf32, #tpu.memory_space<smem>>
    %c1_84 = arith.constant 1 : index
    %c10_85 = arith.constant 10 : index
    %407 = memref.load %arg1[%c1_84, %c10_85] : memref<4x12xf32, #tpu.memory_space<smem>>
    %408 = vector.extract_strided_slice %248 {offsets = [0, 4], sizes = [8, 1], strides = [1, 1]} : vector<8x6xf32> to vector<8x1xf32>
    %409 = vector.broadcast %408 : vector<8x1xf32> to vector<8x128xf32>
    %410 = arith.subf %391, %409 : vector<8x128xf32>
    %411 = arith.mulf %410, %410 : vector<8x128xf32>
    %cst_86 = arith.constant dense<0.000000e+00> : vector<128xf32>
    %412 = vector.multi_reduction <add>, %411, %cst_86 [0] : vector<8x128xf32> to vector<128xf32>
    %413 = vector.shape_cast %412 : vector<128xf32> to vector<1x128xf32>
    %414 = math.sqrt %413 : vector<1x128xf32>
    %415 = vector.broadcast %406 : f32 to vector<1x128xf32>
    %416 = arith.addf %415, %414 : vector<1x128xf32>
    %417 = tpu.reciprocal %416 {approx = true} : vector<1x128xf32> -> vector<1x128xf32>
    %418 = arith.mulf %416, %417 : vector<1x128xf32>
    %cst_87 = arith.constant 2.000000e+00 : f32
    %419 = vector.broadcast %cst_87 : f32 to vector<1x128xf32>
    %420 = arith.subf %419, %418 : vector<1x128xf32>
    %421 = arith.mulf %417, %420 : vector<1x128xf32>
    %422 = arith.mulf %416, %421 : vector<1x128xf32>
    %cst_88 = arith.constant 2.000000e+00 : f32
    %423 = vector.broadcast %cst_88 : f32 to vector<1x128xf32>
    %424 = arith.subf %423, %422 : vector<1x128xf32>
    %425 = arith.mulf %421, %424 : vector<1x128xf32>
    %426 = vector.broadcast %407 : f32 to vector<1x128xf32>
    %427 = arith.mulf %426, %425 : vector<1x128xf32>
    %428 = vector.broadcast %427 : vector<1x128xf32> to vector<8x128xf32>
    %429 = arith.mulf %428, %410 : vector<8x128xf32>
    %430 = arith.addf %391, %429 : vector<8x128xf32>
    %cst_89 = arith.constant 1.000000e+00 : f32
    %431 = vector.broadcast %cst_89 : f32 to vector<1x128xf32>
    %432 = arith.addf %431, %427 : vector<1x128xf32>
    %433 = vector.broadcast %407 : f32 to vector<1x128xf32>
    %434 = arith.mulf %433, %414 : vector<1x128xf32>
    %435 = arith.mulf %425, %425 : vector<1x128xf32>
    %436 = arith.mulf %434, %435 : vector<1x128xf32>
    %437 = arith.subf %432, %436 : vector<1x128xf32>
    %438 = arith.mulf %432, %432 : vector<1x128xf32>
    %439 = arith.mulf %432, %438 : vector<1x128xf32>
    %440 = arith.mulf %438, %438 : vector<1x128xf32>
    %441 = arith.mulf %439, %440 : vector<1x128xf32>
    %442 = arith.mulf %441, %437 : vector<1x128xf32>
    %443 = math.log %442 : vector<1x128xf32>
    %444 = arith.addf %405, %443 : vector<1x128xf32>
    %c1_90 = arith.constant 1 : index
    %c5_91 = arith.constant 5 : index
    %445 = memref.load %arg1[%c1_90, %c5_91] : memref<4x12xf32, #tpu.memory_space<smem>>
    %c1_92 = arith.constant 1 : index
    %c11_93 = arith.constant 11 : index
    %446 = memref.load %arg1[%c1_92, %c11_93] : memref<4x12xf32, #tpu.memory_space<smem>>
    %447 = vector.extract_strided_slice %248 {offsets = [0, 5], sizes = [8, 1], strides = [1, 1]} : vector<8x6xf32> to vector<8x1xf32>
    %448 = vector.broadcast %447 : vector<8x1xf32> to vector<8x128xf32>
    %449 = arith.subf %430, %448 : vector<8x128xf32>
    %450 = arith.mulf %449, %449 : vector<8x128xf32>
    %cst_94 = arith.constant dense<0.000000e+00> : vector<128xf32>
    %451 = vector.multi_reduction <add>, %450, %cst_94 [0] : vector<8x128xf32> to vector<128xf32>
    %452 = vector.shape_cast %451 : vector<128xf32> to vector<1x128xf32>
    %453 = math.sqrt %452 : vector<1x128xf32>
    %454 = vector.broadcast %445 : f32 to vector<1x128xf32>
    %455 = arith.addf %454, %453 : vector<1x128xf32>
    %456 = tpu.reciprocal %455 {approx = true} : vector<1x128xf32> -> vector<1x128xf32>
    %457 = arith.mulf %455, %456 : vector<1x128xf32>
    %cst_95 = arith.constant 2.000000e+00 : f32
    %458 = vector.broadcast %cst_95 : f32 to vector<1x128xf32>
    %459 = arith.subf %458, %457 : vector<1x128xf32>
    %460 = arith.mulf %456, %459 : vector<1x128xf32>
    %461 = arith.mulf %455, %460 : vector<1x128xf32>
    %cst_96 = arith.constant 2.000000e+00 : f32
    %462 = vector.broadcast %cst_96 : f32 to vector<1x128xf32>
    %463 = arith.subf %462, %461 : vector<1x128xf32>
    %464 = arith.mulf %460, %463 : vector<1x128xf32>
    %465 = vector.broadcast %446 : f32 to vector<1x128xf32>
    %466 = arith.mulf %465, %464 : vector<1x128xf32>
    %467 = vector.broadcast %466 : vector<1x128xf32> to vector<8x128xf32>
    %468 = arith.mulf %467, %449 : vector<8x128xf32>
    %469 = arith.addf %430, %468 : vector<8x128xf32>
    %cst_97 = arith.constant 1.000000e+00 : f32
    %470 = vector.broadcast %cst_97 : f32 to vector<1x128xf32>
    %471 = arith.addf %470, %466 : vector<1x128xf32>
    %472 = vector.broadcast %446 : f32 to vector<1x128xf32>
    %473 = arith.mulf %472, %453 : vector<1x128xf32>
    %474 = arith.mulf %464, %464 : vector<1x128xf32>
    %475 = arith.mulf %473, %474 : vector<1x128xf32>
    %476 = arith.subf %471, %475 : vector<1x128xf32>
    %477 = arith.mulf %471, %471 : vector<1x128xf32>
    %478 = arith.mulf %471, %477 : vector<1x128xf32>
    %479 = arith.mulf %477, %477 : vector<1x128xf32>
    %480 = arith.mulf %478, %479 : vector<1x128xf32>
    %481 = arith.mulf %480, %476 : vector<1x128xf32>
    %482 = math.log %481 : vector<1x128xf32>
    %483 = arith.addf %444, %482 : vector<1x128xf32>
    %484 = arith.mulf %469, %469 : vector<8x128xf32>
    %cst_98 = arith.constant dense<0.000000e+00> : vector<128xf32>
    %485 = vector.multi_reduction <add>, %484, %cst_98 [0] : vector<8x128xf32> to vector<128xf32>
    %486 = vector.shape_cast %485 : vector<128xf32> to vector<1x128xf32>
    %cst_99 = arith.constant 5.000000e-01 : f32
    %487 = vector.broadcast %cst_99 : f32 to vector<1x128xf32>
    %488 = arith.mulf %487, %486 : vector<1x128xf32>
    %cst_100 = arith.constant -7.35150814 : f32
    %489 = vector.broadcast %cst_100 : f32 to vector<1x128xf32>
    %490 = arith.subf %489, %488 : vector<1x128xf32>
    %491 = arith.addf %490, %483 : vector<1x128xf32>
    %c1_101 = arith.constant 1 : index
    %c0_102 = arith.constant 0 : index
    %492 = vector.load %arg4[%c1_101, %c0_102] : memref<4x128xf32, #tpu.memory_space<vmem>>, vector<1x128xf32>
    tpu.vector_store %arg4[%c1_101, %c0_102], %491 {strides = array<i32>} : memref<4x128xf32, #tpu.memory_space<vmem>>, vector<1x128xf32>,
    %c2_103 = arith.constant 2 : index
    %c0_104 = arith.constant 0 : index
    %c0_105 = arith.constant 0 : index
    %493 = vector.load %arg3[%c2_103, %c0_104, %c0_105] : memref<4x8x6xf32, #tpu.memory_space<vmem>>, vector<1x8x6xf32>
    %494 = vector.shape_cast %493 : vector<1x8x6xf32> to vector<8x6xf32>
    %cst_106 = arith.constant 0.000000e+00 : f32
    %495 = vector.broadcast %cst_106 : f32 to vector<1x128xf32>
    %c2_107 = arith.constant 2 : index
    %c0_108 = arith.constant 0 : index
    %496 = memref.load %arg1[%c2_107, %c0_108] : memref<4x12xf32, #tpu.memory_space<smem>>
    %c2_109 = arith.constant 2 : index
    %c6_110 = arith.constant 6 : index
    %497 = memref.load %arg1[%c2_109, %c6_110] : memref<4x12xf32, #tpu.memory_space<smem>>
    %498 = vector.extract_strided_slice %494 {offsets = [0, 0], sizes = [8, 1], strides = [1, 1]} : vector<8x6xf32> to vector<8x1xf32>
    %499 = vector.broadcast %498 : vector<8x1xf32> to vector<8x128xf32>
    %500 = arith.subf %0, %499 : vector<8x128xf32>
    %501 = arith.mulf %500, %500 : vector<8x128xf32>
    %cst_111 = arith.constant dense<0.000000e+00> : vector<128xf32>
    %502 = vector.multi_reduction <add>, %501, %cst_111 [0] : vector<8x128xf32> to vector<128xf32>
    %503 = vector.shape_cast %502 : vector<128xf32> to vector<1x128xf32>
    %504 = math.sqrt %503 : vector<1x128xf32>
    %505 = vector.broadcast %496 : f32 to vector<1x128xf32>
    %506 = arith.addf %505, %504 : vector<1x128xf32>
    %507 = tpu.reciprocal %506 {approx = true} : vector<1x128xf32> -> vector<1x128xf32>
    %508 = arith.mulf %506, %507 : vector<1x128xf32>
    %cst_112 = arith.constant 2.000000e+00 : f32
    %509 = vector.broadcast %cst_112 : f32 to vector<1x128xf32>
    %510 = arith.subf %509, %508 : vector<1x128xf32>
    %511 = arith.mulf %507, %510 : vector<1x128xf32>
    %512 = arith.mulf %506, %511 : vector<1x128xf32>
    %cst_113 = arith.constant 2.000000e+00 : f32
    %513 = vector.broadcast %cst_113 : f32 to vector<1x128xf32>
    %514 = arith.subf %513, %512 : vector<1x128xf32>
    %515 = arith.mulf %511, %514 : vector<1x128xf32>
    %516 = vector.broadcast %497 : f32 to vector<1x128xf32>
    %517 = arith.mulf %516, %515 : vector<1x128xf32>
    %518 = vector.broadcast %517 : vector<1x128xf32> to vector<8x128xf32>
    %519 = arith.mulf %518, %500 : vector<8x128xf32>
    %520 = arith.addf %0, %519 : vector<8x128xf32>
    %cst_114 = arith.constant 1.000000e+00 : f32
    %521 = vector.broadcast %cst_114 : f32 to vector<1x128xf32>
    %522 = arith.addf %521, %517 : vector<1x128xf32>
    %523 = vector.broadcast %497 : f32 to vector<1x128xf32>
    %524 = arith.mulf %523, %504 : vector<1x128xf32>
    %525 = arith.mulf %515, %515 : vector<1x128xf32>
    %526 = arith.mulf %524, %525 : vector<1x128xf32>
    %527 = arith.subf %522, %526 : vector<1x128xf32>
    %528 = arith.mulf %522, %522 : vector<1x128xf32>
    %529 = arith.mulf %522, %528 : vector<1x128xf32>
    %530 = arith.mulf %528, %528 : vector<1x128xf32>
    %531 = arith.mulf %529, %530 : vector<1x128xf32>
    %532 = arith.mulf %531, %527 : vector<1x128xf32>
    %533 = math.log %532 : vector<1x128xf32>
    %534 = arith.addf %495, %533 : vector<1x128xf32>
    %c2_115 = arith.constant 2 : index
    %c1_116 = arith.constant 1 : index
    %535 = memref.load %arg1[%c2_115, %c1_116] : memref<4x12xf32, #tpu.memory_space<smem>>
    %c2_117 = arith.constant 2 : index
    %c7_118 = arith.constant 7 : index
    %536 = memref.load %arg1[%c2_117, %c7_118] : memref<4x12xf32, #tpu.memory_space<smem>>
    %537 = vector.extract_strided_slice %494 {offsets = [0, 1], sizes = [8, 1], strides = [1, 1]} : vector<8x6xf32> to vector<8x1xf32>
    %538 = vector.broadcast %537 : vector<8x1xf32> to vector<8x128xf32>
    %539 = arith.subf %520, %538 : vector<8x128xf32>
    %540 = arith.mulf %539, %539 : vector<8x128xf32>
    %cst_119 = arith.constant dense<0.000000e+00> : vector<128xf32>
    %541 = vector.multi_reduction <add>, %540, %cst_119 [0] : vector<8x128xf32> to vector<128xf32>
    %542 = vector.shape_cast %541 : vector<128xf32> to vector<1x128xf32>
    %543 = math.sqrt %542 : vector<1x128xf32>
    %544 = vector.broadcast %535 : f32 to vector<1x128xf32>
    %545 = arith.addf %544, %543 : vector<1x128xf32>
    %546 = tpu.reciprocal %545 {approx = true} : vector<1x128xf32> -> vector<1x128xf32>
    %547 = arith.mulf %545, %546 : vector<1x128xf32>
    %cst_120 = arith.constant 2.000000e+00 : f32
    %548 = vector.broadcast %cst_120 : f32 to vector<1x128xf32>
    %549 = arith.subf %548, %547 : vector<1x128xf32>
    %550 = arith.mulf %546, %549 : vector<1x128xf32>
    %551 = arith.mulf %545, %550 : vector<1x128xf32>
    %cst_121 = arith.constant 2.000000e+00 : f32
    %552 = vector.broadcast %cst_121 : f32 to vector<1x128xf32>
    %553 = arith.subf %552, %551 : vector<1x128xf32>
    %554 = arith.mulf %550, %553 : vector<1x128xf32>
    %555 = vector.broadcast %536 : f32 to vector<1x128xf32>
    %556 = arith.mulf %555, %554 : vector<1x128xf32>
    %557 = vector.broadcast %556 : vector<1x128xf32> to vector<8x128xf32>
    %558 = arith.mulf %557, %539 : vector<8x128xf32>
    %559 = arith.addf %520, %558 : vector<8x128xf32>
    %cst_122 = arith.constant 1.000000e+00 : f32
    %560 = vector.broadcast %cst_122 : f32 to vector<1x128xf32>
    %561 = arith.addf %560, %556 : vector<1x128xf32>
    %562 = vector.broadcast %536 : f32 to vector<1x128xf32>
    %563 = arith.mulf %562, %543 : vector<1x128xf32>
    %564 = arith.mulf %554, %554 : vector<1x128xf32>
    %565 = arith.mulf %563, %564 : vector<1x128xf32>
    %566 = arith.subf %561, %565 : vector<1x128xf32>
    %567 = arith.mulf %561, %561 : vector<1x128xf32>
    %568 = arith.mulf %561, %567 : vector<1x128xf32>
    %569 = arith.mulf %567, %567 : vector<1x128xf32>
    %570 = arith.mulf %568, %569 : vector<1x128xf32>
    %571 = arith.mulf %570, %566 : vector<1x128xf32>
    %572 = math.log %571 : vector<1x128xf32>
    %573 = arith.addf %534, %572 : vector<1x128xf32>
    %c2_123 = arith.constant 2 : index
    %c2_124 = arith.constant 2 : index
    %574 = memref.load %arg1[%c2_123, %c2_124] : memref<4x12xf32, #tpu.memory_space<smem>>
    %c2_125 = arith.constant 2 : index
    %c8_126 = arith.constant 8 : index
    %575 = memref.load %arg1[%c2_125, %c8_126] : memref<4x12xf32, #tpu.memory_space<smem>>
    %576 = vector.extract_strided_slice %494 {offsets = [0, 2], sizes = [8, 1], strides = [1, 1]} : vector<8x6xf32> to vector<8x1xf32>
    %577 = vector.broadcast %576 : vector<8x1xf32> to vector<8x128xf32>
    %578 = arith.subf %559, %577 : vector<8x128xf32>
    %579 = arith.mulf %578, %578 : vector<8x128xf32>
    %cst_127 = arith.constant dense<0.000000e+00> : vector<128xf32>
    %580 = vector.multi_reduction <add>, %579, %cst_127 [0] : vector<8x128xf32> to vector<128xf32>
    %581 = vector.shape_cast %580 : vector<128xf32> to vector<1x128xf32>
    %582 = math.sqrt %581 : vector<1x128xf32>
    %583 = vector.broadcast %574 : f32 to vector<1x128xf32>
    %584 = arith.addf %583, %582 : vector<1x128xf32>
    %585 = tpu.reciprocal %584 {approx = true} : vector<1x128xf32> -> vector<1x128xf32>
    %586 = arith.mulf %584, %585 : vector<1x128xf32>
    %cst_128 = arith.constant 2.000000e+00 : f32
    %587 = vector.broadcast %cst_128 : f32 to vector<1x128xf32>
    %588 = arith.subf %587, %586 : vector<1x128xf32>
    %589 = arith.mulf %585, %588 : vector<1x128xf32>
    %590 = arith.mulf %584, %589 : vector<1x128xf32>
    %cst_129 = arith.constant 2.000000e+00 : f32
    %591 = vector.broadcast %cst_129 : f32 to vector<1x128xf32>
    %592 = arith.subf %591, %590 : vector<1x128xf32>
    %593 = arith.mulf %589, %592 : vector<1x128xf32>
    %594 = vector.broadcast %575 : f32 to vector<1x128xf32>
    %595 = arith.mulf %594, %593 : vector<1x128xf32>
    %596 = vector.broadcast %595 : vector<1x128xf32> to vector<8x128xf32>
    %597 = arith.mulf %596, %578 : vector<8x128xf32>
    %598 = arith.addf %559, %597 : vector<8x128xf32>
    %cst_130 = arith.constant 1.000000e+00 : f32
    %599 = vector.broadcast %cst_130 : f32 to vector<1x128xf32>
    %600 = arith.addf %599, %595 : vector<1x128xf32>
    %601 = vector.broadcast %575 : f32 to vector<1x128xf32>
    %602 = arith.mulf %601, %582 : vector<1x128xf32>
    %603 = arith.mulf %593, %593 : vector<1x128xf32>
    %604 = arith.mulf %602, %603 : vector<1x128xf32>
    %605 = arith.subf %600, %604 : vector<1x128xf32>
    %606 = arith.mulf %600, %600 : vector<1x128xf32>
    %607 = arith.mulf %600, %606 : vector<1x128xf32>
    %608 = arith.mulf %606, %606 : vector<1x128xf32>
    %609 = arith.mulf %607, %608 : vector<1x128xf32>
    %610 = arith.mulf %609, %605 : vector<1x128xf32>
    %611 = math.log %610 : vector<1x128xf32>
    %612 = arith.addf %573, %611 : vector<1x128xf32>
    %c2_131 = arith.constant 2 : index
    %c3_132 = arith.constant 3 : index
    %613 = memref.load %arg1[%c2_131, %c3_132] : memref<4x12xf32, #tpu.memory_space<smem>>
    %c2_133 = arith.constant 2 : index
    %c9_134 = arith.constant 9 : index
    %614 = memref.load %arg1[%c2_133, %c9_134] : memref<4x12xf32, #tpu.memory_space<smem>>
    %615 = vector.extract_strided_slice %494 {offsets = [0, 3], sizes = [8, 1], strides = [1, 1]} : vector<8x6xf32> to vector<8x1xf32>
    %616 = vector.broadcast %615 : vector<8x1xf32> to vector<8x128xf32>
    %617 = arith.subf %598, %616 : vector<8x128xf32>
    %618 = arith.mulf %617, %617 : vector<8x128xf32>
    %cst_135 = arith.constant dense<0.000000e+00> : vector<128xf32>
    %619 = vector.multi_reduction <add>, %618, %cst_135 [0] : vector<8x128xf32> to vector<128xf32>
    %620 = vector.shape_cast %619 : vector<128xf32> to vector<1x128xf32>
    %621 = math.sqrt %620 : vector<1x128xf32>
    %622 = vector.broadcast %613 : f32 to vector<1x128xf32>
    %623 = arith.addf %622, %621 : vector<1x128xf32>
    %624 = tpu.reciprocal %623 {approx = true} : vector<1x128xf32> -> vector<1x128xf32>
    %625 = arith.mulf %623, %624 : vector<1x128xf32>
    %cst_136 = arith.constant 2.000000e+00 : f32
    %626 = vector.broadcast %cst_136 : f32 to vector<1x128xf32>
    %627 = arith.subf %626, %625 : vector<1x128xf32>
    %628 = arith.mulf %624, %627 : vector<1x128xf32>
    %629 = arith.mulf %623, %628 : vector<1x128xf32>
    %cst_137 = arith.constant 2.000000e+00 : f32
    %630 = vector.broadcast %cst_137 : f32 to vector<1x128xf32>
    %631 = arith.subf %630, %629 : vector<1x128xf32>
    %632 = arith.mulf %628, %631 : vector<1x128xf32>
    %633 = vector.broadcast %614 : f32 to vector<1x128xf32>
    %634 = arith.mulf %633, %632 : vector<1x128xf32>
    %635 = vector.broadcast %634 : vector<1x128xf32> to vector<8x128xf32>
    %636 = arith.mulf %635, %617 : vector<8x128xf32>
    %637 = arith.addf %598, %636 : vector<8x128xf32>
    %cst_138 = arith.constant 1.000000e+00 : f32
    %638 = vector.broadcast %cst_138 : f32 to vector<1x128xf32>
    %639 = arith.addf %638, %634 : vector<1x128xf32>
    %640 = vector.broadcast %614 : f32 to vector<1x128xf32>
    %641 = arith.mulf %640, %621 : vector<1x128xf32>
    %642 = arith.mulf %632, %632 : vector<1x128xf32>
    %643 = arith.mulf %641, %642 : vector<1x128xf32>
    %644 = arith.subf %639, %643 : vector<1x128xf32>
    %645 = arith.mulf %639, %639 : vector<1x128xf32>
    %646 = arith.mulf %639, %645 : vector<1x128xf32>
    %647 = arith.mulf %645, %645 : vector<1x128xf32>
    %648 = arith.mulf %646, %647 : vector<1x128xf32>
    %649 = arith.mulf %648, %644 : vector<1x128xf32>
    %650 = math.log %649 : vector<1x128xf32>
    %651 = arith.addf %612, %650 : vector<1x128xf32>
    %c2_139 = arith.constant 2 : index
    %c4_140 = arith.constant 4 : index
    %652 = memref.load %arg1[%c2_139, %c4_140] : memref<4x12xf32, #tpu.memory_space<smem>>
    %c2_141 = arith.constant 2 : index
    %c10_142 = arith.constant 10 : index
    %653 = memref.load %arg1[%c2_141, %c10_142] : memref<4x12xf32, #tpu.memory_space<smem>>
    %654 = vector.extract_strided_slice %494 {offsets = [0, 4], sizes = [8, 1], strides = [1, 1]} : vector<8x6xf32> to vector<8x1xf32>
    %655 = vector.broadcast %654 : vector<8x1xf32> to vector<8x128xf32>
    %656 = arith.subf %637, %655 : vector<8x128xf32>
    %657 = arith.mulf %656, %656 : vector<8x128xf32>
    %cst_143 = arith.constant dense<0.000000e+00> : vector<128xf32>
    %658 = vector.multi_reduction <add>, %657, %cst_143 [0] : vector<8x128xf32> to vector<128xf32>
    %659 = vector.shape_cast %658 : vector<128xf32> to vector<1x128xf32>
    %660 = math.sqrt %659 : vector<1x128xf32>
    %661 = vector.broadcast %652 : f32 to vector<1x128xf32>
    %662 = arith.addf %661, %660 : vector<1x128xf32>
    %663 = tpu.reciprocal %662 {approx = true} : vector<1x128xf32> -> vector<1x128xf32>
    %664 = arith.mulf %662, %663 : vector<1x128xf32>
    %cst_144 = arith.constant 2.000000e+00 : f32
    %665 = vector.broadcast %cst_144 : f32 to vector<1x128xf32>
    %666 = arith.subf %665, %664 : vector<1x128xf32>
    %667 = arith.mulf %663, %666 : vector<1x128xf32>
    %668 = arith.mulf %662, %667 : vector<1x128xf32>
    %cst_145 = arith.constant 2.000000e+00 : f32
    %669 = vector.broadcast %cst_145 : f32 to vector<1x128xf32>
    %670 = arith.subf %669, %668 : vector<1x128xf32>
    %671 = arith.mulf %667, %670 : vector<1x128xf32>
    %672 = vector.broadcast %653 : f32 to vector<1x128xf32>
    %673 = arith.mulf %672, %671 : vector<1x128xf32>
    %674 = vector.broadcast %673 : vector<1x128xf32> to vector<8x128xf32>
    %675 = arith.mulf %674, %656 : vector<8x128xf32>
    %676 = arith.addf %637, %675 : vector<8x128xf32>
    %cst_146 = arith.constant 1.000000e+00 : f32
    %677 = vector.broadcast %cst_146 : f32 to vector<1x128xf32>
    %678 = arith.addf %677, %673 : vector<1x128xf32>
    %679 = vector.broadcast %653 : f32 to vector<1x128xf32>
    %680 = arith.mulf %679, %660 : vector<1x128xf32>
    %681 = arith.mulf %671, %671 : vector<1x128xf32>
    %682 = arith.mulf %680, %681 : vector<1x128xf32>
    %683 = arith.subf %678, %682 : vector<1x128xf32>
    %684 = arith.mulf %678, %678 : vector<1x128xf32>
    %685 = arith.mulf %678, %684 : vector<1x128xf32>
    %686 = arith.mulf %684, %684 : vector<1x128xf32>
    %687 = arith.mulf %685, %686 : vector<1x128xf32>
    %688 = arith.mulf %687, %683 : vector<1x128xf32>
    %689 = math.log %688 : vector<1x128xf32>
    %690 = arith.addf %651, %689 : vector<1x128xf32>
    %c2_147 = arith.constant 2 : index
    %c5_148 = arith.constant 5 : index
    %691 = memref.load %arg1[%c2_147, %c5_148] : memref<4x12xf32, #tpu.memory_space<smem>>
    %c2_149 = arith.constant 2 : index
    %c11_150 = arith.constant 11 : index
    %692 = memref.load %arg1[%c2_149, %c11_150] : memref<4x12xf32, #tpu.memory_space<smem>>
    %693 = vector.extract_strided_slice %494 {offsets = [0, 5], sizes = [8, 1], strides = [1, 1]} : vector<8x6xf32> to vector<8x1xf32>
    %694 = vector.broadcast %693 : vector<8x1xf32> to vector<8x128xf32>
    %695 = arith.subf %676, %694 : vector<8x128xf32>
    %696 = arith.mulf %695, %695 : vector<8x128xf32>
    %cst_151 = arith.constant dense<0.000000e+00> : vector<128xf32>
    %697 = vector.multi_reduction <add>, %696, %cst_151 [0] : vector<8x128xf32> to vector<128xf32>
    %698 = vector.shape_cast %697 : vector<128xf32> to vector<1x128xf32>
    %699 = math.sqrt %698 : vector<1x128xf32>
    %700 = vector.broadcast %691 : f32 to vector<1x128xf32>
    %701 = arith.addf %700, %699 : vector<1x128xf32>
    %702 = tpu.reciprocal %701 {approx = true} : vector<1x128xf32> -> vector<1x128xf32>
    %703 = arith.mulf %701, %702 : vector<1x128xf32>
    %cst_152 = arith.constant 2.000000e+00 : f32
    %704 = vector.broadcast %cst_152 : f32 to vector<1x128xf32>
    %705 = arith.subf %704, %703 : vector<1x128xf32>
    %706 = arith.mulf %702, %705 : vector<1x128xf32>
    %707 = arith.mulf %701, %706 : vector<1x128xf32>
    %cst_153 = arith.constant 2.000000e+00 : f32
    %708 = vector.broadcast %cst_153 : f32 to vector<1x128xf32>
    %709 = arith.subf %708, %707 : vector<1x128xf32>
    %710 = arith.mulf %706, %709 : vector<1x128xf32>
    %711 = vector.broadcast %692 : f32 to vector<1x128xf32>
    %712 = arith.mulf %711, %710 : vector<1x128xf32>
    %713 = vector.broadcast %712 : vector<1x128xf32> to vector<8x128xf32>
    %714 = arith.mulf %713, %695 : vector<8x128xf32>
    %715 = arith.addf %676, %714 : vector<8x128xf32>
    %cst_154 = arith.constant 1.000000e+00 : f32
    %716 = vector.broadcast %cst_154 : f32 to vector<1x128xf32>
    %717 = arith.addf %716, %712 : vector<1x128xf32>
    %718 = vector.broadcast %692 : f32 to vector<1x128xf32>
    %719 = arith.mulf %718, %699 : vector<1x128xf32>
    %720 = arith.mulf %710, %710 : vector<1x128xf32>
    %721 = arith.mulf %719, %720 : vector<1x128xf32>
    %722 = arith.subf %717, %721 : vector<1x128xf32>
    %723 = arith.mulf %717, %717 : vector<1x128xf32>
    %724 = arith.mulf %717, %723 : vector<1x128xf32>
    %725 = arith.mulf %723, %723 : vector<1x128xf32>
    %726 = arith.mulf %724, %725 : vector<1x128xf32>
    %727 = arith.mulf %726, %722 : vector<1x128xf32>
    %728 = math.log %727 : vector<1x128xf32>
    %729 = arith.addf %690, %728 : vector<1x128xf32>
    %730 = arith.mulf %715, %715 : vector<8x128xf32>
    %cst_155 = arith.constant dense<0.000000e+00> : vector<128xf32>
    %731 = vector.multi_reduction <add>, %730, %cst_155 [0] : vector<8x128xf32> to vector<128xf32>
    %732 = vector.shape_cast %731 : vector<128xf32> to vector<1x128xf32>
    %cst_156 = arith.constant 5.000000e-01 : f32
    %733 = vector.broadcast %cst_156 : f32 to vector<1x128xf32>
    %734 = arith.mulf %733, %732 : vector<1x128xf32>
    %cst_157 = arith.constant -7.35150814 : f32
    %735 = vector.broadcast %cst_157 : f32 to vector<1x128xf32>
    %736 = arith.subf %735, %734 : vector<1x128xf32>
    %737 = arith.addf %736, %729 : vector<1x128xf32>
    %c2_158 = arith.constant 2 : index
    %c0_159 = arith.constant 0 : index
    %738 = vector.load %arg4[%c2_158, %c0_159] : memref<4x128xf32, #tpu.memory_space<vmem>>, vector<1x128xf32>
    tpu.vector_store %arg4[%c2_158, %c0_159], %737 {strides = array<i32>} : memref<4x128xf32, #tpu.memory_space<vmem>>, vector<1x128xf32>,
    %c3_160 = arith.constant 3 : index
    %c0_161 = arith.constant 0 : index
    %c0_162 = arith.constant 0 : index
    %739 = vector.load %arg3[%c3_160, %c0_161, %c0_162] : memref<4x8x6xf32, #tpu.memory_space<vmem>>, vector<1x8x6xf32>
    %740 = vector.shape_cast %739 : vector<1x8x6xf32> to vector<8x6xf32>
    %cst_163 = arith.constant 0.000000e+00 : f32
    %741 = vector.broadcast %cst_163 : f32 to vector<1x128xf32>
    %c3_164 = arith.constant 3 : index
    %c0_165 = arith.constant 0 : index
    %742 = memref.load %arg1[%c3_164, %c0_165] : memref<4x12xf32, #tpu.memory_space<smem>>
    %c3_166 = arith.constant 3 : index
    %c6_167 = arith.constant 6 : index
    %743 = memref.load %arg1[%c3_166, %c6_167] : memref<4x12xf32, #tpu.memory_space<smem>>
    %744 = vector.extract_strided_slice %740 {offsets = [0, 0], sizes = [8, 1], strides = [1, 1]} : vector<8x6xf32> to vector<8x1xf32>
    %745 = vector.broadcast %744 : vector<8x1xf32> to vector<8x128xf32>
    %746 = arith.subf %0, %745 : vector<8x128xf32>
    %747 = arith.mulf %746, %746 : vector<8x128xf32>
    %cst_168 = arith.constant dense<0.000000e+00> : vector<128xf32>
    %748 = vector.multi_reduction <add>, %747, %cst_168 [0] : vector<8x128xf32> to vector<128xf32>
    %749 = vector.shape_cast %748 : vector<128xf32> to vector<1x128xf32>
    %750 = math.sqrt %749 : vector<1x128xf32>
    %751 = vector.broadcast %742 : f32 to vector<1x128xf32>
    %752 = arith.addf %751, %750 : vector<1x128xf32>
    %753 = tpu.reciprocal %752 {approx = true} : vector<1x128xf32> -> vector<1x128xf32>
    %754 = arith.mulf %752, %753 : vector<1x128xf32>
    %cst_169 = arith.constant 2.000000e+00 : f32
    %755 = vector.broadcast %cst_169 : f32 to vector<1x128xf32>
    %756 = arith.subf %755, %754 : vector<1x128xf32>
    %757 = arith.mulf %753, %756 : vector<1x128xf32>
    %758 = arith.mulf %752, %757 : vector<1x128xf32>
    %cst_170 = arith.constant 2.000000e+00 : f32
    %759 = vector.broadcast %cst_170 : f32 to vector<1x128xf32>
    %760 = arith.subf %759, %758 : vector<1x128xf32>
    %761 = arith.mulf %757, %760 : vector<1x128xf32>
    %762 = vector.broadcast %743 : f32 to vector<1x128xf32>
    %763 = arith.mulf %762, %761 : vector<1x128xf32>
    %764 = vector.broadcast %763 : vector<1x128xf32> to vector<8x128xf32>
    %765 = arith.mulf %764, %746 : vector<8x128xf32>
    %766 = arith.addf %0, %765 : vector<8x128xf32>
    %cst_171 = arith.constant 1.000000e+00 : f32
    %767 = vector.broadcast %cst_171 : f32 to vector<1x128xf32>
    %768 = arith.addf %767, %763 : vector<1x128xf32>
    %769 = vector.broadcast %743 : f32 to vector<1x128xf32>
    %770 = arith.mulf %769, %750 : vector<1x128xf32>
    %771 = arith.mulf %761, %761 : vector<1x128xf32>
    %772 = arith.mulf %770, %771 : vector<1x128xf32>
    %773 = arith.subf %768, %772 : vector<1x128xf32>
    %774 = arith.mulf %768, %768 : vector<1x128xf32>
    %775 = arith.mulf %768, %774 : vector<1x128xf32>
    %776 = arith.mulf %774, %774 : vector<1x128xf32>
    %777 = arith.mulf %775, %776 : vector<1x128xf32>
    %778 = arith.mulf %777, %773 : vector<1x128xf32>
    %779 = math.log %778 : vector<1x128xf32>
    %780 = arith.addf %741, %779 : vector<1x128xf32>
    %c3_172 = arith.constant 3 : index
    %c1_173 = arith.constant 1 : index
    %781 = memref.load %arg1[%c3_172, %c1_173] : memref<4x12xf32, #tpu.memory_space<smem>>
    %c3_174 = arith.constant 3 : index
    %c7_175 = arith.constant 7 : index
    %782 = memref.load %arg1[%c3_174, %c7_175] : memref<4x12xf32, #tpu.memory_space<smem>>
    %783 = vector.extract_strided_slice %740 {offsets = [0, 1], sizes = [8, 1], strides = [1, 1]} : vector<8x6xf32> to vector<8x1xf32>
    %784 = vector.broadcast %783 : vector<8x1xf32> to vector<8x128xf32>
    %785 = arith.subf %766, %784 : vector<8x128xf32>
    %786 = arith.mulf %785, %785 : vector<8x128xf32>
    %cst_176 = arith.constant dense<0.000000e+00> : vector<128xf32>
    %787 = vector.multi_reduction <add>, %786, %cst_176 [0] : vector<8x128xf32> to vector<128xf32>
    %788 = vector.shape_cast %787 : vector<128xf32> to vector<1x128xf32>
    %789 = math.sqrt %788 : vector<1x128xf32>
    %790 = vector.broadcast %781 : f32 to vector<1x128xf32>
    %791 = arith.addf %790, %789 : vector<1x128xf32>
    %792 = tpu.reciprocal %791 {approx = true} : vector<1x128xf32> -> vector<1x128xf32>
    %793 = arith.mulf %791, %792 : vector<1x128xf32>
    %cst_177 = arith.constant 2.000000e+00 : f32
    %794 = vector.broadcast %cst_177 : f32 to vector<1x128xf32>
    %795 = arith.subf %794, %793 : vector<1x128xf32>
    %796 = arith.mulf %792, %795 : vector<1x128xf32>
    %797 = arith.mulf %791, %796 : vector<1x128xf32>
    %cst_178 = arith.constant 2.000000e+00 : f32
    %798 = vector.broadcast %cst_178 : f32 to vector<1x128xf32>
    %799 = arith.subf %798, %797 : vector<1x128xf32>
    %800 = arith.mulf %796, %799 : vector<1x128xf32>
    %801 = vector.broadcast %782 : f32 to vector<1x128xf32>
    %802 = arith.mulf %801, %800 : vector<1x128xf32>
    %803 = vector.broadcast %802 : vector<1x128xf32> to vector<8x128xf32>
    %804 = arith.mulf %803, %785 : vector<8x128xf32>
    %805 = arith.addf %766, %804 : vector<8x128xf32>
    %cst_179 = arith.constant 1.000000e+00 : f32
    %806 = vector.broadcast %cst_179 : f32 to vector<1x128xf32>
    %807 = arith.addf %806, %802 : vector<1x128xf32>
    %808 = vector.broadcast %782 : f32 to vector<1x128xf32>
    %809 = arith.mulf %808, %789 : vector<1x128xf32>
    %810 = arith.mulf %800, %800 : vector<1x128xf32>
    %811 = arith.mulf %809, %810 : vector<1x128xf32>
    %812 = arith.subf %807, %811 : vector<1x128xf32>
    %813 = arith.mulf %807, %807 : vector<1x128xf32>
    %814 = arith.mulf %807, %813 : vector<1x128xf32>
    %815 = arith.mulf %813, %813 : vector<1x128xf32>
    %816 = arith.mulf %814, %815 : vector<1x128xf32>
    %817 = arith.mulf %816, %812 : vector<1x128xf32>
    %818 = math.log %817 : vector<1x128xf32>
    %819 = arith.addf %780, %818 : vector<1x128xf32>
    %c3_180 = arith.constant 3 : index
    %c2_181 = arith.constant 2 : index
    %820 = memref.load %arg1[%c3_180, %c2_181] : memref<4x12xf32, #tpu.memory_space<smem>>
    %c3_182 = arith.constant 3 : index
    %c8_183 = arith.constant 8 : index
    %821 = memref.load %arg1[%c3_182, %c8_183] : memref<4x12xf32, #tpu.memory_space<smem>>
    %822 = vector.extract_strided_slice %740 {offsets = [0, 2], sizes = [8, 1], strides = [1, 1]} : vector<8x6xf32> to vector<8x1xf32>
    %823 = vector.broadcast %822 : vector<8x1xf32> to vector<8x128xf32>
    %824 = arith.subf %805, %823 : vector<8x128xf32>
    %825 = arith.mulf %824, %824 : vector<8x128xf32>
    %cst_184 = arith.constant dense<0.000000e+00> : vector<128xf32>
    %826 = vector.multi_reduction <add>, %825, %cst_184 [0] : vector<8x128xf32> to vector<128xf32>
    %827 = vector.shape_cast %826 : vector<128xf32> to vector<1x128xf32>
    %828 = math.sqrt %827 : vector<1x128xf32>
    %829 = vector.broadcast %820 : f32 to vector<1x128xf32>
    %830 = arith.addf %829, %828 : vector<1x128xf32>
    %831 = tpu.reciprocal %830 {approx = true} : vector<1x128xf32> -> vector<1x128xf32>
    %832 = arith.mulf %830, %831 : vector<1x128xf32>
    %cst_185 = arith.constant 2.000000e+00 : f32
    %833 = vector.broadcast %cst_185 : f32 to vector<1x128xf32>
    %834 = arith.subf %833, %832 : vector<1x128xf32>
    %835 = arith.mulf %831, %834 : vector<1x128xf32>
    %836 = arith.mulf %830, %835 : vector<1x128xf32>
    %cst_186 = arith.constant 2.000000e+00 : f32
    %837 = vector.broadcast %cst_186 : f32 to vector<1x128xf32>
    %838 = arith.subf %837, %836 : vector<1x128xf32>
    %839 = arith.mulf %835, %838 : vector<1x128xf32>
    %840 = vector.broadcast %821 : f32 to vector<1x128xf32>
    %841 = arith.mulf %840, %839 : vector<1x128xf32>
    %842 = vector.broadcast %841 : vector<1x128xf32> to vector<8x128xf32>
    %843 = arith.mulf %842, %824 : vector<8x128xf32>
    %844 = arith.addf %805, %843 : vector<8x128xf32>
    %cst_187 = arith.constant 1.000000e+00 : f32
    %845 = vector.broadcast %cst_187 : f32 to vector<1x128xf32>
    %846 = arith.addf %845, %841 : vector<1x128xf32>
    %847 = vector.broadcast %821 : f32 to vector<1x128xf32>
    %848 = arith.mulf %847, %828 : vector<1x128xf32>
    %849 = arith.mulf %839, %839 : vector<1x128xf32>
    %850 = arith.mulf %848, %849 : vector<1x128xf32>
    %851 = arith.subf %846, %850 : vector<1x128xf32>
    %852 = arith.mulf %846, %846 : vector<1x128xf32>
    %853 = arith.mulf %846, %852 : vector<1x128xf32>
    %854 = arith.mulf %852, %852 : vector<1x128xf32>
    %855 = arith.mulf %853, %854 : vector<1x128xf32>
    %856 = arith.mulf %855, %851 : vector<1x128xf32>
    %857 = math.log %856 : vector<1x128xf32>
    %858 = arith.addf %819, %857 : vector<1x128xf32>
    %c3_188 = arith.constant 3 : index
    %c3_189 = arith.constant 3 : index
    %859 = memref.load %arg1[%c3_188, %c3_189] : memref<4x12xf32, #tpu.memory_space<smem>>
    %c3_190 = arith.constant 3 : index
    %c9_191 = arith.constant 9 : index
    %860 = memref.load %arg1[%c3_190, %c9_191] : memref<4x12xf32, #tpu.memory_space<smem>>
    %861 = vector.extract_strided_slice %740 {offsets = [0, 3], sizes = [8, 1], strides = [1, 1]} : vector<8x6xf32> to vector<8x1xf32>
    %862 = vector.broadcast %861 : vector<8x1xf32> to vector<8x128xf32>
    %863 = arith.subf %844, %862 : vector<8x128xf32>
    %864 = arith.mulf %863, %863 : vector<8x128xf32>
    %cst_192 = arith.constant dense<0.000000e+00> : vector<128xf32>
    %865 = vector.multi_reduction <add>, %864, %cst_192 [0] : vector<8x128xf32> to vector<128xf32>
    %866 = vector.shape_cast %865 : vector<128xf32> to vector<1x128xf32>
    %867 = math.sqrt %866 : vector<1x128xf32>
    %868 = vector.broadcast %859 : f32 to vector<1x128xf32>
    %869 = arith.addf %868, %867 : vector<1x128xf32>
    %870 = tpu.reciprocal %869 {approx = true} : vector<1x128xf32> -> vector<1x128xf32>
    %871 = arith.mulf %869, %870 : vector<1x128xf32>
    %cst_193 = arith.constant 2.000000e+00 : f32
    %872 = vector.broadcast %cst_193 : f32 to vector<1x128xf32>
    %873 = arith.subf %872, %871 : vector<1x128xf32>
    %874 = arith.mulf %870, %873 : vector<1x128xf32>
    %875 = arith.mulf %869, %874 : vector<1x128xf32>
    %cst_194 = arith.constant 2.000000e+00 : f32
    %876 = vector.broadcast %cst_194 : f32 to vector<1x128xf32>
    %877 = arith.subf %876, %875 : vector<1x128xf32>
    %878 = arith.mulf %874, %877 : vector<1x128xf32>
    %879 = vector.broadcast %860 : f32 to vector<1x128xf32>
    %880 = arith.mulf %879, %878 : vector<1x128xf32>
    %881 = vector.broadcast %880 : vector<1x128xf32> to vector<8x128xf32>
    %882 = arith.mulf %881, %863 : vector<8x128xf32>
    %883 = arith.addf %844, %882 : vector<8x128xf32>
    %cst_195 = arith.constant 1.000000e+00 : f32
    %884 = vector.broadcast %cst_195 : f32 to vector<1x128xf32>
    %885 = arith.addf %884, %880 : vector<1x128xf32>
    %886 = vector.broadcast %860 : f32 to vector<1x128xf32>
    %887 = arith.mulf %886, %867 : vector<1x128xf32>
    %888 = arith.mulf %878, %878 : vector<1x128xf32>
    %889 = arith.mulf %887, %888 : vector<1x128xf32>
    %890 = arith.subf %885, %889 : vector<1x128xf32>
    %891 = arith.mulf %885, %885 : vector<1x128xf32>
    %892 = arith.mulf %885, %891 : vector<1x128xf32>
    %893 = arith.mulf %891, %891 : vector<1x128xf32>
    %894 = arith.mulf %892, %893 : vector<1x128xf32>
    %895 = arith.mulf %894, %890 : vector<1x128xf32>
    %896 = math.log %895 : vector<1x128xf32>
    %897 = arith.addf %858, %896 : vector<1x128xf32>
    %c3_196 = arith.constant 3 : index
    %c4_197 = arith.constant 4 : index
    %898 = memref.load %arg1[%c3_196, %c4_197] : memref<4x12xf32, #tpu.memory_space<smem>>
    %c3_198 = arith.constant 3 : index
    %c10_199 = arith.constant 10 : index
    %899 = memref.load %arg1[%c3_198, %c10_199] : memref<4x12xf32, #tpu.memory_space<smem>>
    %900 = vector.extract_strided_slice %740 {offsets = [0, 4], sizes = [8, 1], strides = [1, 1]} : vector<8x6xf32> to vector<8x1xf32>
    %901 = vector.broadcast %900 : vector<8x1xf32> to vector<8x128xf32>
    %902 = arith.subf %883, %901 : vector<8x128xf32>
    %903 = arith.mulf %902, %902 : vector<8x128xf32>
    %cst_200 = arith.constant dense<0.000000e+00> : vector<128xf32>
    %904 = vector.multi_reduction <add>, %903, %cst_200 [0] : vector<8x128xf32> to vector<128xf32>
    %905 = vector.shape_cast %904 : vector<128xf32> to vector<1x128xf32>
    %906 = math.sqrt %905 : vector<1x128xf32>
    %907 = vector.broadcast %898 : f32 to vector<1x128xf32>
    %908 = arith.addf %907, %906 : vector<1x128xf32>
    %909 = tpu.reciprocal %908 {approx = true} : vector<1x128xf32> -> vector<1x128xf32>
    %910 = arith.mulf %908, %909 : vector<1x128xf32>
    %cst_201 = arith.constant 2.000000e+00 : f32
    %911 = vector.broadcast %cst_201 : f32 to vector<1x128xf32>
    %912 = arith.subf %911, %910 : vector<1x128xf32>
    %913 = arith.mulf %909, %912 : vector<1x128xf32>
    %914 = arith.mulf %908, %913 : vector<1x128xf32>
    %cst_202 = arith.constant 2.000000e+00 : f32
    %915 = vector.broadcast %cst_202 : f32 to vector<1x128xf32>
    %916 = arith.subf %915, %914 : vector<1x128xf32>
    %917 = arith.mulf %913, %916 : vector<1x128xf32>
    %918 = vector.broadcast %899 : f32 to vector<1x128xf32>
    %919 = arith.mulf %918, %917 : vector<1x128xf32>
    %920 = vector.broadcast %919 : vector<1x128xf32> to vector<8x128xf32>
    %921 = arith.mulf %920, %902 : vector<8x128xf32>
    %922 = arith.addf %883, %921 : vector<8x128xf32>
    %cst_203 = arith.constant 1.000000e+00 : f32
    %923 = vector.broadcast %cst_203 : f32 to vector<1x128xf32>
    %924 = arith.addf %923, %919 : vector<1x128xf32>
    %925 = vector.broadcast %899 : f32 to vector<1x128xf32>
    %926 = arith.mulf %925, %906 : vector<1x128xf32>
    %927 = arith.mulf %917, %917 : vector<1x128xf32>
    %928 = arith.mulf %926, %927 : vector<1x128xf32>
    %929 = arith.subf %924, %928 : vector<1x128xf32>
    %930 = arith.mulf %924, %924 : vector<1x128xf32>
    %931 = arith.mulf %924, %930 : vector<1x128xf32>
    %932 = arith.mulf %930, %930 : vector<1x128xf32>
    %933 = arith.mulf %931, %932 : vector<1x128xf32>
    %934 = arith.mulf %933, %929 : vector<1x128xf32>
    %935 = math.log %934 : vector<1x128xf32>
    %936 = arith.addf %897, %935 : vector<1x128xf32>
    %c3_204 = arith.constant 3 : index
    %c5_205 = arith.constant 5 : index
    %937 = memref.load %arg1[%c3_204, %c5_205] : memref<4x12xf32, #tpu.memory_space<smem>>
    %c3_206 = arith.constant 3 : index
    %c11_207 = arith.constant 11 : index
    %938 = memref.load %arg1[%c3_206, %c11_207] : memref<4x12xf32, #tpu.memory_space<smem>>
    %939 = vector.extract_strided_slice %740 {offsets = [0, 5], sizes = [8, 1], strides = [1, 1]} : vector<8x6xf32> to vector<8x1xf32>
    %940 = vector.broadcast %939 : vector<8x1xf32> to vector<8x128xf32>
    %941 = arith.subf %922, %940 : vector<8x128xf32>
    %942 = arith.mulf %941, %941 : vector<8x128xf32>
    %cst_208 = arith.constant dense<0.000000e+00> : vector<128xf32>
    %943 = vector.multi_reduction <add>, %942, %cst_208 [0] : vector<8x128xf32> to vector<128xf32>
    %944 = vector.shape_cast %943 : vector<128xf32> to vector<1x128xf32>
    %945 = math.sqrt %944 : vector<1x128xf32>
    %946 = vector.broadcast %937 : f32 to vector<1x128xf32>
    %947 = arith.addf %946, %945 : vector<1x128xf32>
    %948 = tpu.reciprocal %947 {approx = true} : vector<1x128xf32> -> vector<1x128xf32>
    %949 = arith.mulf %947, %948 : vector<1x128xf32>
    %cst_209 = arith.constant 2.000000e+00 : f32
    %950 = vector.broadcast %cst_209 : f32 to vector<1x128xf32>
    %951 = arith.subf %950, %949 : vector<1x128xf32>
    %952 = arith.mulf %948, %951 : vector<1x128xf32>
    %953 = arith.mulf %947, %952 : vector<1x128xf32>
    %cst_210 = arith.constant 2.000000e+00 : f32
    %954 = vector.broadcast %cst_210 : f32 to vector<1x128xf32>
    %955 = arith.subf %954, %953 : vector<1x128xf32>
    %956 = arith.mulf %952, %955 : vector<1x128xf32>
    %957 = vector.broadcast %938 : f32 to vector<1x128xf32>
    %958 = arith.mulf %957, %956 : vector<1x128xf32>
    %959 = vector.broadcast %958 : vector<1x128xf32> to vector<8x128xf32>
    %960 = arith.mulf %959, %941 : vector<8x128xf32>
    %961 = arith.addf %922, %960 : vector<8x128xf32>
    %cst_211 = arith.constant 1.000000e+00 : f32
    %962 = vector.broadcast %cst_211 : f32 to vector<1x128xf32>
    %963 = arith.addf %962, %958 : vector<1x128xf32>
    %964 = vector.broadcast %938 : f32 to vector<1x128xf32>
    %965 = arith.mulf %964, %945 : vector<1x128xf32>
    %966 = arith.mulf %956, %956 : vector<1x128xf32>
    %967 = arith.mulf %965, %966 : vector<1x128xf32>
    %968 = arith.subf %963, %967 : vector<1x128xf32>
    %969 = arith.mulf %963, %963 : vector<1x128xf32>
    %970 = arith.mulf %963, %969 : vector<1x128xf32>
    %971 = arith.mulf %969, %969 : vector<1x128xf32>
    %972 = arith.mulf %970, %971 : vector<1x128xf32>
    %973 = arith.mulf %972, %968 : vector<1x128xf32>
    %974 = math.log %973 : vector<1x128xf32>
    %975 = arith.addf %936, %974 : vector<1x128xf32>
    %976 = arith.mulf %961, %961 : vector<8x128xf32>
    %cst_212 = arith.constant dense<0.000000e+00> : vector<128xf32>
    %977 = vector.multi_reduction <add>, %976, %cst_212 [0] : vector<8x128xf32> to vector<128xf32>
    %978 = vector.shape_cast %977 : vector<128xf32> to vector<1x128xf32>
    %cst_213 = arith.constant 5.000000e-01 : f32
    %979 = vector.broadcast %cst_213 : f32 to vector<1x128xf32>
    %980 = arith.mulf %979, %978 : vector<1x128xf32>
    %cst_214 = arith.constant -7.35150814 : f32
    %981 = vector.broadcast %cst_214 : f32 to vector<1x128xf32>
    %982 = arith.subf %981, %980 : vector<1x128xf32>
    %983 = arith.addf %982, %975 : vector<1x128xf32>
    %c3_215 = arith.constant 3 : index
    %c0_216 = arith.constant 0 : index
    %984 = vector.load %arg4[%c3_215, %c0_216] : memref<4x128xf32, #tpu.memory_space<vmem>>, vector<1x128xf32>
    tpu.vector_store %arg4[%c3_215, %c0_216], %983 {strides = array<i32>} : memref<4x128xf32, #tpu.memory_space<vmem>>, vector<1x128xf32>,
    return
  }
  func.func @transform_0(%arg0: i32, %arg1: memref<4x12xf32, #tpu.memory_space<smem>>) -> (i32, i32) {
    %c0_i32 = arith.constant 0 : i32
    %c0_i32_0 = arith.constant 0 : i32
    return %c0_i32, %arg0 : i32, i32
  }
  func.func @transform_1(%arg0: i32, %arg1: memref<4x12xf32, #tpu.memory_space<smem>>) -> (i32, i32, i32) {
    %c0_i32 = arith.constant 0 : i32
    %c0_i32_0 = arith.constant 0 : i32
    %c0_i32_1 = arith.constant 0 : i32
    %c0_i32_2 = arith.constant 0 : i32
    return %c0_i32, %c0_i32_0, %c0_i32_1 : i32, i32, i32
  }
  func.func @transform_2(%arg0: i32, %arg1: memref<4x12xf32, #tpu.memory_space<smem>>) -> (i32, i32) {
    %c0_i32 = arith.constant 0 : i32
    %c0_i32_0 = arith.constant 0 : i32
    return %c0_i32, %arg0 : i32, i32
  }
}

</mosaic_0001>

<bundles_post_ra>
// kernel: tpu_custom_call.1
= control target key start
LH: loop header
LB: loop body
LE: loop exit
PB: predicated region body
PF: predicated region fallthrough
CT: control target
= control target key end

     0   :  { %s1603_s15 = smov [#allocation3]   ;;  %s2399_s0 = inlined_call_operand.vmem [shape: f32[4,12], index: 0, kind: input, shape index: {}]   ;;  %s2400_s1 = inlined_call_operand.vmem [shape: f32[8,128], index: 1, kind: input, shape index: {}]   ;;  %s2401_s2 = inlined_call_operand.vmem [shape: f32[4,8,6], index: 2, kind: input, shape index: {}]   ;;  %s2402_s3 = inlined_call_operand.hbm [shape: f32[4,128], index: 3, kind: output, shape index: {}]  }
   0x1   :  { %s9_s14 = sshll.u32 %s2399_s0, 4  ;;  %s10_s14 = int_to_ptr.vmem [resolvable:$true] %s9_s14 }
   0x2   :  { %12 = dma.vmem_to_smem %s10_s14, 64, %s1603_s15, [#allocation2] }
   0x3   :  { %1599 = dma.done.wait [#allocation2], 64 }
   0x4   :  { %1600 = vsyncadd [#allocation2], 4294967232 }
   0x5   :  { %15 = sfence }
   0x6   :  { %v1637_v0 = vld [vmem:[%s2401_s2 + $0x10] sm:$0xff]  ;;  %v1642_v1 = vld [vmem:[%s2401_s2] sm:$0xff]  ;;  %v1604_v2 = vmov 0  }
   0x7   :  { %1400 = vset.pattern.permute.xlu1 %v1604_v2  ;;  %1399 = vset.pattern.permute.xlu0 %v1604_v2 }
   0x8   :  { %16 = vsyncpa [#allocation5], 0  ;;  %679 = vperm.xlu1 %1400, %v1637_v0   ;;  %27 = vperm.xlu0 %1399, %v1642_v1   ;;  %v1605_v3 = vmov 1   ;;  %v1650_v4 = vld [vmem:[%s2401_s2 + $0x18] sm:$0xff]  ;;  %v1655_v5 = vld [vmem:[%s2401_s2 + $0x8] sm:$0xff]  ;;  %v1606_v6 = vmov 2  }
   0x9   :  { %1401 = vset.pattern.permute.xlu2 %v1605_v3  ;;  %v1668_v7 = vld [vmem:[%s2400_s1] sm:$0xff]  ;;  %s1691_s1 = sld [smem:[#allocation3 + $0x100]]  ;;  %s1610_s22 = smov [#allocation4]  }
   0xa   :  { %79 = vperm.xlu2 %1401, %v1642_v1   ;;  %s1693_s25 = sld [smem:[#allocation3 + $0x106]]  ;;  %s1330_s23 = sshll.u32 %s1610_s22, 4  ;;  %s1331_s23 = int_to_ptr.vmem [resolvable:$true] %s1330_s23 }
   0xb   :  { %s1695_s26 = sld [smem:[#allocation3]] }
   0xc   :  { %s1701_s27 = sld [smem:[#allocation3 + $0x6]] }
   0xd   :  { %s1709_s28 = sld [smem:[#allocation3 + $0x180]] }
   0xe   :  { %s1712_s29 = sld [smem:[#allocation3 + $0x186]] }
   0xf   :  { %v702_v56 = vstv %s1691_s1  ;;  %s1715_s30 = sld [smem:[#allocation3 + $0x80]] }
  0x10   :  { %1005 = vperm.xlu1 %1400, %v1650_v4   ;;  %353 = vperm.xlu0 %1399, %v1655_v5   ;;  %v711_v57 = vstv %s1693_s25  ;;  %s1717_s4 = sld [smem:[#allocation3 + $0x86]]  ;;  %s1332_s25 = sshll.u32 %s2402_s3, 4  ;;  %s1333_s25 = int_to_ptr.hbm [resolvable:$true] %s1332_s25 }
  0x11   :  { %v50_v58 = vstv %s1695_s26  ;;  %s1809_s5 = sld [smem:[#allocation3 + $0x1]] }
  0x12   :  { %405 = vperm.xlu2 %1401, %v1655_v5   ;;  %v59_v62 = vstv %s1701_s27  ;;  %s1813_s6 = sld [smem:[#allocation3 + $0x7]] }
  0x13   :  { %s1816_s7 = sld [smem:[#allocation3 + $0x101]] }
  0x14   :  { %s1820_s8 = sld [smem:[#allocation3 + $0x107]] }
  0x15   :  { %s1826_s9 = sld [smem:[#allocation3 + $0x81]] }
  0x16   :  { %s1829_s10 = sld [smem:[#allocation3 + $0x87]] }
  0x17   :  { %s1833_s11 = sld [smem:[#allocation3 + $0x181]] }
  0x18   :  { %1402 = vset.pattern.permute.xlu0 %v1605_v3  ;;  %1403 = vset.pattern.permute.xlu1 %v1605_v3  ;;  %s1839_s12 = sld [smem:[#allocation3 + $0x187]] }
  0x19   :  { %731 = vperm.xlu0 %1402, %v1637_v0   ;;  %1057 = vperm.xlu1 %1403, %v1650_v4   ;;  %s1936_s13 = sld [smem:[#allocation3 + $0x2]] }
  0x1a   :  { %1404 = vset.pattern.permute.xlu2 %v1606_v6  ;;  %s1938_s14 = sld [smem:[#allocation3 + $0x8]] }
  0x1b   :  { %131 = vperm.xlu2 %1404, %v1642_v1   ;;  %s1946_s15 = sld [smem:[#allocation3 + $0x102]] }
  0x1c   :  { %s1950_s16 = sld [smem:[#allocation3 + $0x108]] }
  0x1d   :  { %s1965_s17 = sld [smem:[#allocation3 + $0x82]] }
  0x1e   :  { %s1967_s18 = sld [smem:[#allocation3 + $0x88]] }
  0x1f   :  { %s1977_s19 = sld [smem:[#allocation3 + $0x182]] }
  0x20   :  { %s1983_s0 = sld [smem:[#allocation3 + $0x188]] }
  0x21   :  { %1405 = vset.pattern.permute.xlu1 %v1606_v6  ;;  %1406 = vset.pattern.permute.xlu0 %v1606_v6  ;;  %s2081_s27 = sld [smem:[#allocation3 + $0x9]] }
  0x22   :  { %457 = vperm.xlu1 %1405, %v1655_v5   ;;  %1109 = vperm.xlu0 %1406, %v1650_v4   ;;  %s2374_s20 = sld [smem:[#allocation3 + $0x8b]] }
  0x23   :  { %783 = vperm.xlu2 %1404, %v1637_v0   ;;  %s2377_s21 = sld [smem:[#allocation3 + $0x18b]] }
  0x7a   :  { %v680_v8 = vpop.permute.xlu1 %679  ;;  %v28_v9 = vpop.permute.xlu0 %27 }
  0x7b   :  { %v1671_v10 = vsub.f32 %v1668_v7, %v680_v8  ;;  %v1674_v11 = vsub.f32 %v1668_v7, %v28_v9 }
  0x7d   :  { %v683_v12 = vmul.f32 %v1671_v10, %v1671_v10  ;;  %v31_v13 = vmul.f32 %v1674_v11, %v1674_v11 }
  0x7f   :  { %v684_v14 = vrot.slane %v683_v12, 4  ;;  %v32_v15 = vrot.slane %v31_v13, 4 }
  0x81   :  { %v685_v16 = vadd.f32 %v684_v14, %v683_v12  ;;  %v33_v17 = vadd.f32 %v32_v15, %v31_v13 }
  0x82   :  { %v1006_v18 = vpop.permute.xlu1 %1005  ;;  %v354_v19 = vpop.permute.xlu0 %353 }
  0x83   :  { %v686_v20 = vrot.slane %v685_v16, 2  ;;  %v34_v21 = vrot.slane %v33_v17, 2  ;;  %v1682_v22 = vsub.f32 %v1668_v7, %v1006_v18  ;;  %v1685_v23 = vsub.f32 %v1668_v7, %v354_v19 }
  0x85   :  { %v687_v24 = vadd.f32 %v686_v20, %v685_v16  ;;  %v35_v25 = vadd.f32 %v34_v21, %v33_v17  ;;  %v1009_v26 = vmul.f32 %v1682_v22, %v1682_v22  ;;  %v357_v27 = vmul.f32 %v1685_v23, %v1685_v23 }
  0x87   :  { %v688_v28 = vrot.slane %v687_v24, 1  ;;  %v36_v29 = vrot.slane %v35_v25, 1  ;;  %v1010_v30 = vrot.slane %v1009_v26, 4  ;;  %v358_v31 = vrot.slane %v357_v27, 4 }
  0x89   :  { %v689_v32 = vadd.f32 %v688_v28, %v687_v24  ;;  %v37_v33 = vadd.f32 %v36_v29, %v35_v25  ;;  %v1011_v34 = vadd.f32 %v1010_v30, %v1009_v26  ;;  %v359_v35 = vadd.f32 %v358_v31, %v357_v27 }
  0x8a   :  { %v1607_v29 = vmov 3   ;;  %v1028_v30 = vstv %s1709_s28  ;;  %v1037_v31 = vstv %s1712_s29  ;;  %s2099_s28 = sld [smem:[#allocation3 + $0x103]] }
  0x8b   :  { %1415 = vrsqrt.f32 %v689_v32  ;;  %v1012_v36 = vrot.slane %v1011_v34, 2  ;;  %v360_v37 = vrot.slane %v359_v35, 2  ;;  %vm697_vm0 = vcmp.eq.f32.partialorder %v689_v32, inf  ;;  %1407 = vset.pattern.permute.xlu1 %v1607_v29  ;;  %1408 = vset.pattern.permute.xlu2 %v1607_v29  ;;  %s2103_s29 = sld [smem:[#allocation3 + $0x109]] }
  0x8c   :  { %1417 = vrsqrt.f32 %v37_v33  ;;  %vm699_vm1 = vcmp.eq.f32.partialorder %v689_v32, 0.0  ;;  %v700_v2 = vand.u32 2147483648, %v689_v32  ;;  %vm45_vm2 = vcmp.eq.f32.partialorder %v37_v33, inf  ;;  %183 = vperm.xlu1 %1407, %v1642_v1   ;;  %509 = vperm.xlu2 %1408, %v1655_v5  }
  0x8d   :  { %v1013_v38 = vadd.f32 %v1012_v36, %v1011_v34  ;;  %v361_v39 = vadd.f32 %v360_v37, %v359_v35  ;;  %v48_v9 = vand.u32 2147483648, %v37_v33  ;;  %vm47_vm3 = vcmp.eq.f32.partialorder %v37_v33, 0.0 }
  0x8e   :  { %v385_v35 = vstv %s1717_s4  ;;  %s2112_s4 = sld [smem:[#allocation3 + $0x89]] }
  0x8f   :  { %v1014_v41 = vrot.slane %v1013_v38, 1  ;;  %v362_v42 = vrot.slane %v361_v39, 1 }
  0x91   :  { %v1416_v40 = vpop.eup %1415  ;;  %v1697_v46 = vadd.f32 %v1014_v41, %v1013_v38  ;;  %v1699_v47 = vadd.f32 %v362_v42, %v361_v39 }
  0x92   :  { %v1418_v43 = vpop.eup %1417  ;;  %v691_v44 = vmul.f32 %v1416_v40, %v689_v32 }
  0x93   :  { %v39_v45 = vmul.f32 %v1418_v43, %v37_v33  ;;  %1419 = vrsqrt.f32 %v1697_v46  ;;  %vm1023_vm4 = vcmp.eq.f32.partialorder %v1697_v46, inf  ;;  %v1026_v34 = vand.u32 2147483648, %v1697_v46 }
  0x94   :  { %v692_v48 = vmul.f32 %v1416_v40, %v691_v44  ;;  %1421 = vrsqrt.f32 %v1699_v47  ;;  %vm1025_vm5 = vcmp.eq.f32.partialorder %v1697_v46, 0.0  ;;  %vm371_vm6 = vcmp.eq.f32.partialorder %v1699_v47, inf  ;;  %835 = vperm.xlu1 %1407, %v1637_v0   ;;  %1161 = vperm.xlu2 %1408, %v1650_v4  }
  0x95   :  { %v40_v49 = vmul.f32 %v1418_v43, %v39_v45  ;;  %v374_v39 = vand.u32 2147483648, %v1699_v47  ;;  %vm373_vm7 = vcmp.eq.f32.partialorder %v1699_v47, 0.0 }
  0x96   :  { %v693_v50 = vmul.f32 0.5, %v692_v48 }
  0x97   :  { %v41_v51 = vmul.f32 0.5, %v40_v49 }
  0x98   :  { %v694_v52 = vsub.f32 1.5, %v693_v50 }
  0x99   :  { %v42_v53 = vsub.f32 1.5, %v41_v51  ;;  %v1420_v55 = vpop.eup %1419 }
  0x9a   :  { %v695_v54 = vmul.f32 %v1416_v40, %v694_v52  ;;  %v1422_v60 = vpop.eup %1421  ;;  %v1017_v63 = vmul.f32 %v1420_v55, %v1697_v46 }
  0x9b   :  { %v43_v59 = vmul.f32 %v1418_v43, %v42_v53  ;;  %v365_v6 = vmul.f32 %v1422_v60, %v1699_v47 }
  0x9c   :  { %v696_v61 = vmul.f32 %v695_v54, %v689_v32  ;;  %v1018_v12 = vmul.f32 %v1420_v55, %v1017_v63 }
  0x9d   :  { %v44_v3 = vmul.f32 %v43_v59, %v37_v33  ;;  %v366_v15 = vmul.f32 %v1422_v60, %v365_v6 }
  0x9e   :  { %v698_v8 = vsel %vm697_vm0, %v689_v32, %v696_v61  ;;  %v1019_v19 = vmul.f32 0.5, %v1018_v12 }
  0x9f   :  { %v701_v13 = vsel %vm699_vm1, %v700_v2, %v698_v8  ;;  %v46_v14 = vsel %vm45_vm2, %v37_v33, %v44_v3  ;;  %v367_v24 = vmul.f32 0.5, %v366_v15  ;;  %v376_v33 = vstv %s1715_s30  ;;  %s2105_s30 = sld [smem:[#allocation3 + $0x83]] }
  0xa0   :  { %v703_v16 = vadd.f32 %v702_v56, %v701_v13  ;;  %v1721_v17 = vmul.f32 %v711_v57, %v701_v13  ;;  %v49_v18 = vsel %vm47_vm3, %v48_v9, %v46_v14  ;;  %v1020_v25 = vsub.f32 1.5, %v1019_v19 }
  0xa1   :  { %v51_v20 = vadd.f32 %v50_v58, %v49_v18  ;;  %v1725_v21 = vmul.f32 %v59_v62, %v49_v18  ;;  %v368_v26 = vsub.f32 1.5, %v367_v24 }
  0xa2   :  { %1423 = vrcp.f32 %v703_v16  ;;  %v1021_v27 = vmul.f32 %v1420_v55, %v1020_v25 }
  0xa3   :  { %1425 = vrcp.f32 %v51_v20  ;;  %v369_v28 = vmul.f32 %v1422_v60, %v368_v26 }
  0xa4   :  { %v1022_v32 = vmul.f32 %v1021_v27, %v1697_v46  ;;  %v732_v27 = vpop.permute.xlu0 %731 }
  0xa5   :  { %v370_v36 = vmul.f32 %v369_v28, %v1699_v47 }
  0xa6   :  { %v1024_v38 = vsel %vm1023_vm4, %v1697_v46, %v1022_v32 }
  0xa7   :  { %v1027_v42 = vsel %vm1025_vm5, %v1026_v34, %v1024_v38  ;;  %v372_v43 = vsel %vm371_vm6, %v1699_v47, %v370_v36  ;;  %v80_v36 = vpop.permute.xlu2 %79 }
  0xa8   :  { %v1424_v37 = vpop.eup %1423  ;;  %v1029_v45 = vadd.f32 %v1028_v30, %v1027_v42  ;;  %v1745_v48 = vmul.f32 %v1037_v31, %v1027_v42  ;;  %v375_v49 = vsel %vm373_vm7, %v374_v39, %v372_v43 }
  0xa9   :  { %v1426_v40 = vpop.eup %1425  ;;  %v705_v41 = vmul.f32 %v1424_v37, %v703_v16  ;;  %v377_v51 = vadd.f32 %v376_v33, %v375_v49  ;;  %v1749_v46 = vmul.f32 %v385_v35, %v375_v49 }
  0xaa   :  { %v53_v44 = vmul.f32 %v1426_v40, %v51_v20  ;;  %1427 = vrcp.f32 %v1029_v45 }
  0xab   :  { %v706_v50 = vsub.f32 2.0, %v705_v41  ;;  %1429 = vrcp.f32 %v377_v51 }
  0xac   :  { %v54_v52 = vsub.f32 2.0, %v53_v44 }
  0xad   :  { %v707_v53 = vmul.f32 %v1424_v37, %v706_v50 }
  0xae   :  { %v55_v54 = vmul.f32 %v1426_v40, %v54_v52 }
  0xaf   :  { %v708_v47 = vmul.f32 %v707_v53, %v703_v16 }
  0xb0   :  { %v56_v55 = vmul.f32 %v55_v54, %v51_v20  ;;  %v1428_v58 = vpop.eup %1427 }
  0xb1   :  { %v709_v56 = vsub.f32 2.0, %v708_v47  ;;  %v1430_v60 = vpop.eup %1429  ;;  %v1031_v63 = vmul.f32 %v1428_v58, %v1029_v45 }
  0xb2   :  { %v57_v59 = vsub.f32 2.0, %v56_v55  ;;  %v379_v3 = vmul.f32 %v1430_v60, %v377_v51 }
  0xb3   :  { %v710_v61 = vmul.f32 %v709_v56, %v707_v53  ;;  %v1032_v9 = vsub.f32 2.0, %v1031_v63 }
  0xb4   :  { %v58_v2 = vmul.f32 %v57_v59, %v55_v54  ;;  %v380_v14 = vsub.f32 2.0, %v379_v3 }
  0xb5   :  { %v712_v6 = vmul.f32 %v711_v57, %v710_v61  ;;  %v717_v8 = vmul.f32 %v710_v61, %v710_v61  ;;  %v1033_v19 = vmul.f32 %v1428_v58, %v1032_v9 }
  0xb6   :  { %v60_v12 = vmul.f32 %v59_v62, %v58_v2  ;;  %v65_v13 = vmul.f32 %v58_v2, %v58_v2  ;;  %v381_v26 = vmul.f32 %v1430_v60, %v380_v14 }
  0xb7   :  { %v713_v15 = vmul.f32 %v712_v6, %v1671_v10  ;;  %v715_v16 = vadd.f32 1.0, %v712_v6  ;;  %v718_v18 = vmul.f32 %v717_v8, %v1721_v17  ;;  %v1034_v29 = vmul.f32 %v1033_v19, %v1029_v45 }
  0xb8   :  { %v61_v20 = vmul.f32 %v60_v12, %v1674_v11  ;;  %v63_v24 = vadd.f32 1.0, %v60_v12  ;;  %v66_v25 = vmul.f32 %v65_v13, %v1725_v21  ;;  %v382_v10 = vmul.f32 %v381_v26, %v377_v51 }
  0xb9   :  { %v719_v57 = vsub.f32 %v715_v16, %v718_v18  ;;  %v720_v28 = vmul.f32 %v715_v16, %v715_v16  ;;  %v1762_v62 = vadd.f32 %v713_v15, %v1668_v7  ;;  %v1035_v34 = vsub.f32 2.0, %v1034_v29 }
  0xba   :  { %v67_v30 = vsub.f32 %v63_v24, %v66_v25  ;;  %v68_v32 = vmul.f32 %v63_v24, %v63_v24  ;;  %v1765_v33 = vadd.f32 %v61_v20, %v1668_v7  ;;  %v383_v39 = vsub.f32 2.0, %v382_v10 }
  0xbb   :  { %v721_v17 = vmul.f32 %v720_v28, %v715_v16  ;;  %v722_v11 = vmul.f32 %v720_v28, %v720_v28  ;;  %v1768_v21 = vsub.f32 %v1762_v62, %v732_v27  ;;  %v1036_v42 = vmul.f32 %v1035_v34, %v1033_v19  ;;  %v1058_v16 = vpop.permute.xlu1 %1057 }
  0xbc   :  { %v69_v37 = vmul.f32 %v68_v32, %v63_v24  ;;  %v70_v38 = vmul.f32 %v68_v32, %v68_v32  ;;  %v1771_v40 = vsub.f32 %v1765_v33, %v80_v36  ;;  %v384_v45 = vmul.f32 %v383_v39, %v381_v26 }
  0xbd   :  { %v723_v41 = vmul.f32 %v722_v11, %v721_v17  ;;  %v735_v43 = vmul.f32 %v1768_v21, %v1768_v21  ;;  %v1038_v51 = vmul.f32 %v1037_v31, %v1036_v42  ;;  %v1043_v52 = vmul.f32 %v1036_v42, %v1036_v42 }
  0xbe   :  { %v71_v44 = vmul.f32 %v70_v38, %v69_v37  ;;  %v83_v49 = vmul.f32 %v1771_v40, %v1771_v40  ;;  %v386_v54 = vmul.f32 %v385_v35, %v384_v45  ;;  %v391_v47 = vmul.f32 %v384_v45, %v384_v45 }
  0xbf   :  { %v1777_v50 = vmul.f32 %v723_v41, %v719_v57  ;;  %v1041_v56 = vadd.f32 1.0, %v1038_v51  ;;  %v1044_v58 = vmul.f32 %v1043_v52, %v1745_v48  ;;  %v736_v59 = vrot.slane %v735_v43, 4  ;;  %v406_v48 = vpop.permute.xlu2 %405 }
  0xc0   :  { %v1781_v53 = vmul.f32 %v71_v44, %v67_v30  ;;  %v84_v55 = vrot.slane %v83_v49, 4  ;;  %v1039_v60 = vmul.f32 %v1038_v51, %v1682_v22  ;;  %v387_v61 = vmul.f32 %v386_v54, %v1685_v23 }
  0xc1   :  { %v389_v63 = vadd.f32 1.0, %v386_v54  ;;  %v392_v2 = vmul.f32 %v391_v47, %v1749_v46  ;;  %v1045_v3 = vsub.f32 %v1041_v56, %v1044_v58  ;;  %v1046_v31 = vmul.f32 %v1041_v56, %v1041_v56 }
  0xc2   :  { %v85_v6 = vadd.f32 %v84_v55, %v83_v49  ;;  %v1790_v35 = vadd.f32 %v387_v61, %v1668_v7  ;;  %v737_v15 = vadd.f32 %v736_v59, %v735_v43  ;;  %v1796_v46 = vadd.f32 %v1039_v60, %v1668_v7 }
  0xc3   :  { %v393_v8 = vsub.f32 %v389_v63, %v392_v2  ;;  %v394_v9 = vmul.f32 %v389_v63, %v389_v63  ;;  %v1047_v12 = vmul.f32 %v1046_v31, %v1041_v56  ;;  %v1048_v13 = vmul.f32 %v1046_v31, %v1046_v31 }
  0xc4   :  { %v86_v14 = vrot.slane %v85_v6, 2  ;;  %v1793_v23 = vsub.f32 %v1790_v35, %v406_v48  ;;  %v738_v24 = vrot.slane %v737_v15, 2  ;;  %v1801_v27 = vsub.f32 %v1796_v46, %v1058_v16 }
  0xc5   :  { %v395_v22 = vmul.f32 %v394_v9, %v389_v63  ;;  %v396_v18 = vmul.f32 %v394_v9, %v394_v9  ;;  %v1049_v19 = vmul.f32 %v1048_v13, %v1047_v12  ;;  %v102_v31 = vstv %s1809_s5  ;;  %s2136_s5 = sld [smem:[#allocation3 + $0x183]] }
  0xc6   :  { %v87_v20 = vadd.f32 %v86_v14, %v85_v6  ;;  %v409_v26 = vmul.f32 %v1793_v23, %v1793_v23  ;;  %v739_v29 = vadd.f32 %v738_v24, %v737_v15  ;;  %v1061_v7 = vmul.f32 %v1801_v27, %v1801_v27 }
  0xc7   :  { %v397_v25 = vmul.f32 %v396_v18, %v395_v22  ;;  %v1803_v57 = vmul.f32 %v1049_v19, %v1045_v3  ;;  %v111_v6 = vstv %s1813_s6  ;;  %v754_v9 = vstv %s1816_s7  ;;  %s2138_s6 = sld [smem:[#allocation3 + $0x189]] }
  0xc8   :  { %v88_v28 = vrot.slane %v87_v20, 1  ;;  %v410_v32 = vrot.slane %v409_v26, 4  ;;  %v740_v11 = vrot.slane %v739_v29, 1  ;;  %v1062_v34 = vrot.slane %v1061_v7, 4  ;;  %s2222_s7 = sld [smem:[#allocation3 + $0x4]] }
  0xc9   :  { %v1805_v30 = vmul.f32 %v397_v25, %v393_v8  ;;  %v763_v16 = vstv %s1820_s8  ;;  %s2224_s8 = sld [smem:[#allocation3 + $0xa]] }
  0xca   :  { %v89_v10 = vadd.f32 %v88_v28, %v87_v20  ;;  %v411_v17 = vadd.f32 %v410_v32, %v409_v26  ;;  %v741_v37 = vadd.f32 %v740_v11, %v739_v29  ;;  %v1063_v38 = vadd.f32 %v1062_v34, %v1061_v7 }
  0xcc   :  { %1431 = vrsqrt.f32 %v89_v10  ;;  %v412_v36 = vrot.slane %v411_v17, 2  ;;  %v1064_v41 = vrot.slane %v1063_v38, 2  ;;  %vm97_vm8 = vcmp.eq.f32.partialorder %v89_v10, inf }
  0xcd   :  { %1433 = vrsqrt.f32 %v741_v37  ;;  %v100_v13 = vand.u32 2147483648, %v89_v10  ;;  %vm99_vm9 = vcmp.eq.f32.partialorder %v89_v10, 0.0  ;;  %vm749_vm10 = vcmp.eq.f32.partialorder %v741_v37, inf }
  0xce   :  { %v413_v39 = vadd.f32 %v412_v36, %v411_v17  ;;  %v1065_v44 = vadd.f32 %v1064_v41, %v1063_v38  ;;  %v752_v26 = vand.u32 2147483648, %v741_v37  ;;  %vm751_vm11 = vcmp.eq.f32.partialorder %v741_v37, 0.0 }
  0xcf   :  { %v428_v38 = vstv %s1826_s9  ;;  %s2226_s9 = sld [smem:[#allocation3 + $0x84]] }
  0xd0   :  { %v414_v42 = vrot.slane %v413_v39, 1  ;;  %v1066_v51 = vrot.slane %v1065_v44, 1 }
  0xd2   :  { %v1432_v43 = vpop.eup %1431  ;;  %v1811_v49 = vadd.f32 %v414_v42, %v413_v39  ;;  %v1818_v55 = vadd.f32 %v1066_v51, %v1065_v44  ;;  %v437_v39 = vstv %s1829_s10  ;;  %v1080_v44 = vstv %s1833_s11  ;;  %s2229_s10 = sld [smem:[#allocation3 + $0x8a]] }
  0xd3   :  { %v91_v45 = vmul.f32 %v1432_v43, %v89_v10  ;;  %v1434_v52 = vpop.eup %1433  ;;  %s2232_s11 = sld [smem:[#allocation3 + $0x104]] }
  0xd4   :  { %1435 = vrsqrt.f32 %v1811_v49  ;;  %v743_v47 = vmul.f32 %v1434_v52, %v741_v37  ;;  %vm423_vm12 = vcmp.eq.f32.partialorder %v1811_v49, inf  ;;  %vm425_vm13 = vcmp.eq.f32.partialorder %v1811_v49, 0.0 }
  0xd5   :  { %v92_v54 = vmul.f32 %v1432_v43, %v91_v45  ;;  %1437 = vrsqrt.f32 %v1818_v55  ;;  %v1608_v45 = vmov 4   ;;  %vm1075_vm14 = vcmp.eq.f32.partialorder %v1818_v55, inf }
  0xd6   :  { %v744_v58 = vmul.f32 %v1434_v52, %v743_v47  ;;  %1410 = vset.pattern.permute.xlu1 %v1608_v45  ;;  %1409 = vset.pattern.permute.xlu0 %v1608_v45  ;;  %vm1077_vm15 = vcmp.eq.f32.partialorder %v1818_v55, 0.0 }
  0xd7   :  { %v93_v56 = vmul.f32 0.5, %v92_v54  ;;  %v1089_v54 = vstv %s1839_s12  ;;  %561 = vperm.xlu1 %1410, %v1655_v5   ;;  %235 = vperm.xlu0 %1409, %v1642_v1   ;;  %s2234_s12 = sld [smem:[#allocation3 + $0x10a]] }
  0xd8   :  { %v745_v60 = vmul.f32 0.5, %v744_v58  ;;  %1411 = vset.pattern.permute.xlu2 %v1608_v45 }
  0xd9   :  { %v94_v59 = vsub.f32 1.5, %v93_v56  ;;  %887 = vperm.xlu2 %1411, %v1637_v0  }
  0xda   :  { %v1436_v61 = vpop.eup %1435  ;;  %v746_v3 = vsub.f32 1.5, %v745_v60 }
  0xdb   :  { %v95_v63 = vmul.f32 %v1432_v43, %v94_v59  ;;  %v417_v2 = vmul.f32 %v1436_v61, %v1811_v49  ;;  %v1438_v12 = vpop.eup %1437  ;;  %v1078_v59 = vand.u32 2147483648, %v1818_v55 }
  0xdc   :  { %v747_v48 = vmul.f32 %v1434_v52, %v746_v3  ;;  %v1069_v22 = vmul.f32 %v1438_v12, %v1818_v55 }
  0xdd   :  { %v96_v8 = vmul.f32 %v95_v63, %v89_v10  ;;  %v418_v14 = vmul.f32 %v1436_v61, %v417_v2 }
  0xde   :  { %v748_v20 = vmul.f32 %v747_v48, %v741_v37  ;;  %v1070_v28 = vmul.f32 %v1438_v12, %v1069_v22  ;;  %v132_v48 = vpop.permute.xlu2 %131 }
  0xdf   :  { %v98_v15 = vsel %vm97_vm8, %v89_v10, %v96_v8  ;;  %v419_v19 = vmul.f32 0.5, %v418_v14  ;;  %1213 = vperm.xlu1 %1410, %v1650_v4  }
  0xe0   :  { %v101_v18 = vsel %vm99_vm9, %v100_v13, %v98_v15  ;;  %v750_v32 = vsel %vm749_vm10, %v741_v37, %v748_v20  ;;  %v1071_v10 = vmul.f32 0.5, %v1070_v28  ;;  %v426_v37 = vand.u32 2147483648, %v1811_v49 }
  0xe1   :  { %v103_v24 = vadd.f32 %v102_v31, %v101_v18  ;;  %v1837_v25 = vmul.f32 %v111_v6, %v101_v18  ;;  %v420_v29 = vsub.f32 1.5, %v419_v19  ;;  %v753_v7 = vsel %vm751_vm11, %v752_v26, %v750_v32 }
  0xe2   :  { %v755_v11 = vadd.f32 %v754_v9, %v753_v7  ;;  %v1843_v34 = vmul.f32 %v763_v16, %v753_v7  ;;  %v1072_v36 = vsub.f32 1.5, %v1071_v10 }
  0xe3   :  { %1439 = vrcp.f32 %v103_v24  ;;  %v421_v17 = vmul.f32 %v1436_v61, %v420_v29 }
  0xe4   :  { %1441 = vrcp.f32 %v755_v11  ;;  %v1073_v42 = vmul.f32 %v1438_v12, %v1072_v36 }
  0xe5   :  { %v422_v41 = vmul.f32 %v421_v17, %v1811_v49 }
  0xe6   :  { %v1074_v47 = vmul.f32 %v1073_v42, %v1818_v55 }
  0xe7   :  { %v424_v43 = vsel %vm423_vm12, %v1811_v49, %v422_v41 }
  0xe8   :  { %v427_v52 = vsel %vm425_vm13, %v426_v37, %v424_v43  ;;  %v1076_v60 = vsel %vm1075_vm14, %v1818_v55, %v1074_v47 }
  0xe9   :  { %v1440_v51 = vpop.eup %1439  ;;  %v429_v58 = vadd.f32 %v428_v38, %v427_v52  ;;  %v1860_v49 = vmul.f32 %v437_v39, %v427_v52  ;;  %v1079_v5 = vsel %vm1077_vm15, %v1078_v59, %v1076_v60 }
  0xea   :  { %v105_v56 = vmul.f32 %v1440_v51, %v103_v24  ;;  %v1442_v61 = vpop.eup %1441  ;;  %v1081_v1 = vadd.f32 %v1080_v44, %v1079_v5  ;;  %v1868_v3 = vmul.f32 %v1089_v54, %v1079_v5 }
  0xeb   :  { %1443 = vrcp.f32 %v429_v58  ;;  %v757_v2 = vmul.f32 %v1442_v61, %v755_v11 }
  0xec   :  { %v106_v63 = vsub.f32 2.0, %v105_v56  ;;  %1445 = vrcp.f32 %v1081_v1  ;;  %v784_v56 = vpop.permute.xlu2 %783 }
  0xed   :  { %v758_v8 = vsub.f32 2.0, %v757_v2  ;;  %1447 = vlog2.f32 %v1781_v53 }
  0xee   :  { %v107_v31 = vmul.f32 %v1440_v51, %v106_v63  ;;  %1449 = vlog2.f32 %v1777_v50 }
  0xef   :  { %v759_v12 = vmul.f32 %v1442_v61, %v758_v8 }
  0xf0   :  { %v108_v9 = vmul.f32 %v107_v31, %v103_v24 }
  0xf1   :  { %v1444_v55 = vpop.eup %1443  ;;  %v760_v14 = vmul.f32 %v759_v12, %v755_v11 }
  0xf2   :  { %v109_v13 = vsub.f32 2.0, %v108_v9  ;;  %v431_v0 = vmul.f32 %v1444_v55, %v429_v58  ;;  %v1446_v22 = vpop.eup %1445 }
  0xf3   :  { %v761_v19 = vsub.f32 2.0, %v760_v14  ;;  %v1083_v28 = vmul.f32 %v1446_v22, %v1081_v1  ;;  %v1448_v59 = vpop.eup %1447 }
  0xf4   :  { %v110_v15 = vmul.f32 %v109_v13, %v107_v31  ;;  %v432_v18 = vsub.f32 2.0, %v431_v0 }
  0xf5   :  { %v762_v32 = vmul.f32 %v761_v19, %v759_v12  ;;  %v1084_v10 = vsub.f32 2.0, %v1083_v28  ;;  %v74_v28 = vmul.f32 0.6931472, %v1448_v59 }
  0xf6   :  { %v112_v20 = vmul.f32 %v111_v6, %v110_v15  ;;  %v117_v26 = vmul.f32 %v110_v15, %v110_v15  ;;  %v433_v29 = vmul.f32 %v1444_v55, %v432_v18 }
  0xf7   :  { %v764_v11 = vmul.f32 %v763_v16, %v762_v32  ;;  %v769_v36 = vmul.f32 %v762_v32, %v762_v32  ;;  %v1085_v37 = vmul.f32 %v1446_v22, %v1084_v10  ;;  %v1450_v22 = vpop.eup %1449 }
  0xf8   :  { %v113_v24 = vmul.f32 %v112_v20, %v1771_v40  ;;  %v115_v7 = vadd.f32 1.0, %v112_v20  ;;  %v118_v4 = vmul.f32 %v117_v26, %v1837_v25  ;;  %v434_v17 = vmul.f32 %v433_v29, %v429_v58 }
  0xf9   :  { %v765_v43 = vmul.f32 %v764_v11, %v1768_v21  ;;  %v767_v40 = vadd.f32 1.0, %v764_v11  ;;  %v770_v25 = vmul.f32 %v769_v36, %v1843_v34  ;;  %v1086_v53 = vmul.f32 %v1085_v37, %v1081_v1 }
  0xfa   :  { %v119_v38 = vsub.f32 %v115_v7, %v118_v4  ;;  %v120_v41 = vmul.f32 %v115_v7, %v115_v7  ;;  %v1879_v6 = vadd.f32 %v113_v24, %v1765_v33  ;;  %v435_v42 = vsub.f32 2.0, %v434_v17  ;;  %v458_v24 = vpop.permute.xlu1 %457  ;;  %v1110_v17 = vpop.permute.xlu0 %1109 }
  0xfb   :  { %v771_v52 = vsub.f32 %v767_v40, %v770_v25  ;;  %v772_v47 = vmul.f32 %v767_v40, %v767_v40  ;;  %v1887_v33 = vadd.f32 %v765_v43, %v1762_v62  ;;  %v1087_v58 = vsub.f32 2.0, %v1086_v53 }
  0xfc   :  { %v121_v44 = vmul.f32 %v120_v41, %v115_v7  ;;  %v122_v45 = vmul.f32 %v120_v41, %v120_v41  ;;  %v1884_v51 = vsub.f32 %v1879_v6, %v132_v48  ;;  %v436_v16 = vmul.f32 %v435_v42, %v433_v29 }
  0xfd   :  { %v773_v63 = vmul.f32 %v772_v47, %v767_v40  ;;  %v774_v5 = vmul.f32 %v772_v47, %v772_v47  ;;  %v1088_v1 = vmul.f32 %v1087_v58, %v1085_v37  ;;  %v1895_v62 = vsub.f32 %v1887_v33, %v784_v56 }
  0xfe   :  { %v123_v21 = vmul.f32 %v122_v45, %v121_v44  ;;  %v135_v34 = vmul.f32 %v1884_v51, %v1884_v51  ;;  %v438_v60 = vmul.f32 %v437_v39, %v436_v16  ;;  %v443_v61 = vmul.f32 %v436_v16, %v436_v16 }
  0xff   :  { %v775_v12 = vmul.f32 %v774_v5, %v773_v63  ;;  %v1090_v55 = vmul.f32 %v1089_v54, %v1088_v1  ;;  %v1095_v13 = vmul.f32 %v1088_v1, %v1088_v1  ;;  %v787_v15 = vmul.f32 %v1895_v62, %v1895_v62 }
 0x100   :  { %v124_v2 = vmul.f32 %v123_v21, %v119_v38  ;;  %v136_v31 = vrot.slane %v135_v34, 4  ;;  %v439_v50 = vmul.f32 %v438_v60, %v1793_v23  ;;  %v441_v8 = vadd.f32 1.0, %v438_v60 }
 0x101   :  { %v444_v9 = vmul.f32 %v443_v61, %v1860_v49  ;;  %v776_v48 = vmul.f32 %v775_v12, %v771_v52  ;;  %v1091_v18 = vmul.f32 %v1090_v55, %v1801_v27  ;;  %v1093_v19 = vadd.f32 1.0, %v1090_v55 }
 0x102   :  { %1451 = vlog2.f32 %v124_v2  ;;  %v137_v39 = vadd.f32 %v136_v31, %v135_v34  ;;  %v446_v14 = vmul.f32 %v441_v8, %v441_v8  ;;  %v1096_v23 = vmul.f32 %v1095_v13, %v1868_v3 }
 0x103   :  { %v445_v0 = vsub.f32 %v441_v8, %v444_v9  ;;  %1453 = vlog2.f32 %v776_v48  ;;  %v1098_v29 = vmul.f32 %v1093_v19, %v1093_v19  ;;  %v788_v4 = vrot.slane %v787_v15, 4 }
 0x104   :  { %v138_v20 = vrot.slane %v137_v39, 2  ;;  %v447_v49 = vmul.f32 %v446_v14, %v441_v8  ;;  %v448_v26 = vmul.f32 %v446_v14, %v446_v14  ;;  %v1097_v54 = vsub.f32 %v1093_v19, %v1096_v23 }
 0x105   :  { %v1906_v10 = vadd.f32 %v439_v50, %v1790_v35  ;;  %v1909_v27 = vadd.f32 %v1091_v18, %v1796_v46  ;;  %1455 = vlog2.f32 %v1805_v30  ;;  %v1099_v3 = vmul.f32 %v1098_v29, %v1093_v19 }
 0x106   :  { %v139_v32 = vadd.f32 %v138_v20, %v137_v39  ;;  %v449_v7 = vmul.f32 %v448_v26, %v447_v49  ;;  %v1100_v36 = vmul.f32 %v1098_v29, %v1098_v29  ;;  %v789_v42 = vadd.f32 %v788_v4, %v787_v15 }
 0x107   :  { %v1913_v43 = vsub.f32 %v1906_v10, %v458_v24  ;;  %1457 = vlog2.f32 %v1803_v57  ;;  %v1919_v46 = vsub.f32 %v1909_v27, %v1110_v17  ;;  %v726_v53 = vmul.f32 0.6931472, %v1450_v22 }
 0x108   :  { %v1452_v11 = vpop.eup %1451  ;;  %v140_v38 = vrot.slane %v139_v32, 1  ;;  %v450_v37 = vmul.f32 %v449_v7, %v445_v0  ;;  %v1101_v35 = vmul.f32 %v1100_v36, %v1099_v3  ;;  %v790_v30 = vrot.slane %v789_v42, 2 }
 0x109   :  { %v126_v41 = vmul.f32 0.6931472, %v1452_v11  ;;  %v1454_v25 = vpop.eup %1453  ;;  %v461_v45 = vmul.f32 %v1913_v43, %v1913_v43  ;;  %v1113_v58 = vmul.f32 %v1919_v46, %v1919_v46  ;;  %v163_v4 = vstv %s1938_s14  ;;  %s2270_s14 = sld [smem:[#allocation3 + $0x18a]] }
 0x10a   :  { %v1916_v40 = vadd.f32 %v140_v38, %v139_v32  ;;  %1459 = vlog2.f32 %v450_v37  ;;  %v778_v16 = vmul.f32 0.6931472, %v1454_v25  ;;  %v1102_v52 = vmul.f32 %v1101_v35, %v1097_v54 }
 0x10b   :  { %v1921_v44 = vadd.f32 %v126_v41, %v74_v28  ;;  %v791_v57 = vadd.f32 %v790_v30, %v789_v42  ;;  %v462_v47 = vrot.slane %v461_v45, 4  ;;  %v1456_v56 = vpop.eup %1455  ;;  %v1114_v2 = vrot.slane %v1113_v58, 4 }
 0x10c   :  { %1461 = vrsqrt.f32 %v1916_v40  ;;  %v1926_v21 = vadd.f32 %v778_v16, %v726_v53  ;;  %v400_v31 = vmul.f32 0.6931472, %v1456_v56  ;;  %v154_v32 = vstv %s1936_s13  ;;  %s2268_s13 = sld [smem:[#allocation3 + $0x184]] }
 0x10d   :  { %1463 = vlog2.f32 %v1102_v52  ;;  %v792_v34 = vrot.slane %v791_v57, 1  ;;  %v463_v59 = vadd.f32 %v462_v47, %v461_v45  ;;  %v1458_v60 = vpop.eup %1457  ;;  %v1115_v13 = vadd.f32 %v1114_v2, %v1113_v58 }
 0x10e   :  { %v1052_v39 = vmul.f32 0.6931472, %v1458_v60  ;;  %vm149_vm0 = vcmp.eq.f32.partialorder %v1916_v40, inf  ;;  %v152_v17 = vand.u32 2147483648, %v1916_v40  ;;  %vm151_vm1 = vcmp.eq.f32.partialorder %v1916_v40, 0.0 }
 0x10f   :  { %v1930_v63 = vadd.f32 %v792_v34, %v791_v57  ;;  %v464_v5 = vrot.slane %v463_v59, 2  ;;  %v1116_v15 = vrot.slane %v1115_v13, 2  ;;  %v806_v30 = vstv %s1946_s15  ;;  %s1350_s15 = sld [smem:[#allocation3 + $0x5]] }
 0x110   :  { %v1460_v61 = vpop.eup %1459  ;;  %v815_v16 = vstv %s1950_s16  ;;  %s2347_s16 = sld [smem:[#allocation3 + $0x105]] }
 0x111   :  { %v452_v50 = vmul.f32 0.6931472, %v1460_v61  ;;  %1465 = vrsqrt.f32 %v1930_v63  ;;  %v465_v55 = vadd.f32 %v464_v5, %v463_v59  ;;  %v1117_v23 = vadd.f32 %v1116_v15, %v1115_v13 }
 0x112   :  { %v1462_v1 = vpop.eup %1461  ;;  %vm801_vm2 = vcmp.eq.f32.partialorder %v1930_v63, inf  ;;  %v804_v52 = vand.u32 2147483648, %v1930_v63  ;;  %vm803_vm3 = vcmp.eq.f32.partialorder %v1930_v63, 0.0 }
 0x113   :  { %v143_v8 = vmul.f32 %v1462_v1, %v1916_v40  ;;  %v1464_v9 = vpop.eup %1463  ;;  %v1934_v12 = vadd.f32 %v452_v50, %v400_v31  ;;  %v466_v48 = vrot.slane %v465_v55, 1  ;;  %v1118_v54 = vrot.slane %v1117_v23, 1 }
 0x114   :  { %v1104_v0 = vmul.f32 0.6931472, %v1464_v9  ;;  %v489_v50 = vstv %s1967_s18  ;;  %s2357_s18 = sld [smem:[#allocation3 + $0x185]] }
 0x115   :  { %v144_v14 = vmul.f32 %v1462_v1, %v143_v8  ;;  %v1942_v19 = vadd.f32 %v466_v48, %v465_v55  ;;  %v1952_v7 = vadd.f32 %v1118_v54, %v1117_v23 }
 0x116   :  { %v1940_v22 = vadd.f32 %v1104_v0, %v1052_v39 }
 0x117   :  { %v145_v18 = vmul.f32 0.5, %v144_v14  ;;  %v1466_v20 = vpop.eup %1465  ;;  %1467 = vrsqrt.f32 %v1942_v19  ;;  %vm475_vm4 = vcmp.eq.f32.partialorder %v1942_v19, inf  ;;  %v478_v55 = vand.u32 2147483648, %v1942_v19 }
 0x118   :  { %v795_v26 = vmul.f32 %v1466_v20, %v1930_v63  ;;  %1469 = vrsqrt.f32 %v1952_v7  ;;  %vm477_vm5 = vcmp.eq.f32.partialorder %v1942_v19, 0.0  ;;  %vm1127_vm6 = vcmp.eq.f32.partialorder %v1952_v7, inf }
 0x119   :  { %v146_v49 = vsub.f32 1.5, %v145_v18  ;;  %vm1129_vm7 = vcmp.eq.f32.partialorder %v1952_v7, 0.0 }
 0x11a   :  { %v796_v29 = vmul.f32 %v1466_v20, %v795_v26  ;;  %v1141_v26 = vstv %s1983_s0  ;;  %s2369_s0 = sld [smem:[#allocation3 + $0x10b]] }
 0x11b   :  { %v147_v28 = vmul.f32 %v1462_v1, %v146_v49  ;;  %v1132_v49 = vstv %s1977_s19  ;;  %s1351_s19 = sld [smem:[#allocation3 + $0xb]] }
 0x11c   :  { %v797_v11 = vmul.f32 0.5, %v796_v29 }
 0x11d   :  { %v148_v24 = vmul.f32 %v147_v28, %v1916_v40  ;;  %v1468_v36 = vpop.eup %1467 }
 0x11e   :  { %v798_v41 = vsub.f32 1.5, %v797_v11  ;;  %v469_v35 = vmul.f32 %v1468_v36, %v1942_v19  ;;  %v1470_v53 = vpop.eup %1469 }
 0x11f   :  { %v150_v3 = vsel %vm149_vm0, %v1916_v40, %v148_v24  ;;  %v1121_v56 = vmul.f32 %v1470_v53, %v1952_v7 }
 0x120   :  { %v153_v38 = vsel %vm151_vm1, %v152_v17, %v150_v3  ;;  %v799_v25 = vmul.f32 %v1466_v20, %v798_v41  ;;  %v470_v40 = vmul.f32 %v1468_v36, %v469_v35  ;;  %v184_v35 = vpop.permute.xlu1 %183 }
 0x121   :  { %v155_v37 = vadd.f32 %v154_v32, %v153_v38  ;;  %v1962_v42 = vmul.f32 %v163_v4, %v153_v38  ;;  %v1122_v61 = vmul.f32 %v1470_v53, %v1121_v56 }
 0x122   :  { %v800_v45 = vmul.f32 %v799_v25, %v1930_v63  ;;  %v471_v57 = vmul.f32 0.5, %v470_v40 }
 0x123   :  { %1471 = vrcp.f32 %v155_v37  ;;  %v1123_v31 = vmul.f32 0.5, %v1122_v61 }
 0x124   :  { %v802_v47 = vsel %vm801_vm2, %v1930_v63, %v800_v45  ;;  %v472_v34 = vsub.f32 1.5, %v471_v57  ;;  %v480_v63 = vstv %s1965_s17  ;;  %s2352_s17 = sld [smem:[#allocation3 + $0x85]] }
 0x125   :  { %v805_v58 = vsel %vm803_vm3, %v804_v52, %v802_v47  ;;  %v1124_v13 = vsub.f32 1.5, %v1123_v31 }
 0x126   :  { %v807_v59 = vadd.f32 %v806_v30, %v805_v58  ;;  %v1981_v60 = vmul.f32 %v815_v16, %v805_v58  ;;  %v473_v2 = vmul.f32 %v1468_v36, %v472_v34 }
 0x127   :  { %v1125_v48 = vmul.f32 %v1470_v53, %v1124_v13 }
 0x128   :  { %1473 = vrcp.f32 %v807_v59  ;;  %v474_v8 = vmul.f32 %v473_v2, %v1942_v19 }
 0x129   :  { %v1472_v5 = vpop.eup %1471  ;;  %v1126_v28 = vmul.f32 %v1125_v48, %v1952_v7 }
 0x12a   :  { %v157_v1 = vmul.f32 %v1472_v5, %v155_v37  ;;  %v476_v39 = vsel %vm475_vm4, %v1942_v19, %v474_v8  ;;  %v1130_v19 = vand.u32 2147483648, %v1952_v7 }
 0x12b   :  { %v479_v14 = vsel %vm477_vm5, %v478_v55, %v476_v39  ;;  %v1128_v32 = vsel %vm1127_vm6, %v1952_v7, %v1126_v28 }
 0x12c   :  { %v158_v9 = vsub.f32 2.0, %v157_v1  ;;  %v481_v15 = vadd.f32 %v480_v63, %v479_v14  ;;  %v1994_v18 = vmul.f32 %v489_v50, %v479_v14  ;;  %v1131_v17 = vsel %vm1129_vm7, %v1130_v19, %v1128_v32  ;;  %v1559_v63 = vld [vmem:[%s2401_s2 + $0x10] sm:$0xff] }
 0x12d   :  { %v1133_v3 = vadd.f32 %v1132_v49, %v1131_v17  ;;  %v2005_v36 = vmul.f32 %v1141_v26, %v1131_v17 }
 0x12e   :  { %v159_v0 = vmul.f32 %v1472_v5, %v158_v9  ;;  %v1474_v23 = vpop.eup %1473  ;;  %1475 = vrcp.f32 %v481_v15  ;;  %v1560_v9 = vld [vmem:[%s2401_s2 + $0x8] sm:$0xff] }
 0x12f   :  { %v809_v54 = vmul.f32 %v1474_v23, %v807_v59  ;;  %1477 = vrcp.f32 %v1133_v3 }
 0x130   :  { %v160_v20 = vmul.f32 %v159_v0, %v155_v37 }
 0x131   :  { %v810_v24 = vsub.f32 2.0, %v809_v54 }
 0x132   :  { %v161_v29 = vsub.f32 2.0, %v160_v20 }
 0x133   :  { %v811_v38 = vmul.f32 %v1474_v23, %v810_v24  ;;  %v836_v23 = vpop.permute.xlu1 %835 }
 0x134   :  { %v162_v11 = vmul.f32 %v161_v29, %v159_v0  ;;  %v1476_v25 = vpop.eup %1475  ;;  %v1561_v0 = vld [vmem:[%s2401_s2] sm:$0xff] }
 0x135   :  { %v812_v40 = vmul.f32 %v811_v38, %v807_v59  ;;  %v483_v53 = vmul.f32 %v1476_v25, %v481_v15  ;;  %v1478_v34 = vpop.eup %1477 }
 0x136   :  { %v164_v41 = vmul.f32 %v163_v4, %v162_v11  ;;  %v169_v37 = vmul.f32 %v162_v11, %v162_v11  ;;  %v1135_v31 = vmul.f32 %v1478_v34, %v1133_v3 }
 0x137   :  { %v813_v52 = vsub.f32 2.0, %v812_v40  ;;  %v484_v56 = vsub.f32 2.0, %v483_v53 }
 0x138   :  { %v165_v30 = vmul.f32 %v164_v41, %v1884_v51  ;;  %v167_v45 = vadd.f32 1.0, %v164_v41  ;;  %v170_v7 = vmul.f32 %v169_v37, %v1962_v42  ;;  %v1609_v51 = vmov 5  }
 0x139   :  { %v814_v4 = vmul.f32 %v813_v52, %v811_v38  ;;  %v485_v2 = vmul.f32 %v1476_v25, %v484_v56  ;;  %1414 = vset.pattern.permute.xlu1 %v1609_v51  ;;  %1413 = vset.pattern.permute.xlu0 %v1609_v51  ;;  %v1136_v39 = vsub.f32 2.0, %v1135_v31 }
 0x13a   :  { %v171_v57 = vsub.f32 %v167_v45, %v170_v7  ;;  %v172_v47 = vmul.f32 %v167_v45, %v167_v45  ;;  %v2012_v58 = vadd.f32 %v165_v30, %v1879_v6  ;;  %939 = vperm.xlu1 %1414, %v1559_v63   ;;  %613 = vperm.xlu0 %1413, %v1560_v9   ;;  %v510_v7 = vpop.permute.xlu2 %509 }
 0x13b   :  { %v816_v42 = vmul.f32 %v815_v16, %v814_v4  ;;  %v821_v1 = vmul.f32 %v814_v4, %v814_v4  ;;  %v486_v8 = vmul.f32 %v485_v2, %v481_v15  ;;  %1412 = vset.pattern.permute.xlu2 %v1609_v51  ;;  %v1137_v28 = vmul.f32 %v1478_v34, %v1136_v39 }
 0x13c   :  { %v173_v61 = vmul.f32 %v172_v47, %v167_v45  ;;  %v174_v5 = vmul.f32 %v172_v47, %v172_v47  ;;  %v2015_v59 = vsub.f32 %v2012_v58, %v184_v35  ;;  %287 = vperm.xlu2 %1412, %v1561_v0  }
 0x13d   :  { %v817_v55 = vmul.f32 %v816_v42, %v1895_v62  ;;  %v819_v13 = vadd.f32 1.0, %v816_v42  ;;  %v822_v16 = vmul.f32 %v821_v1, %v1981_v60  ;;  %v487_v48 = vsub.f32 2.0, %v486_v8 }
 0x13e   :  { %v175_v6 = vmul.f32 %v174_v5, %v173_v61  ;;  %v187_v15 = vmul.f32 %v2015_v59, %v2015_v59  ;;  %v1138_v32 = vmul.f32 %v1137_v28, %v1133_v3 }
 0x13f   :  { %v823_v20 = vsub.f32 %v819_v13, %v822_v16  ;;  %v824_v49 = vmul.f32 %v819_v13, %v819_v13  ;;  %v2033_v62 = vadd.f32 %v817_v55, %v1887_v33  ;;  %v488_v60 = vmul.f32 %v487_v48, %v485_v2 }
 0x140   :  { %v176_v14 = vmul.f32 %v175_v6, %v171_v57  ;;  %v188_v54 = vrot.slane %v187_v15, 4  ;;  %v1139_v37 = vsub.f32 2.0, %v1138_v32 }
 0x141   :  { %v825_v19 = vmul.f32 %v824_v49, %v819_v13  ;;  %v826_v29 = vmul.f32 %v824_v49, %v824_v49  ;;  %v2036_v24 = vsub.f32 %v2033_v62, %v836_v23  ;;  %v490_v17 = vmul.f32 %v489_v50, %v488_v60  ;;  %v1562_v50 = vld [vmem:[%s2401_s2 + $0x18] sm:$0xff]  ;;  %s2079_s2 = sld [smem:[#allocation3 + $0x3]] }
 0x142   :  { %1479 = vlog2.f32 %v176_v14  ;;  %v495_v11 = vmul.f32 %v488_v60, %v488_v60  ;;  %v189_v38 = vadd.f32 %v188_v54, %v187_v15  ;;  %v1140_v45 = vmul.f32 %v1139_v37, %v1137_v28  ;;  %v1162_v23 = vpop.permute.xlu2 %1161 }
 0x143   :  { %v827_v41 = vmul.f32 %v826_v29, %v825_v19  ;;  %v839_v35 = vmul.f32 %v2036_v24, %v2036_v24  ;;  %v491_v33 = vmul.f32 %v490_v17, %v1913_v43  ;;  %v493_v25 = vadd.f32 1.0, %v490_v17 }
 0x144   :  { %v496_v40 = vmul.f32 %v495_v11, %v1994_v18  ;;  %v190_v30 = vrot.slane %v189_v38, 2  ;;  %1265 = vperm.xlu2 %1412, %v1562_v50   ;;  %v1142_v18 = vmul.f32 %v1141_v26, %v1140_v45  ;;  %v1147_v34 = vmul.f32 %v1140_v45, %v1140_v45 }
 0x145   :  { %v828_v3 = vmul.f32 %v827_v41, %v823_v20  ;;  %v840_v53 = vrot.slane %v839_v35, 4  ;;  %v498_v47 = vmul.f32 %v493_v25, %v493_v25  ;;  %v2048_v43 = vadd.f32 %v491_v33, %v1906_v10 }
 0x146   :  { %v497_v57 = vsub.f32 %v493_v25, %v496_v40  ;;  %v191_v56 = vadd.f32 %v190_v30, %v189_v38  ;;  %v1145_v1 = vadd.f32 1.0, %v1142_v18  ;;  %v1148_v31 = vmul.f32 %v1147_v34, %v2005_v36 }
 0x147   :  { %1481 = vlog2.f32 %v828_v3  ;;  %v499_v61 = vmul.f32 %v498_v47, %v493_v25  ;;  %v500_v5 = vmul.f32 %v498_v47, %v498_v47  ;;  %v2053_v51 = vsub.f32 %v2048_v43, %v510_v7 }
 0x148   :  { %v1480_v52 = vpop.eup %1479  ;;  %v192_v2 = vrot.slane %v191_v56, 1  ;;  %v1143_v10 = vmul.f32 %v1142_v18, %v1919_v46  ;;  %v1149_v8 = vsub.f32 %v1145_v1, %v1148_v31  ;;  %v1150_v9 = vmul.f32 %v1145_v1, %v1145_v1 }
 0x149   :  { %v178_v4 = vmul.f32 0.6931472, %v1480_v52  ;;  %v501_v63 = vmul.f32 %v500_v5, %v499_v61  ;;  %v513_v26 = vmul.f32 %v2053_v51, %v2053_v51  ;;  %v841_v55 = vadd.f32 %v840_v53, %v839_v35 }
 0x14a   :  { %v2060_v6 = vadd.f32 %v192_v2, %v191_v56  ;;  %v1152_v39 = vmul.f32 %v1150_v9, %v1150_v9  ;;  %v2066_v46 = vadd.f32 %v1143_v10, %v1909_v27  ;;  %v206_v47 = vstv %s2079_s2 }
 0x14b   :  { %v2056_v42 = vadd.f32 %v178_v4, %v1921_v44  ;;  %v502_v13 = vmul.f32 %v501_v63, %v497_v57  ;;  %v1151_v44 = vmul.f32 %v1150_v9, %v1145_v1  ;;  %v514_v0 = vrot.slane %v513_v26, 4 }
 0x14c   :  { %1483 = vrsqrt.f32 %v2060_v6  ;;  %v842_v36 = vrot.slane %v841_v55, 2  ;;  %v2072_v28 = vsub.f32 %v2066_v46, %v1162_v23  ;;  %v215_v4 = vstv %s2081_s27 }
 0x14d   :  { %v1482_v16 = vpop.eup %1481  ;;  %1485 = vlog2.f32 %v502_v13  ;;  %v1153_v48 = vmul.f32 %v1152_v39, %v1151_v44  ;;  %v515_v15 = vadd.f32 %v514_v0, %v513_v26  ;;  %vm201_vm8 = vcmp.eq.f32.partialorder %v2060_v6, inf }
 0x14e   :  { %v830_v14 = vmul.f32 0.6931472, %v1482_v16  ;;  %v843_v49 = vadd.f32 %v842_v36, %v841_v55  ;;  %v1165_v38 = vmul.f32 %v2072_v28, %v2072_v28  ;;  %v204_v18 = vand.u32 2147483648, %v2060_v6 }
 0x14f   :  { %v1154_v60 = vmul.f32 %v1153_v48, %v1149_v8  ;;  %v516_v54 = vrot.slane %v515_v15, 2  ;;  %vm203_vm9 = vcmp.eq.f32.partialorder %v2060_v6, 0.0  ;;  %v858_v44 = vstv %s2099_s28 }
 0x150   :  { %v2069_v20 = vadd.f32 %v830_v14, %v1926_v21  ;;  %v844_v29 = vrot.slane %v843_v49, 1  ;;  %v1166_v40 = vrot.slane %v1165_v38, 4  ;;  %v867_v14 = vstv %s2103_s29 }
 0x151   :  { %1487 = vlog2.f32 %v1154_v60  ;;  %v517_v17 = vadd.f32 %v516_v54, %v515_v15  ;;  %v532_v15 = vstv %s2105_s30  ;;  %v541_v23 = vstv %s2112_s4 }
 0x152   :  { %v1484_v19 = vpop.eup %1483  ;;  %v2075_v11 = vadd.f32 %v844_v29, %v843_v49  ;;  %v1167_v7 = vadd.f32 %v1166_v40, %v1165_v38 }
 0x153   :  { %v195_v32 = vmul.f32 %v1484_v19, %v2060_v6  ;;  %v1486_v27 = vpop.eup %1485  ;;  %v518_v37 = vrot.slane %v517_v17, 1 }
 0x154   :  { %v504_v21 = vmul.f32 0.6931472, %v1486_v27  ;;  %1489 = vrsqrt.f32 %v2075_v11  ;;  %v1168_v57 = vrot.slane %v1167_v7, 2  ;;  %vm853_vm10 = vcmp.eq.f32.partialorder %v2075_v11, inf }
 0x155   :  { %v196_v41 = vmul.f32 %v1484_v19, %v195_v32  ;;  %v2087_v25 = vadd.f32 %v518_v37, %v517_v17  ;;  %v856_v36 = vand.u32 2147483648, %v2075_v11  ;;  %vm855_vm11 = vcmp.eq.f32.partialorder %v2075_v11, 0.0 }
 0x156   :  { %v2085_v35 = vadd.f32 %v504_v21, %v1934_v12  ;;  %v1169_v34 = vadd.f32 %v1168_v57, %v1167_v7 }
 0x157   :  { %v197_v33 = vmul.f32 0.5, %v196_v41  ;;  %v1488_v30 = vpop.eup %1487  ;;  %1491 = vrsqrt.f32 %v2087_v25  ;;  %vm527_vm12 = vcmp.eq.f32.partialorder %v2087_v25, inf  ;;  %v530_v32 = vand.u32 2147483648, %v2087_v25 }
 0x158   :  { %v1156_v45 = vmul.f32 0.6931472, %v1488_v30  ;;  %v1170_v31 = vrot.slane %v1169_v34, 1  ;;  %vm529_vm13 = vcmp.eq.f32.partialorder %v2087_v25, 0.0 }
 0x159   :  { %v198_v3 = vsub.f32 1.5, %v197_v33 }
 0x15a   :  { %v1490_v50 = vpop.eup %1489  ;;  %v2091_v52 = vadd.f32 %v1156_v45, %v1940_v22  ;;  %v2114_v8 = vadd.f32 %v1170_v31, %v1169_v34 }
 0x15b   :  { %v199_v53 = vmul.f32 %v1484_v19, %v198_v3  ;;  %v847_v56 = vmul.f32 %v1490_v50, %v2075_v11 }
 0x15c   :  { %vm1179_vm14 = vcmp.eq.f32.partialorder %v2114_v8, inf  ;;  %vm1181_vm15 = vcmp.eq.f32.partialorder %v2114_v8, 0.0  ;;  %v1182_v31 = vand.u32 2147483648, %v2114_v8 }
 0x15d   :  { %v200_v12 = vmul.f32 %v199_v53, %v2060_v6  ;;  %v1492_v61 = vpop.eup %1491  ;;  %v848_v22 = vmul.f32 %v1490_v50, %v847_v56  ;;  %v1193_v56 = vstv %s2138_s6 }
 0x15e   :  { %v521_v1 = vmul.f32 %v1492_v61, %v2087_v25 }
 0x15f   :  { %v202_v5 = vsel %vm201_vm8, %v2060_v6, %v200_v12  ;;  %v849_v26 = vmul.f32 0.5, %v848_v22  ;;  %v1184_v12 = vstv %s2136_s5 }
 0x160   :  { %v205_v2 = vsel %vm203_vm9, %v204_v18, %v202_v5  ;;  %v522_v6 = vmul.f32 %v1492_v61, %v521_v1 }
 0x161   :  { %v207_v63 = vadd.f32 %v206_v47, %v205_v2  ;;  %v2110_v10 = vmul.f32 %v215_v4, %v205_v2  ;;  %v850_v9 = vsub.f32 1.5, %v849_v26 }
 0x162   :  { %v523_v55 = vmul.f32 0.5, %v522_v6 }
 0x163   :  { %1493 = vrcp.f32 %v207_v63  ;;  %v851_v13 = vmul.f32 %v1490_v50, %v850_v9 }
 0x164   :  { %1495 = vrsqrt.f32 %v2114_v8  ;;  %v524_v16 = vsub.f32 1.5, %v523_v55 }
 0x165   :  { %v852_v39 = vmul.f32 %v851_v13, %v2075_v11 }
 0x166   :  { %v525_v0 = vmul.f32 %v1492_v61, %v524_v16 }
 0x167   :  { %v854_v49 = vsel %vm853_vm10, %v2075_v11, %v852_v39 }
 0x168   :  { %v526_v19 = vmul.f32 %v525_v0, %v2087_v25  ;;  %v857_v29 = vsel %vm855_vm11, %v856_v36, %v854_v49  ;;  %v236_v0 = vpop.permute.xlu0 %235 }
 0x169   :  { %v1494_v48 = vpop.eup %1493  ;;  %v859_v17 = vadd.f32 %v858_v44, %v857_v29  ;;  %v2131_v27 = vmul.f32 %v867_v14, %v857_v29 }
 0x16a   :  { %v1496_v60 = vpop.eup %1495  ;;  %v209_v54 = vmul.f32 %v1494_v48, %v207_v63  ;;  %v528_v41 = vsel %vm527_vm12, %v2087_v25, %v526_v19 }
 0x16b   :  { %v1173_v38 = vmul.f32 %v1496_v60, %v2114_v8  ;;  %v531_v11 = vsel %vm529_vm13, %v530_v32, %v528_v41  ;;  %1497 = vrcp.f32 %v859_v17 }
 0x16c   :  { %v210_v21 = vsub.f32 2.0, %v209_v54  ;;  %v533_v40 = vadd.f32 %v532_v15, %v531_v11  ;;  %v2142_v30 = vmul.f32 %v541_v23, %v531_v11 }
 0x16d   :  { %v1174_v37 = vmul.f32 %v1496_v60, %v1173_v38 }
 0x16e   :  { %v211_v33 = vmul.f32 %v1494_v48, %v210_v21  ;;  %1499 = vrcp.f32 %v533_v40 }
 0x16f   :  { %v1175_v3 = vmul.f32 0.5, %v1174_v37 }
 0x170   :  { %v212_v45 = vmul.f32 %v211_v33, %v207_v63 }
 0x171   :  { %v1176_v7 = vsub.f32 1.5, %v1175_v3  ;;  %v1498_v53 = vpop.eup %1497 }
 0x172   :  { %v213_v25 = vsub.f32 2.0, %v212_v45  ;;  %v861_v47 = vmul.f32 %v1498_v53, %v859_v17 }
 0x173   :  { %v1177_v50 = vmul.f32 %v1496_v60, %v1176_v7 }
 0x174   :  { %v214_v57 = vmul.f32 %v213_v25, %v211_v33  ;;  %v1500_v34 = vpop.eup %1499  ;;  %v862_v22 = vsub.f32 2.0, %v861_v47 }
 0x175   :  { %v1178_v18 = vmul.f32 %v1177_v50, %v2114_v8  ;;  %v535_v2 = vmul.f32 %v1500_v34, %v533_v40 }
 0x176   :  { %v216_v61 = vmul.f32 %v215_v4, %v214_v57  ;;  %v221_v5 = vmul.f32 %v214_v57, %v214_v57  ;;  %v863_v9 = vmul.f32 %v1498_v53, %v862_v22 }
 0x177   :  { %v1180_v1 = vsel %vm1179_vm14, %v2114_v8, %v1178_v18  ;;  %v536_v55 = vsub.f32 2.0, %v535_v2  ;;  %v888_v18 = vpop.permute.xlu2 %887 }
 0x178   :  { %v217_v63 = vmul.f32 %v216_v61, %v2015_v59  ;;  %v219_v26 = vadd.f32 1.0, %v216_v61  ;;  %v222_v6 = vmul.f32 %v221_v5, %v2110_v10  ;;  %v1183_v4 = vsel %vm1181_vm15, %v1182_v31, %v1180_v1 }
 0x179   :  { %v864_v44 = vmul.f32 %v863_v9, %v859_v17  ;;  %v1185_v39 = vadd.f32 %v1184_v12, %v1183_v4  ;;  %v537_v36 = vmul.f32 %v1500_v34, %v536_v55  ;;  %v2157_v48 = vmul.f32 %v1193_v56, %v1183_v4  ;;  %v562_v55 = vpop.permute.xlu1 %561 }
 0x17a   :  { %v223_v13 = vsub.f32 %v219_v26, %v222_v6  ;;  %v224_v16 = vmul.f32 %v219_v26, %v219_v26  ;;  %v2160_v8 = vadd.f32 %v217_v63, %v2012_v58 }
 0x17b   :  { %v865_v49 = vsub.f32 2.0, %v864_v44  ;;  %1501 = vrcp.f32 %v1185_v39  ;;  %v538_v10 = vmul.f32 %v537_v36, %v533_v40 }
 0x17c   :  { %v225_v59 = vmul.f32 %v224_v16, %v219_v26  ;;  %v226_v15 = vmul.f32 %v224_v16, %v224_v16  ;;  %v2163_v60 = vsub.f32 %v2160_v8, %v236_v0 }
 0x17d   :  { %v866_v19 = vmul.f32 %v865_v49, %v863_v9  ;;  %v539_v29 = vsub.f32 2.0, %v538_v10 }
 0x17e   :  { %v227_v54 = vmul.f32 %v226_v15, %v225_v59  ;;  %v239_v32 = vmul.f32 %v2163_v60, %v2163_v60 }
 0x17f   :  { %v868_v38 = vmul.f32 %v867_v14, %v866_v19  ;;  %v873_v58 = vmul.f32 %v866_v19, %v866_v19  ;;  %v540_v21 = vmul.f32 %v539_v29, %v537_v36 }
 0x180   :  { %v228_v17 = vmul.f32 %v227_v54, %v223_v13  ;;  %v240_v41 = vrot.slane %v239_v32, 4 }
 0x181   :  { %v1502_v11 = vpop.eup %1501  ;;  %v869_v37 = vmul.f32 %v868_v38, %v2036_v24  ;;  %v871_v33 = vadd.f32 1.0, %v868_v38  ;;  %v874_v40 = vmul.f32 %v873_v58, %v2131_v27  ;;  %v542_v3 = vmul.f32 %v541_v23, %v540_v21 }
 0x182   :  { %1503 = vlog2.f32 %v228_v17  ;;  %v547_v45 = vmul.f32 %v540_v21, %v540_v21  ;;  %v1187_v7 = vmul.f32 %v1502_v11, %v1185_v39  ;;  %v241_v25 = vadd.f32 %v240_v41, %v239_v32 }
 0x183   :  { %v875_v53 = vsub.f32 %v871_v33, %v874_v40  ;;  %v876_v50 = vmul.f32 %v871_v33, %v871_v33  ;;  %v543_v57 = vmul.f32 %v542_v3, %v2053_v51  ;;  %v545_v14 = vadd.f32 1.0, %v542_v3 }
 0x184   :  { %v548_v47 = vmul.f32 %v547_v45, %v2142_v30  ;;  %v1188_v12 = vsub.f32 2.0, %v1187_v7  ;;  %v2176_v24 = vadd.f32 %v869_v37, %v2033_v62  ;;  %v242_v27 = vrot.slane %v241_v25, 2 }
 0x185   :  { %v877_v34 = vmul.f32 %v876_v50, %v871_v33  ;;  %v878_v61 = vmul.f32 %v876_v50, %v876_v50  ;;  %v550_v23 = vmul.f32 %v545_v14, %v545_v14  ;;  %v2179_v2 = vadd.f32 %v543_v57, %v2048_v43 }
 0x186   :  { %v549_v5 = vsub.f32 %v545_v14, %v548_v47  ;;  %v1189_v22 = vmul.f32 %v1502_v11, %v1188_v12  ;;  %v2182_v51 = vsub.f32 %v2176_v24, %v888_v18  ;;  %v243_v30 = vadd.f32 %v242_v27, %v241_v25 }
 0x187   :  { %v879_v31 = vmul.f32 %v878_v61, %v877_v34  ;;  %v551_v26 = vmul.f32 %v550_v23, %v545_v14  ;;  %v552_v6 = vmul.f32 %v550_v23, %v550_v23  ;;  %v2185_v4 = vsub.f32 %v2179_v2, %v562_v55 }
 0x188   :  { %v1504_v1 = vpop.eup %1503  ;;  %v1190_v9 = vmul.f32 %v1189_v22, %v1185_v39  ;;  %v891_v43 = vmul.f32 %v2182_v51, %v2182_v51  ;;  %v244_v13 = vrot.slane %v243_v30, 1 }
 0x189   :  { %v230_v63 = vmul.f32 0.6931472, %v1504_v1  ;;  %v880_v62 = vmul.f32 %v879_v31, %v875_v53  ;;  %v553_v44 = vmul.f32 %v552_v6, %v551_v26  ;;  %v565_v36 = vmul.f32 %v2185_v4, %v2185_v4 }
 0x18a   :  { %v1191_v0 = vsub.f32 2.0, %v1190_v9  ;;  %v892_v39 = vrot.slane %v891_v43, 4  ;;  %v2194_v59 = vadd.f32 %v244_v13, %v243_v30 }
 0x18b   :  { %v2190_v16 = vadd.f32 %v230_v63, %v2056_v42  ;;  %1505 = vlog2.f32 %v880_v62  ;;  %v554_v15 = vmul.f32 %v553_v44, %v549_v5  ;;  %v566_v10 = vrot.slane %v565_v36, 4 }
 0x18c   :  { %v1192_v49 = vmul.f32 %v1191_v0, %v1189_v22  ;;  %v893_v54 = vadd.f32 %v892_v39, %v891_v43  ;;  %1507 = vrsqrt.f32 %v2194_v59  ;;  %vm253_vm0 = vcmp.eq.f32.partialorder %v2194_v59, inf }
 0x18d   :  { %1509 = vlog2.f32 %v554_v15  ;;  %v567_v29 = vadd.f32 %v566_v10, %v565_v36  ;;  %v256_v10 = vand.u32 2147483648, %v2194_v59  ;;  %vm255_vm1 = vcmp.eq.f32.partialorder %v2194_v59, 0.0 }
 0x18e   :  { %v1194_v19 = vmul.f32 %v1193_v56, %v1192_v49  ;;  %v1199_v42 = vmul.f32 %v1192_v49, %v1192_v49  ;;  %v894_v32 = vrot.slane %v893_v54, 2  ;;  %v1214_v56 = vpop.permute.xlu1 %1213 }
 0x18f   :  { %v568_v41 = vrot.slane %v567_v29, 2 }
 0x190   :  { %v1195_v17 = vmul.f32 %v1194_v19, %v2072_v28  ;;  %v1197_v38 = vadd.f32 1.0, %v1194_v19  ;;  %v1200_v58 = vmul.f32 %v1199_v42, %v2157_v48  ;;  %v895_v11 = vadd.f32 %v894_v32, %v893_v54 }
 0x191   :  { %v1506_v21 = vpop.eup %1505  ;;  %v569_v7 = vadd.f32 %v568_v41, %v567_v29  ;;  %v258_v19 = vstv %s2222_s7  ;;  %v267_v42 = vstv %s2224_s8  ;;  %v584_v41 = vstv %s2226_s9 }
 0x192   :  { %v882_v37 = vmul.f32 0.6931472, %v1506_v21  ;;  %v1201_v33 = vsub.f32 %v1197_v38, %v1200_v58  ;;  %v1202_v40 = vmul.f32 %v1197_v38, %v1197_v38  ;;  %v2202_v3 = vadd.f32 %v1195_v17, %v2066_v46  ;;  %v1508_v45 = vpop.eup %1507 }
 0x193   :  { %v896_v25 = vrot.slane %v895_v11, 1  ;;  %v1510_v53 = vpop.eup %1509  ;;  %v570_v47 = vrot.slane %v569_v7, 1 }
 0x194   :  { %v2205_v50 = vadd.f32 %v882_v37, %v2069_v20  ;;  %v1203_v28 = vmul.f32 %v1202_v40, %v1197_v38  ;;  %v1204_v57 = vmul.f32 %v1202_v40, %v1202_v40  ;;  %v2208_v48 = vsub.f32 %v2202_v3, %v1214_v56 }
 0x195   :  { %v556_v14 = vmul.f32 0.6931472, %v1510_v53  ;;  %v2210_v12 = vadd.f32 %v896_v25, %v895_v11  ;;  %v2217_v61 = vadd.f32 %v570_v47, %v569_v7  ;;  %v247_v20 = vmul.f32 %v1508_v45, %v2194_v59 }
 0x196   :  { %v1205_v18 = vmul.f32 %v1204_v57, %v1203_v28  ;;  %v1217_v46 = vmul.f32 %v2208_v48, %v2208_v48  ;;  %v593_v11 = vstv %s2229_s10  ;;  %v919_v40 = vstv %s2234_s12 }
 0x197   :  { %v2215_v34 = vadd.f32 %v556_v14, %v2085_v35  ;;  %1511 = vrsqrt.f32 %v2210_v12  ;;  %v248_v22 = vmul.f32 %v1508_v45, %v247_v20  ;;  %vm905_vm2 = vcmp.eq.f32.partialorder %v2210_v12, inf }
 0x198   :  { %v1206_v27 = vmul.f32 %v1205_v18, %v1201_v33  ;;  %v1218_v5 = vrot.slane %v1217_v46, 4  ;;  %1513 = vrsqrt.f32 %v2217_v61  ;;  %v910_v33 = vstv %s2232_s11 }
 0x199   :  { %v249_v31 = vmul.f32 0.5, %v248_v22  ;;  %vm907_vm3 = vcmp.eq.f32.partialorder %v2210_v12, 0.0  ;;  %vm579_vm4 = vcmp.eq.f32.partialorder %v2217_v61, inf  ;;  %v582_v25 = vand.u32 2147483648, %v2217_v61 }
 0x19a   :  { %1515 = vlog2.f32 %v1206_v27  ;;  %v1219_v23 = vadd.f32 %v1218_v5, %v1217_v46  ;;  %vm581_vm5 = vcmp.eq.f32.partialorder %v2217_v61, 0.0 }
 0x19b   :  { %v250_v6 = vsub.f32 1.5, %v249_v31 }
 0x19c   :  { %v1220_v1 = vrot.slane %v1219_v23, 2 }
 0x19d   :  { %v1512_v35 = vpop.eup %1511  ;;  %v251_v44 = vmul.f32 %v1508_v45, %v250_v6 }
 0x19e   :  { %v1221_v30 = vadd.f32 %v1220_v1, %v1219_v23  ;;  %v899_v63 = vmul.f32 %v1512_v35, %v2210_v12  ;;  %v1514_v26 = vpop.eup %1513 }
 0x19f   :  { %v573_v55 = vmul.f32 %v1514_v26, %v2217_v61  ;;  %v252_v49 = vmul.f32 %v251_v44, %v2194_v59 }
 0x1a0   :  { %v1516_v9 = vpop.eup %1515  ;;  %v1222_v62 = vrot.slane %v1221_v30, 1  ;;  %v900_v43 = vmul.f32 %v1512_v35, %v899_v63  ;;  %v1236_v63 = vstv %s2268_s13 }
 0x1a1   :  { %v1208_v13 = vmul.f32 0.6931472, %v1516_v9  ;;  %v574_v0 = vmul.f32 %v1514_v26, %v573_v55  ;;  %v254_v32 = vsel %vm253_vm0, %v2194_v59, %v252_v49  ;;  %v908_v59 = vand.u32 2147483648, %v2210_v12 }
 0x1a2   :  { %v2236_v36 = vadd.f32 %v1222_v62, %v1221_v30  ;;  %v901_v39 = vmul.f32 0.5, %v900_v43  ;;  %v257_v17 = vsel %vm255_vm1, %v256_v10, %v254_v32 }
 0x1a3   :  { %v2239_v15 = vadd.f32 %v1208_v13, %v2091_v52  ;;  %v575_v54 = vmul.f32 0.5, %v574_v0  ;;  %v259_v58 = vadd.f32 %v258_v19, %v257_v17  ;;  %v2251_v21 = vmul.f32 %v267_v42, %v257_v17 }
 0x1a4   :  { %1517 = vrsqrt.f32 %v2236_v36  ;;  %v902_v29 = vsub.f32 1.5, %v901_v39  ;;  %vm1231_vm6 = vcmp.eq.f32.partialorder %v2236_v36, inf  ;;  %v1234_v55 = vand.u32 2147483648, %v2236_v36 }
 0x1a5   :  { %v576_v52 = vsub.f32 1.5, %v575_v54  ;;  %1519 = vrcp.f32 %v259_v58  ;;  %vm1233_vm7 = vcmp.eq.f32.partialorder %v2236_v36, 0.0 }
 0x1a6   :  { %v903_v38 = vmul.f32 %v1512_v35, %v902_v29 }
 0x1a7   :  { %v577_v37 = vmul.f32 %v1514_v26, %v576_v52  ;;  %v1245_v26 = vstv %s2270_s14 }
 0x1a8   :  { %v904_v45 = vmul.f32 %v903_v38, %v2210_v12 }
 0x1a9   :  { %v578_v56 = vmul.f32 %v577_v37, %v2217_v61 }
 0x1aa   :  { %v1518_v7 = vpop.eup %1517  ;;  %v906_v28 = vsel %vm905_vm2, %v2210_v12, %v904_v45 }
 0x1ab   :  { %v1225_v53 = vmul.f32 %v1518_v7, %v2236_v36  ;;  %v580_v57 = vsel %vm579_vm4, %v2217_v61, %v578_v56  ;;  %v909_v14 = vsel %vm907_vm3, %v908_v59, %v906_v28  ;;  %v1520_v12 = vpop.eup %1519 }
 0x1ac   :  { %v583_v47 = vsel %vm581_vm5, %v582_v25, %v580_v57  ;;  %v911_v46 = vadd.f32 %v910_v33, %v909_v14  ;;  %v924_v20 = vmul.f32 %v919_v40, %v909_v14  ;;  %v261_v61 = vmul.f32 %v1520_v12, %v259_v58 }
 0x1ad   :  { %v1226_v18 = vmul.f32 %v1518_v7, %v1225_v53  ;;  %v585_v27 = vadd.f32 %v584_v41, %v583_v47  ;;  %v598_v5 = vmul.f32 %v593_v11, %v583_v47 }
 0x1ae   :  { %1521 = vrcp.f32 %v911_v46  ;;  %v262_v1 = vsub.f32 2.0, %v261_v61 }
 0x1af   :  { %v1227_v23 = vmul.f32 0.5, %v1226_v18  ;;  %1523 = vrcp.f32 %v585_v27 }
 0x1b0   :  { %v263_v31 = vmul.f32 %v1520_v12, %v262_v1 }
 0x1b1   :  { %v1228_v22 = vsub.f32 1.5, %v1227_v23 }
 0x1b2   :  { %v264_v43 = vmul.f32 %v263_v31, %v259_v58 }
 0x1b3   :  { %v1229_v35 = vmul.f32 %v1518_v7, %v1228_v22 }
 0x1b4   :  { %v1522_v30 = vpop.eup %1521  ;;  %v265_v49 = vsub.f32 2.0, %v264_v43 }
 0x1b5   :  { %v1230_v6 = vmul.f32 %v1229_v35, %v2236_v36  ;;  %v1524_v9 = vpop.eup %1523  ;;  %v913_v62 = vmul.f32 %v1522_v30, %v911_v46 }
 0x1b6   :  { %v587_v13 = vmul.f32 %v1524_v9, %v585_v27  ;;  %v266_v32 = vmul.f32 %v265_v49, %v263_v31  ;;  %v614_v49 = vpop.permute.xlu0 %613 }
 0x1b7   :  { %v1232_v44 = vsel %vm1231_vm6, %v2236_v36, %v1230_v6  ;;  %v914_v39 = vsub.f32 2.0, %v913_v62 }
 0x1b8   :  { %v1235_v0 = vsel %vm1233_vm7, %v1234_v55, %v1232_v44  ;;  %v588_v10 = vsub.f32 2.0, %v587_v13  ;;  %v268_v38 = vmul.f32 %v267_v42, %v266_v32  ;;  %v273_v58 = vmul.f32 %v266_v32, %v266_v32 }
 0x1b9   :  { %v1237_v54 = vadd.f32 %v1236_v63, %v1235_v0  ;;  %v2285_v19 = vmul.f32 %v1245_v26, %v1235_v0  ;;  %v915_v29 = vmul.f32 %v1522_v30, %v914_v39 }
 0x1ba   :  { %v589_v52 = vmul.f32 %v1524_v9, %v588_v10  ;;  %v269_v36 = vmul.f32 %v268_v38, %v2163_v60  ;;  %v271_v33 = vadd.f32 1.0, %v268_v38  ;;  %v274_v45 = vmul.f32 %v273_v58, %v2251_v21  ;;  %v940_v9 = vpop.permute.xlu1 %939 }
 0x1bb   :  { %1525 = vrcp.f32 %v1237_v54  ;;  %v916_v17 = vmul.f32 %v915_v29, %v911_v46  ;;  %v288_v46 = vpop.permute.xlu2 %287 }
 0x1bc   :  { %v590_v41 = vmul.f32 %v589_v52, %v585_v27  ;;  %v275_v59 = vsub.f32 %v271_v33, %v274_v45  ;;  %v276_v25 = vmul.f32 %v271_v33, %v271_v33  ;;  %v2292_v53 = vadd.f32 %v269_v36, %v2160_v8 }
 0x1bd   :  { %v917_v37 = vsub.f32 2.0, %v916_v17 }
 0x1be   :  { %v591_v7 = vsub.f32 2.0, %v590_v41  ;;  %v277_v18 = vmul.f32 %v276_v25, %v271_v33  ;;  %v278_v12 = vmul.f32 %v276_v25, %v276_v25  ;;  %v2299_v21 = vsub.f32 %v2292_v53, %v288_v46 }
 0x1bf   :  { %v918_v56 = vmul.f32 %v917_v37, %v915_v29 }
 0x1c0   :  { %v592_v57 = vmul.f32 %v591_v7, %v589_v52 }
 0x1c1   :  { %v1526_v28 = vpop.eup %1525  ;;  %v920_v42 = vmul.f32 %v919_v40, %v918_v56  ;;  %v925_v47 = vmul.f32 %v918_v56, %v918_v56  ;;  %v279_v40 = vmul.f32 %v278_v12, %v277_v18 }
 0x1c2   :  { %v1239_v14 = vmul.f32 %v1526_v28, %v1237_v54  ;;  %v594_v60 = vmul.f32 %v593_v11, %v592_v57  ;;  %v599_v27 = vmul.f32 %v592_v57, %v592_v57  ;;  %v291_v11 = vmul.f32 %v2299_v21, %v2299_v21 }
 0x1c3   :  { %v921_v61 = vmul.f32 %v920_v42, %v2182_v51  ;;  %v923_v8 = vadd.f32 1.0, %v920_v42  ;;  %v926_v22 = vmul.f32 %v925_v47, %v924_v20  ;;  %v280_v43 = vmul.f32 %v279_v40, %v275_v59 }
 0x1c4   :  { %v1240_v23 = vsub.f32 2.0, %v1239_v14  ;;  %v595_v1 = vmul.f32 %v594_v60, %v2185_v4  ;;  %v597_v35 = vadd.f32 1.0, %v594_v60  ;;  %v600_v31 = vmul.f32 %v599_v27, %v598_v5 }
 0x1c5   :  { %v927_v63 = vsub.f32 %v923_v8, %v926_v22  ;;  %v928_v6 = vmul.f32 %v923_v8, %v923_v8  ;;  %v2306_v13 = vadd.f32 %v921_v61, %v2176_v24  ;;  %v292_v4 = vrot.slane %v291_v11, 4 }
 0x1c6   :  { %v1241_v30 = vmul.f32 %v1526_v28, %v1240_v23  ;;  %v601_v55 = vsub.f32 %v597_v35, %v600_v31  ;;  %v602_v62 = vmul.f32 %v597_v35, %v597_v35  ;;  %1527 = vlog2.f32 %v280_v43  ;;  %v1266_v23 = vpop.permute.xlu2 %1265 }
 0x1c7   :  { %v929_v20 = vmul.f32 %v928_v6, %v923_v8  ;;  %v930_v44 = vmul.f32 %v928_v6, %v928_v6  ;;  %v2309_v39 = vsub.f32 %v2306_v13, %v940_v9  ;;  %v293_v32 = vadd.f32 %v292_v4, %v291_v11 }
 0x1c8   :  { %v1242_v51 = vmul.f32 %v1241_v30, %v1237_v54  ;;  %v603_v0 = vmul.f32 %v602_v62, %v597_v35  ;;  %v604_v5 = vmul.f32 %v602_v62, %v602_v62  ;;  %v2312_v52 = vadd.f32 %v595_v1, %v2179_v2 }
 0x1c9   :  { %v931_v29 = vmul.f32 %v930_v44, %v929_v20  ;;  %v943_v54 = vmul.f32 %v2309_v39, %v2309_v39  ;;  %v294_v58 = vrot.slane %v293_v32, 2 }
 0x1ca   :  { %v1243_v10 = vsub.f32 2.0, %v1242_v51  ;;  %v605_v24 = vmul.f32 %v604_v5, %v603_v0  ;;  %v2317_v41 = vsub.f32 %v2312_v52, %v614_v49 }
 0x1cb   :  { %v932_v38 = vmul.f32 %v931_v29, %v927_v63  ;;  %v944_v36 = vrot.slane %v943_v54, 4  ;;  %v295_v7 = vadd.f32 %v294_v58, %v293_v32 }
 0x1cc   :  { %v1244_v17 = vmul.f32 %v1243_v10, %v1241_v30  ;;  %v606_v37 = vmul.f32 %v605_v24, %v601_v55  ;;  %v1528_v56 = vpop.eup %1527  ;;  %v617_v59 = vmul.f32 %v2317_v41, %v2317_v41 }
 0x1cd   :  { %1529 = vlog2.f32 %v932_v38  ;;  %v945_v2 = vadd.f32 %v944_v36, %v943_v54  ;;  %v282_v14 = vmul.f32 0.6931472, %v1528_v56  ;;  %v296_v42 = vrot.slane %v295_v7, 1 }
 0x1ce   :  { %v1246_v33 = vmul.f32 %v1245_v26, %v1244_v17  ;;  %v1251_v45 = vmul.f32 %v1244_v17, %v1244_v17  ;;  %1531 = vlog2.f32 %v606_v37  ;;  %v618_v60 = vrot.slane %v617_v59, 4 }
 0x1cf   :  { %v946_v47 = vrot.slane %v945_v2, 2  ;;  %v297_v27 = vadd.f32 %v296_v42, %v295_v7  ;;  %v2329_v61 = vadd.f32 %v282_v14, %v2190_v16  ;;  %v310_v56 = vstv %s1350_s15 }
 0x1d0   :  { %v1247_v25 = vmul.f32 %v1246_v33, %v2208_v48  ;;  %v1249_v28 = vadd.f32 1.0, %v1246_v33  ;;  %v1252_v57 = vmul.f32 %v1251_v45, %v2285_v19  ;;  %v619_v1 = vadd.f32 %v618_v60, %v617_v59 }
 0x1d1   :  { %v947_v12 = vadd.f32 %v946_v47, %v945_v2  ;;  %1533 = vrsqrt.f32 %v297_v27  ;;  %vm305_vm8 = vcmp.eq.f32.partialorder %v297_v27, inf  ;;  %v308_v2 = vand.u32 2147483648, %v297_v27 }
 0x1d2   :  { %v1253_v18 = vsub.f32 %v1249_v28, %v1252_v57  ;;  %v1254_v46 = vmul.f32 %v1249_v28, %v1249_v28  ;;  %v2326_v26 = vadd.f32 %v1247_v25, %v2202_v3  ;;  %v620_v6 = vrot.slane %v619_v1, 2 }
 0x1d3   :  { %v1530_v8 = vpop.eup %1529  ;;  %v948_v30 = vrot.slane %v947_v12, 1  ;;  %vm307_vm9 = vcmp.eq.f32.partialorder %v297_v27, 0.0 }
 0x1d4   :  { %v1255_v48 = vmul.f32 %v1254_v46, %v1249_v28  ;;  %v1256_v22 = vmul.f32 %v1254_v46, %v1254_v46  ;;  %v2332_v19 = vsub.f32 %v2326_v26, %v1266_v23  ;;  %v1532_v35 = vpop.eup %1531  ;;  %v934_v31 = vmul.f32 0.6931472, %v1530_v8 }
 0x1d5   :  { %v608_v40 = vmul.f32 0.6931472, %v1532_v35  ;;  %v949_v9 = vadd.f32 %v948_v30, %v947_v12  ;;  %v621_v43 = vadd.f32 %v620_v6, %v619_v1  ;;  %v962_v12 = vstv %s2347_s16 }
 0x1d6   :  { %v1257_v3 = vmul.f32 %v1256_v22, %v1255_v48  ;;  %v1269_v63 = vmul.f32 %v2332_v19, %v2332_v19  ;;  %v2337_v16 = vadd.f32 %v934_v31, %v2205_v50 }
 0x1d7   :  { %v2340_v55 = vadd.f32 %v608_v40, %v2215_v34  ;;  %v1534_v51 = vpop.eup %1533  ;;  %v622_v4 = vrot.slane %v621_v43, 1  ;;  %vm957_vm10 = vcmp.eq.f32.partialorder %v949_v9, inf  ;;  %v960_v23 = vand.u32 2147483648, %v949_v9 }
 0x1d8   :  { %v1258_v11 = vmul.f32 %v1257_v3, %v1253_v18  ;;  %v1270_v62 = vrot.slane %v1269_v63, 4  ;;  %v299_v44 = vmul.f32 %v1534_v51, %v297_v27  ;;  %vm959_vm11 = vcmp.eq.f32.partialorder %v949_v9, 0.0 }
 0x1d9   :  { %v623_v49 = vadd.f32 %v622_v4, %v621_v43  ;;  %v636_v40 = vstv %s2352_s17 }
 0x1da   :  { %1535 = vlog2.f32 %v1258_v11  ;;  %v1271_v20 = vadd.f32 %v1270_v62, %v1269_v63  ;;  %v300_v5 = vmul.f32 %v1534_v51, %v299_v44  ;;  %v1288_v44 = vstv %s2357_s18 }
 0x1db   :  { %1537 = vrsqrt.f32 %v949_v9  ;;  %vm631_vm12 = vcmp.eq.f32.partialorder %v623_v49, inf  ;;  %v634_v6 = vand.u32 2147483648, %v623_v49  ;;  %vm633_vm13 = vcmp.eq.f32.partialorder %v623_v49, 0.0 }
 0x1dc   :  { %v1272_v0 = vrot.slane %v1271_v20, 2  ;;  %v301_v29 = vmul.f32 0.5, %v300_v5  ;;  %1539 = vrsqrt.f32 %v623_v49 }
 0x1de   :  { %v1273_v10 = vadd.f32 %v1272_v0, %v1271_v20  ;;  %v302_v54 = vsub.f32 1.5, %v301_v29 }
 0x1e0   :  { %v1536_v50 = vpop.eup %1535  ;;  %v1274_v34 = vrot.slane %v1273_v10, 1  ;;  %v303_v37 = vmul.f32 %v1534_v51, %v302_v54 }
 0x1e1   :  { %v1538_v32 = vpop.eup %1537  ;;  %v1260_v24 = vmul.f32 0.6931472, %v1536_v50 }
 0x1e2   :  { %v951_v17 = vmul.f32 %v1538_v32, %v949_v9  ;;  %v2342_v38 = vadd.f32 %v1274_v34, %v1273_v10  ;;  %v1540_v33 = vpop.eup %1539  ;;  %v304_v45 = vmul.f32 %v303_v37, %v297_v27  ;;  %v319_v37 = vstv %s1351_s19 }
 0x1e3   :  { %v2345_v58 = vadd.f32 %v1260_v24, %v2239_v15  ;;  %v625_v59 = vmul.f32 %v1540_v33, %v623_v49 }
 0x1e4   :  { %v952_v36 = vmul.f32 %v1538_v32, %v951_v17  ;;  %1541 = vrsqrt.f32 %v2342_v38  ;;  %v306_v25 = vsel %vm305_vm8, %v297_v27, %v304_v45  ;;  %vm1283_vm14 = vcmp.eq.f32.partialorder %v2342_v38, inf }
 0x1e5   :  { %v2350_v57 = vsel %vm307_vm9, %v308_v2, %v306_v25  ;;  %v626_v15 = vmul.f32 %v1540_v33, %v625_v59  ;;  %v1286_v5 = vand.u32 2147483648, %v2342_v38  ;;  %vm1285_vm15 = vcmp.eq.f32.partialorder %v2342_v38, 0.0 }
 0x1e6   :  { %v953_v7 = vmul.f32 0.5, %v952_v36  ;;  %v311_v14 = vadd.f32 %v310_v56, %v2350_v57  ;;  %v324_v2 = vmul.f32 %v319_v37, %v2350_v57 }
 0x1e7   :  { %v627_v18 = vmul.f32 0.5, %v626_v15  ;;  %v971_v15 = vstv %s2369_s0 }
 0x1e8   :  { %v954_v28 = vsub.f32 1.5, %v953_v7  ;;  %1543 = vrcp.f32 %v311_v14 }
 0x1e9   :  { %v628_v27 = vsub.f32 1.5, %v627_v18 }
 0x1ea   :  { %v955_v42 = vmul.f32 %v1538_v32, %v954_v28  ;;  %v1542_v47 = vpop.eup %1541 }
 0x1eb   :  { %v1277_v60 = vmul.f32 %v1542_v47, %v2342_v38  ;;  %v629_v1 = vmul.f32 %v1540_v33, %v628_v27 }
 0x1ec   :  { %v956_v46 = vmul.f32 %v955_v42, %v949_v9 }
 0x1ed   :  { %v1278_v48 = vmul.f32 %v1542_v47, %v1277_v60  ;;  %v630_v3 = vmul.f32 %v629_v1, %v623_v49 }
 0x1ee   :  { %v958_v8 = vsel %vm957_vm10, %v949_v9, %v956_v46  ;;  %v1544_v30 = vpop.eup %1543 }
 0x1ef   :  { %v961_v22 = vsel %vm959_vm11, %v960_v23, %v958_v8  ;;  %v1279_v31 = vmul.f32 0.5, %v1278_v48  ;;  %v313_v11 = vmul.f32 %v1544_v30, %v311_v14  ;;  %v632_v62 = vsel %vm631_vm12, %v623_v49, %v630_v3 }
 0x1f0   :  { %v963_v35 = vadd.f32 %v962_v12, %v961_v22  ;;  %v2360_v9 = vsel %vm633_vm13, %v634_v6, %v632_v62  ;;  %v976_v23 = vmul.f32 %v971_v15, %v961_v22  ;;  %v645_v8 = vstv %s2374_s20 }
 0x1f1   :  { %v1280_v63 = vsub.f32 1.5, %v1279_v31  ;;  %v314_v51 = vsub.f32 2.0, %v313_v11  ;;  %v637_v20 = vadd.f32 %v636_v40, %v2360_v9 }
 0x1f2   :  { %1545 = vrcp.f32 %v963_v35 }
 0x1f3   :  { %v1281_v43 = vmul.f32 %v1542_v47, %v1280_v63  ;;  %v315_v0 = vmul.f32 %v1544_v30, %v314_v51  ;;  %1547 = vrcp.f32 %v637_v20 }
 0x1f5   :  { %v1282_v4 = vmul.f32 %v1281_v43, %v2342_v38  ;;  %v316_v49 = vmul.f32 %v315_v0, %v311_v14  ;;  %v1297_v43 = vstv %s2377_s21 }
 0x1f7   :  { %v1284_v50 = vsel %vm1283_vm14, %v2342_v38, %v1282_v4  ;;  %v317_v34 = vsub.f32 2.0, %v316_v49 }
 0x1f8   :  { %v1546_v10 = vpop.eup %1545  ;;  %v2371_v32 = vsel %vm1285_vm15, %v1286_v5, %v1284_v50  ;;  %v650_v50 = vmul.f32 %v645_v8, %v2360_v9 }
 0x1f9   :  { %v965_v29 = vmul.f32 %v1546_v10, %v963_v35  ;;  %v1289_v24 = vadd.f32 %v1288_v44, %v2371_v32  ;;  %v1548_v17 = vpop.eup %1547  ;;  %v318_v36 = vmul.f32 %v317_v34, %v315_v0 }
 0x1fa   :  { %v639_v45 = vmul.f32 %v1548_v17, %v637_v20 }
 0x1fb   :  { %v966_v54 = vsub.f32 2.0, %v965_v29  ;;  %1549 = vrcp.f32 %v1289_v24  ;;  %v320_v38 = vmul.f32 %v319_v37, %v318_v36  ;;  %v325_v7 = vmul.f32 %v318_v36, %v318_v36 }
 0x1fc   :  { %v640_v59 = vsub.f32 2.0, %v639_v45 }
 0x1fd   :  { %v967_v33 = vmul.f32 %v1546_v10, %v966_v54  ;;  %v321_v25 = vmul.f32 %v320_v38, %v2299_v21  ;;  %v323_v28 = vadd.f32 1.0, %v320_v38  ;;  %v326_v47 = vmul.f32 %v325_v7, %v324_v2 }
 0x1fe   :  { %v641_v18 = vmul.f32 %v1548_v17, %v640_v59 }
 0x1ff   :  { %v968_v56 = vmul.f32 %v967_v33, %v963_v35  ;;  %v322_v46 = vadd.f32 %v321_v25, %v2292_v53  ;;  %v328_v60 = vmul.f32 %v323_v28, %v323_v28  ;;  %v327_v21 = vsub.f32 %v323_v28, %v326_v47 }
 0x200   :  { %v642_v57 = vmul.f32 %v641_v18, %v637_v20  ;;  %v1302_v25 = vmul.f32 %v1297_v43, %v2371_v32 }
 0x201   :  { %v969_v14 = vsub.f32 2.0, %v968_v56  ;;  %v1550_v42 = vpop.eup %1549  ;;  %v329_v48 = vmul.f32 %v328_v60, %v323_v28  ;;  %v330_v1 = vmul.f32 %v328_v60, %v328_v60  ;;  %v336_v35 = vmul.f32 %v322_v46, %v322_v46 }
 0x202   :  { %v1291_v27 = vmul.f32 %v1550_v42, %v1289_v24  ;;  %v643_v30 = vsub.f32 2.0, %v642_v57 }
 0x203   :  { %v970_v12 = vmul.f32 %v969_v14, %v967_v33  ;;  %v331_v63 = vmul.f32 %v330_v1, %v329_v48  ;;  %v337_v6 = vrot.slane %v336_v35, 4 }
 0x204   :  { %v1292_v3 = vsub.f32 2.0, %v1291_v27  ;;  %v644_v51 = vmul.f32 %v643_v30, %v641_v18 }
 0x205   :  { %v972_v31 = vmul.f32 %v971_v15, %v970_v12  ;;  %v977_v40 = vmul.f32 %v970_v12, %v970_v12  ;;  %v332_v44 = vmul.f32 %v331_v63, %v327_v21  ;;  %v338_v4 = vadd.f32 %v337_v6, %v336_v35 }
 0x206   :  { %v1293_v22 = vmul.f32 %v1550_v42, %v1292_v3  ;;  %v646_v10 = vmul.f32 %v645_v8, %v644_v51  ;;  %v651_v49 = vmul.f32 %v644_v51, %v644_v51 }
 0x207   :  { %v973_v11 = vmul.f32 %v972_v31, %v2309_v39  ;;  %v975_v53 = vadd.f32 1.0, %v972_v31  ;;  %v978_v62 = vmul.f32 %v977_v40, %v976_v23  ;;  %1551 = vlog2.f32 %v332_v44 }
 0x208   :  { %v1294_v5 = vmul.f32 %v1293_v22, %v1289_v24  ;;  %v339_v29 = vrot.slane %v338_v4, 2  ;;  %v647_v37 = vmul.f32 %v646_v10, %v2317_v41  ;;  %v649_v36 = vadd.f32 1.0, %v646_v10 }
 0x209   :  { %v974_v20 = vadd.f32 %v973_v11, %v2306_v13  ;;  %v980_v0 = vmul.f32 %v975_v53, %v975_v53  ;;  %v979_v45 = vsub.f32 %v975_v53, %v978_v62  ;;  %v652_v7 = vmul.f32 %v651_v49, %v650_v50 }
 0x20a   :  { %v1295_v17 = vsub.f32 2.0, %v1294_v5  ;;  %v340_v33 = vadd.f32 %v339_v29, %v338_v4  ;;  %v648_v24 = vadd.f32 %v647_v37, %v2312_v52  ;;  %v654_v2 = vmul.f32 %v649_v36, %v649_v36 }
 0x20b   :  { %v981_v34 = vmul.f32 %v980_v0, %v975_v53  ;;  %v982_v54 = vmul.f32 %v980_v0, %v980_v0  ;;  %v988_v39 = vmul.f32 %v974_v20, %v974_v20  ;;  %v653_v28 = vsub.f32 %v649_v36, %v652_v7 }
 0x20c   :  { %v1296_v56 = vmul.f32 %v1295_v17, %v1293_v22  ;;  %v341_v9 = vrot.slane %v340_v33, 1  ;;  %v655_v47 = vmul.f32 %v654_v2, %v649_v36  ;;  %v656_v46 = vmul.f32 %v654_v2, %v654_v2 }
 0x20d   :  { %v983_v38 = vmul.f32 %v982_v54, %v981_v34  ;;  %v989_v13 = vrot.slane %v988_v39, 4  ;;  %v1552_v41 = vpop.eup %1551  ;;  %v662_v60 = vmul.f32 %v648_v24, %v648_v24 }
 0x20e   :  { %v1298_v14 = vmul.f32 %v1297_v43, %v1296_v56  ;;  %v1303_v42 = vmul.f32 %v1296_v56, %v1296_v56  ;;  %v342_v18 = vadd.f32 %v341_v9, %v340_v33  ;;  %v334_v12 = vmul.f32 0.6931472, %v1552_v41 }
 0x20f   :  { %v984_v59 = vmul.f32 %v983_v38, %v979_v45  ;;  %v990_v15 = vadd.f32 %v989_v13, %v988_v39  ;;  %v657_v48 = vmul.f32 %v656_v46, %v655_v47  ;;  %v663_v1 = vrot.slane %v662_v60, 4 }
 0x210   :  { %v1299_v27 = vmul.f32 %v1298_v14, %v2332_v19  ;;  %v1301_v52 = vadd.f32 1.0, %v1298_v14  ;;  %v343_v8 = vmul.f32 0.5, %v342_v18  ;;  %v1304_v57 = vmul.f32 %v1303_v42, %v1302_v25 }
 0x211   :  { %1553 = vlog2.f32 %v984_v59  ;;  %v991_v23 = vrot.slane %v990_v15, 2  ;;  %v335_v21 = vadd.f32 %v334_v12, %v2329_v61  ;;  %v658_v3 = vmul.f32 %v657_v48, %v653_v28 }
 0x212   :  { %v1300_v35 = vadd.f32 %v1299_v27, %v2326_v26  ;;  %v1306_v31 = vmul.f32 %v1301_v52, %v1301_v52  ;;  %v344_v40 = vsub.f32 -7.351508, %v343_v8  ;;  %v664_v30 = vadd.f32 %v663_v1, %v662_v60 }
 0x213   :  { %v992_v32 = vadd.f32 %v991_v23, %v990_v15  ;;  %v1305_v19 = vsub.f32 %v1301_v52, %v1304_v57  ;;  %1555 = vlog2.f32 %v658_v3 }
 0x214   :  { %v1307_v6 = vmul.f32 %v1306_v31, %v1301_v52  ;;  %v1308_v11 = vmul.f32 %v1306_v31, %v1306_v31  ;;  %v1314_v53 = vmul.f32 %v1300_v35, %v1300_v35  ;;  %v665_v43 = vrot.slane %v664_v30, 2 }
 0x215   :  { %v993_v63 = vrot.slane %v992_v32, 1  ;;  %v345_v22 = vadd.f32 %v344_v40, %v335_v21 }
 0x216   :  { %v1309_v4 = vmul.f32 %v1308_v11, %v1307_v6  ;;  %v1315_v20 = vrot.slane %v1314_v53, 4  ;;  %v666_v26 = vadd.f32 %v665_v43, %v664_v30 }
 0x217   :  { %v1554_v62 = vpop.eup %1553  ;;  %v994_v44 = vadd.f32 %v993_v63, %v992_v32  ;;  %346 = vst [vmem:[#allocation4] sm:$0x1] %v345_v22 }
 0x218   :  { %v986_v51 = vmul.f32 0.6931472, %v1554_v62  ;;  %v1310_v61 = vmul.f32 %v1309_v4, %v1305_v19  ;;  %v1316_v5 = vadd.f32 %v1315_v20, %v1314_v53  ;;  %v667_v50 = vrot.slane %v666_v26, 1 }
 0x219   :  { %v995_v0 = vmul.f32 0.5, %v994_v44  ;;  %v1556_v34 = vpop.eup %1555 }
 0x21a   :  { %v987_v10 = vadd.f32 %v986_v51, %v2337_v16  ;;  %1557 = vlog2.f32 %v1310_v61  ;;  %v1317_v29 = vrot.slane %v1316_v5, 2  ;;  %v668_v54 = vadd.f32 %v667_v50, %v666_v26 }
 0x21b   :  { %v996_v49 = vsub.f32 -7.351508, %v995_v0  ;;  %v660_v17 = vmul.f32 0.6931472, %v1556_v34 }
 0x21c   :  { %v1318_v39 = vadd.f32 %v1317_v29, %v1316_v5  ;;  %v669_v36 = vmul.f32 0.5, %v668_v54 }
 0x21d   :  { %v997_v37 = vadd.f32 %v996_v49, %v987_v10  ;;  %v661_v45 = vadd.f32 %v660_v17, %v2340_v55 }
 0x21e   :  { %v1319_v33 = vrot.slane %v1318_v39, 1  ;;  %v670_v38 = vsub.f32 -7.351508, %v669_v36 }
 0x21f   :  { %998 = vst [vmem:[#allocation4 + $0x2] sm:$0x1] %v997_v37 }
 0x220   :  { %v1558_v7 = vpop.eup %1557  ;;  %v1320_v13 = vadd.f32 %v1319_v33, %v1318_v39  ;;  %v671_v24 = vadd.f32 %v670_v38, %v661_v45 }
 0x221   :  { %v1312_v56 = vmul.f32 0.6931472, %v1558_v7 }
 0x222   :  { %v1321_v16 = vmul.f32 0.5, %v1320_v13  ;;  %672 = vst [vmem:[#allocation4 + $0x1] sm:$0x1] %v671_v24 }
 0x223   :  { %v1313_v2 = vadd.f32 %v1312_v56, %v2345_v58 }
 0x224   :  { %v1322_v9 = vsub.f32 -7.351508, %v1321_v16 }
 0x226   :  { %v1323_v59 = vadd.f32 %v1322_v9, %v1313_v2 }
 0x228   :  { %1324 = vst [vmem:[#allocation4 + $0x3] sm:$0x1] %v1323_v59 }
 0x229   :  { %1335 = dma.vmem_to_hbm [thread:$0]  %s1331_s23, 64, %s1333_s25, [#allocation5]  }
 0x22a   :  { %1601 = dma.done.wait [#allocation5], 64  }
 0x22b   :  { %1602 = vsyncadd [#allocation5], 4294967232 }
 0x22c   :  { %1340 = vsyncpa [#allocation5], 1 }

</bundles_post_ra>
